<compile_context>
chip_gen: v5e
topology: v5e:2x2
jax: 0.10.0
libtpu: 0.0.40
codegen_flags: <defaults>
</compile_context>

<pallas_src>
import functools

import jax
import jax.numpy as jnp
from jax.experimental import pallas as pl
from jax.experimental.pallas import tpu as pltpu

LAYER_SIZES = [42, 1024, 512, 256, 128, 64, 32, 22]       # true (PyTorch) sizes
PAD_SIZES   = [128, 1024, 512, 256, 128, 128, 128, 128]   # lane-dense padded sizes
N_LAYERS = len(LAYER_SIZES) - 1
OUT_PAD = PAD_SIZES[-1]

MAX_TB = 1024            # max batch-tile rows
MIN_SPLIT_BATCH = 512    # batches >= this always get >= 2 grid steps (v7x both-TC)


def fcnn_kernel(x_ref,
                w1_ref, b1_ref, w2_ref, b2_ref, w3_ref, b3_ref,
                w4_ref, b4_ref, w5_ref, b5_ref, w6_ref, b6_ref,
                w7_ref, b7_ref,
                o_ref, *, n_sub, sub_rows):
    """Full 7-layer forward for one batch tile.

    n_sub independent batch sub-tiles are advanced layer-by-layer so the MXU matmul of
    one sub-tile overlaps the VPU bias+ReLU+cast epilogue of the other (independent
    dependence chains -> the LLO scheduler interleaves them)."""
    w_refs = (w1_ref, w2_ref, w3_ref, w4_ref, w5_ref, w6_ref, w7_ref)
    b_refs = (b1_ref, b2_ref, b3_ref, b4_ref, b5_ref, b6_ref, b7_ref)

    # bf16 sub-tile activations (independent chains).
    hs = [x_ref[s * sub_rows:(s + 1) * sub_rows, :] for s in range(n_sub)]

    for li in range(N_LAYERS):
        w = w_refs[li][...]            # bf16, VMEM-resident (loaded once per layer)
        b = b_refs[li][...]            # f32
        accs = [jnp.dot(h, w, preferred_element_type=jnp.float32) for h in hs]
        if li < N_LAYERS - 1:
            # fc1..fc6: bias + ReLU in f32 on the VPU, cast to bf16 for the next MXU matmul.
            # Dropout after fc1/fc2/fc3 is eval-mode identity.
            # TODO(synk): training-mode dropout would need pltpu.prng_seed/prng_random_bits masking.
            hs = [jnp.maximum(a + b, 0.0).astype(jnp.bfloat16) for a in accs]
        else:
            # fc7: no activation; write f32, lane-dense (128-wide) padded output.
            for s in range(n_sub):
                o_ref[s * sub_rows:(s + 1) * sub_rows, :] = accs[s] + b


def _round_up(x, m):
    return (x + m - 1) // m * m


def _vmem_limit_bytes():
    try:
        cap = pltpu.get_tpu_info().vmem_capacity_bytes
    except Exception:
        cap = 128 << 20
    return int(min(cap * 3 // 4, 96 << 20))


def prepare_params(params_f32):
    """One-time prep: zero-pad every layer to PAD_SIZES, cast W to bf16, keep b in f32.
    Zero-padded rows/cols + zero bias pads keep the true outputs identical."""
    prepared = []
    for i, (w, b) in enumerate(params_f32):
        in_pad, out_pad = PAD_SIZES[i], PAD_SIZES[i + 1]
        w = jnp.pad(w, ((0, in_pad - w.shape[0]), (0, out_pad - w.shape[1])))
        b = jnp.pad(b, ((0, 0), (0, out_pad - b.shape[1])))
        prepared.append((w.astype(jnp.bfloat16), b.astype(jnp.float32)))
    return prepared


@jax.jit
def fcnn_forward(x, params):
    """x: (batch, 42) f32.  params: prepare_params() output.  Returns (batch, 22) f32."""
    batch = x.shape[0]

    # Tile selection: minimize batch padding; force >= 2 grid steps for larger batches so
    # the "parallel" grid axis can shard across both TensorCores on v7x.
    n_tiles = pl.cdiv(batch, MAX_TB)
    if batch >= MIN_SPLIT_BATCH:
        n_tiles = max(n_tiles, 2)
    tb = _round_up(pl.cdiv(batch, n_tiles), 8)
    padded_batch = n_tiles * tb

    # In-kernel sub-tile interleave (MXU/VPU overlap) when the tile is big enough.
    n_sub = 2 if (tb >= 16 and tb % 16 == 0) else 1
    sub_rows = tb // n_sub

    # Cast once to bf16; zero-pad batch rows and 42 -> 128 feature lanes.
    xp = jnp.pad(x.astype(jnp.bfloat16),
                 ((0, padded_batch - batch), (0, PAD_SIZES[0] - LAYER_SIZES[0])))

    flat_args = [xp]
    in_specs = [pl.BlockSpec((tb, PAD_SIZES[0]), lambda i: (i, 0))]
    for w, b in params:
        flat_args += [w, b]
        # Constant index_map -> weights/biases DMA'd once, stay VMEM-resident across tiles.
        in_specs.append(pl.BlockSpec(w.shape, lambda i: (0, 0)))
        in_specs.append(pl.BlockSpec(b.shape, lambda i: (0, 0)))

    flops = 2 * padded_batch * sum(PAD_SIZES[i] * PAD_SIZES[i + 1] for i in range(N_LAYERS))
    bytes_accessed = (
        sum(w.size * w.dtype.itemsize + b.size * b.dtype.itemsize for w, b in params)
        + xp.size * xp.dtype.itemsize
        + padded_batch * OUT_PAD * 4)

    kernel = functools.partial(fcnn_kernel, n_sub=n_sub, sub_rows=sub_rows)

    out = pl.pallas_call(
        kernel,
        out_shape=jax.ShapeDtypeStruct((padded_batch, OUT_PAD), jnp.float32),
        grid=(n_tiles,),
        in_specs=in_specs,
        out_specs=pl.BlockSpec((tb, OUT_PAD), lambda i: (i, 0)),
        compiler_params=pltpu.CompilerParams(
            dimension_semantics=("parallel",),
            vmem_limit_bytes=_vmem_limit_bytes()),
        cost_estimate=pl.CostEstimate(
            flops=flops, transcendentals=0, bytes_accessed=bytes_accessed),
    )(*flat_args)

    # TODO(synk): if downstream consumers accept the padded (padded_batch, 128) slab, skip this
    # slice (it is an extra XLA memory pass over ~5.8x the useful bytes).
    return out[:batch, :LAYER_SIZES[-1]]


def init_params(key):
    """Deterministic init mimicking PyTorch nn.Linear default (uniform +/- 1/sqrt(fan_in)).
    W stored (in, out) = transpose of nn.Linear.weight, so forward is h @ W + b."""
    params = []
    for i in range(N_LAYERS):
        fan_in, fan_out = LAYER_SIZES[i], LAYER_SIZES[i + 1]
        key, kw, kb = jax.random.split(key, 3)
        bound = 1.0 / (fan_in ** 0.5)
        w = jax.random.uniform(kw, (fan_in, fan_out), jnp.float32, -bound, bound)
        b = jax.random.uniform(kb, (1, fan_out), jnp.float32, -bound, bound)
        params.append((w, b))
    return params


def reference_forward(x, prepared_params):
    """Pure-JAX reference using the same precision path (bf16 operands, f32 accumulation)."""
    h = jnp.pad(x.astype(jnp.bfloat16), ((0, 0), (0, PAD_SIZES[0] - LAYER_SIZES[0])))
    n = len(prepared_params)
    for i, (w, b) in enumerate(prepared_params):
        h = jnp.dot(h, w, preferred_element_type=jnp.float32) + b
        if i < n - 1:
            h = jnp.maximum(h, 0.0).astype(jnp.bfloat16)
    return h[:, :LAYER_SIZES[-1]]


if __name__ == "__main__":
    key = jax.random.PRNGKey(0)
    key, kx = jax.random.split(key)
    batch = 8
    x = jax.random.normal(kx, (batch, LAYER_SIZES[0]), jnp.float32)

    params_f32 = init_params(jax.random.PRNGKey(0))
    params = prepare_params(params_f32)

    out = fcnn_forward(x, params)
    out = jax.block_until_ready(out)

    ref = reference_forward(x, params)
    assert out.shape == (batch, LAYER_SIZES[-1]), out.shape
    assert jnp.allclose(out, ref, atol=2e-3, rtol=2e-3), "mismatch vs reference"

    print("KERNEL_OK")
</pallas_src>

<mosaic_0001>
module attributes {stable_mosaic.version = 11 : i64} {
  func.func @fcnn_kernel(%arg0: i32, %arg1: memref<8x128xbf16, #tpu.memory_space<vmem>>, %arg2: memref<128x1024xbf16, #tpu.memory_space<vmem>>, %arg3: memref<1x1024xf32, #tpu.memory_space<vmem>>, %arg4: memref<1024x512xbf16, #tpu.memory_space<vmem>>, %arg5: memref<1x512xf32, #tpu.memory_space<vmem>>, %arg6: memref<512x256xbf16, #tpu.memory_space<vmem>>, %arg7: memref<1x256xf32, #tpu.memory_space<vmem>>, %arg8: memref<256x128xbf16, #tpu.memory_space<vmem>>, %arg9: memref<1x128xf32, #tpu.memory_space<vmem>>, %arg10: memref<128x128xbf16, #tpu.memory_space<vmem>>, %arg11: memref<1x128xf32, #tpu.memory_space<vmem>>, %arg12: memref<128x128xbf16, #tpu.memory_space<vmem>>, %arg13: memref<1x128xf32, #tpu.memory_space<vmem>>, %arg14: memref<128x128xbf16, #tpu.memory_space<vmem>>, %arg15: memref<1x128xf32, #tpu.memory_space<vmem>>, %arg16: memref<8x128xf32, #tpu.memory_space<vmem>>) attributes {dimension_semantics = [#tpu.dimension_semantics<parallel>], iteration_bounds = array<i64: 1>, scalar_prefetch = 0 : i64, scratch_operands = 0 : i64, tpu.core_type = #tpu.core_type<tc>, window_params = [{transform_indices = @transform_0, window_bounds = array<i64: 8, 128>}, {pipeline_mode = #tpu.pipeline_mode<synchronous>, transform_indices = @transform_1, window_bounds = array<i64: 128, 1024>}, {pipeline_mode = #tpu.pipeline_mode<synchronous>, transform_indices = @transform_2, window_bounds = array<i64: 1, 1024>}, {pipeline_mode = #tpu.pipeline_mode<synchronous>, transform_indices = @transform_3, window_bounds = array<i64: 1024, 512>}, {pipeline_mode = #tpu.pipeline_mode<synchronous>, transform_indices = @transform_4, window_bounds = array<i64: 1, 512>}, {pipeline_mode = #tpu.pipeline_mode<synchronous>, transform_indices = @transform_5, window_bounds = array<i64: 512, 256>}, {pipeline_mode = #tpu.pipeline_mode<synchronous>, transform_indices = @transform_6, window_bounds = array<i64: 1, 256>}, {pipeline_mode = #tpu.pipeline_mode<synchronous>, transform_indices = @transform_7, window_bounds = array<i64: 256, 128>}, {pipeline_mode = #tpu.pipeline_mode<synchronous>, transform_indices = @transform_8, window_bounds = array<i64: 1, 128>}, {pipeline_mode = #tpu.pipeline_mode<synchronous>, transform_indices = @transform_9, window_bounds = array<i64: 128, 128>}, {pipeline_mode = #tpu.pipeline_mode<synchronous>, transform_indices = @transform_10, window_bounds = array<i64: 1, 128>}, {pipeline_mode = #tpu.pipeline_mode<synchronous>, transform_indices = @transform_11, window_bounds = array<i64: 128, 128>}, {pipeline_mode = #tpu.pipeline_mode<synchronous>, transform_indices = @transform_12, window_bounds = array<i64: 1, 128>}, {pipeline_mode = #tpu.pipeline_mode<synchronous>, transform_indices = @transform_13, window_bounds = array<i64: 128, 128>}, {pipeline_mode = #tpu.pipeline_mode<synchronous>, transform_indices = @transform_14, window_bounds = array<i64: 1, 128>}, {transform_indices = @transform_15, window_bounds = array<i64: 8, 128>}]} {
    %c0 = arith.constant 0 : index
    %c0_0 = arith.constant 0 : index
    %0 = vector.load %arg1[%c0, %c0_0] : memref<8x128xbf16, #tpu.memory_space<vmem>>, vector<8x128xbf16>
    %c0_1 = arith.constant 0 : index
    %c0_2 = arith.constant 0 : index
    %1 = vector.load %arg2[%c0_1, %c0_2] : memref<128x1024xbf16, #tpu.memory_space<vmem>>, vector<128x1024xbf16>
    %c0_3 = arith.constant 0 : index
    %c0_4 = arith.constant 0 : index
    %2 = vector.load %arg3[%c0_3, %c0_4] : memref<1x1024xf32, #tpu.memory_space<vmem>>, vector<1x1024xf32>
    %cst = arith.constant dense<0.000000e+00> : vector<8x1024xf32>
    %3 = tpu.matmul %0, %1, %cst {dimension_numbers = #tpu.dot_dimension_numbers<[1], [0], [0], [1], [0, 0, 1, 1], [], []>} : vector<8x128xbf16>, vector<128x1024xbf16>, vector<8x1024xf32> -> vector<8x1024xf32>
    %4 = vector.broadcast %2 : vector<1x1024xf32> to vector<8x1024xf32>
    %5 = arith.addf %3, %4 : vector<8x1024xf32>
    %cst_5 = arith.constant 0.000000e+00 : f32
    %6 = vector.broadcast %cst_5 : f32 to vector<8x1024xf32>
    %7 = arith.maximumf %5, %6 : vector<8x1024xf32>
    %8 = arith.truncf %7 : vector<8x1024xf32> to vector<8x1024xbf16>
    %c0_6 = arith.constant 0 : index
    %c0_7 = arith.constant 0 : index
    %9 = vector.load %arg4[%c0_6, %c0_7] : memref<1024x512xbf16, #tpu.memory_space<vmem>>, vector<1024x512xbf16>
    %c0_8 = arith.constant 0 : index
    %c0_9 = arith.constant 0 : index
    %10 = vector.load %arg5[%c0_8, %c0_9] : memref<1x512xf32, #tpu.memory_space<vmem>>, vector<1x512xf32>
    %cst_10 = arith.constant dense<0.000000e+00> : vector<8x512xf32>
    %11 = tpu.matmul %8, %9, %cst_10 {dimension_numbers = #tpu.dot_dimension_numbers<[1], [0], [0], [1], [0, 0, 1, 1], [], []>} : vector<8x1024xbf16>, vector<1024x512xbf16>, vector<8x512xf32> -> vector<8x512xf32>
    %12 = vector.broadcast %10 : vector<1x512xf32> to vector<8x512xf32>
    %13 = arith.addf %11, %12 : vector<8x512xf32>
    %cst_11 = arith.constant 0.000000e+00 : f32
    %14 = vector.broadcast %cst_11 : f32 to vector<8x512xf32>
    %15 = arith.maximumf %13, %14 : vector<8x512xf32>
    %16 = arith.truncf %15 : vector<8x512xf32> to vector<8x512xbf16>
    %c0_12 = arith.constant 0 : index
    %c0_13 = arith.constant 0 : index
    %17 = vector.load %arg6[%c0_12, %c0_13] : memref<512x256xbf16, #tpu.memory_space<vmem>>, vector<512x256xbf16>
    %c0_14 = arith.constant 0 : index
    %c0_15 = arith.constant 0 : index
    %18 = vector.load %arg7[%c0_14, %c0_15] : memref<1x256xf32, #tpu.memory_space<vmem>>, vector<1x256xf32>
    %cst_16 = arith.constant dense<0.000000e+00> : vector<8x256xf32>
    %19 = tpu.matmul %16, %17, %cst_16 {dimension_numbers = #tpu.dot_dimension_numbers<[1], [0], [0], [1], [0, 0, 1, 1], [], []>} : vector<8x512xbf16>, vector<512x256xbf16>, vector<8x256xf32> -> vector<8x256xf32>
    %20 = vector.broadcast %18 : vector<1x256xf32> to vector<8x256xf32>
    %21 = arith.addf %19, %20 : vector<8x256xf32>
    %cst_17 = arith.constant 0.000000e+00 : f32
    %22 = vector.broadcast %cst_17 : f32 to vector<8x256xf32>
    %23 = arith.maximumf %21, %22 : vector<8x256xf32>
    %24 = arith.truncf %23 : vector<8x256xf32> to vector<8x256xbf16>
    %c0_18 = arith.constant 0 : index
    %c0_19 = arith.constant 0 : index
    %25 = vector.load %arg8[%c0_18, %c0_19] : memref<256x128xbf16, #tpu.memory_space<vmem>>, vector<256x128xbf16>
    %c0_20 = arith.constant 0 : index
    %c0_21 = arith.constant 0 : index
    %26 = vector.load %arg9[%c0_20, %c0_21] : memref<1x128xf32, #tpu.memory_space<vmem>>, vector<1x128xf32>
    %cst_22 = arith.constant dense<0.000000e+00> : vector<8x128xf32>
    %27 = tpu.matmul %24, %25, %cst_22 {dimension_numbers = #tpu.dot_dimension_numbers<[1], [0], [0], [1], [0, 0, 1, 1], [], []>} : vector<8x256xbf16>, vector<256x128xbf16>, vector<8x128xf32> -> vector<8x128xf32>
    %28 = vector.broadcast %26 : vector<1x128xf32> to vector<8x128xf32>
    %29 = arith.addf %27, %28 : vector<8x128xf32>
    %cst_23 = arith.constant 0.000000e+00 : f32
    %30 = vector.broadcast %cst_23 : f32 to vector<8x128xf32>
    %31 = arith.maximumf %29, %30 : vector<8x128xf32>
    %32 = arith.truncf %31 : vector<8x128xf32> to vector<8x128xbf16>
    %c0_24 = arith.constant 0 : index
    %c0_25 = arith.constant 0 : index
    %33 = vector.load %arg10[%c0_24, %c0_25] : memref<128x128xbf16, #tpu.memory_space<vmem>>, vector<128x128xbf16>
    %c0_26 = arith.constant 0 : index
    %c0_27 = arith.constant 0 : index
    %34 = vector.load %arg11[%c0_26, %c0_27] : memref<1x128xf32, #tpu.memory_space<vmem>>, vector<1x128xf32>
    %cst_28 = arith.constant dense<0.000000e+00> : vector<8x128xf32>
    %35 = tpu.matmul %32, %33, %cst_28 {dimension_numbers = #tpu.dot_dimension_numbers<[1], [0], [0], [1], [0, 0, 1, 1], [], []>} : vector<8x128xbf16>, vector<128x128xbf16>, vector<8x128xf32> -> vector<8x128xf32>
    %36 = vector.broadcast %34 : vector<1x128xf32> to vector<8x128xf32>
    %37 = arith.addf %35, %36 : vector<8x128xf32>
    %cst_29 = arith.constant 0.000000e+00 : f32
    %38 = vector.broadcast %cst_29 : f32 to vector<8x128xf32>
    %39 = arith.maximumf %37, %38 : vector<8x128xf32>
    %40 = arith.truncf %39 : vector<8x128xf32> to vector<8x128xbf16>
    %c0_30 = arith.constant 0 : index
    %c0_31 = arith.constant 0 : index
    %41 = vector.load %arg12[%c0_30, %c0_31] : memref<128x128xbf16, #tpu.memory_space<vmem>>, vector<128x128xbf16>
    %c0_32 = arith.constant 0 : index
    %c0_33 = arith.constant 0 : index
    %42 = vector.load %arg13[%c0_32, %c0_33] : memref<1x128xf32, #tpu.memory_space<vmem>>, vector<1x128xf32>
    %cst_34 = arith.constant dense<0.000000e+00> : vector<8x128xf32>
    %43 = tpu.matmul %40, %41, %cst_34 {dimension_numbers = #tpu.dot_dimension_numbers<[1], [0], [0], [1], [0, 0, 1, 1], [], []>} : vector<8x128xbf16>, vector<128x128xbf16>, vector<8x128xf32> -> vector<8x128xf32>
    %44 = vector.broadcast %42 : vector<1x128xf32> to vector<8x128xf32>
    %45 = arith.addf %43, %44 : vector<8x128xf32>
    %cst_35 = arith.constant 0.000000e+00 : f32
    %46 = vector.broadcast %cst_35 : f32 to vector<8x128xf32>
    %47 = arith.maximumf %45, %46 : vector<8x128xf32>
    %48 = arith.truncf %47 : vector<8x128xf32> to vector<8x128xbf16>
    %c0_36 = arith.constant 0 : index
    %c0_37 = arith.constant 0 : index
    %49 = vector.load %arg14[%c0_36, %c0_37] : memref<128x128xbf16, #tpu.memory_space<vmem>>, vector<128x128xbf16>
    %c0_38 = arith.constant 0 : index
    %c0_39 = arith.constant 0 : index
    %50 = vector.load %arg15[%c0_38, %c0_39] : memref<1x128xf32, #tpu.memory_space<vmem>>, vector<1x128xf32>
    %cst_40 = arith.constant dense<0.000000e+00> : vector<8x128xf32>
    %51 = tpu.matmul %48, %49, %cst_40 {dimension_numbers = #tpu.dot_dimension_numbers<[1], [0], [0], [1], [0, 0, 1, 1], [], []>} : vector<8x128xbf16>, vector<128x128xbf16>, vector<8x128xf32> -> vector<8x128xf32>
    %52 = vector.broadcast %50 : vector<1x128xf32> to vector<8x128xf32>
    %53 = arith.addf %51, %52 : vector<8x128xf32>
    %c0_41 = arith.constant 0 : index
    %c0_42 = arith.constant 0 : index
    %54 = vector.load %arg16[%c0_41, %c0_42] : memref<8x128xf32, #tpu.memory_space<vmem>>, vector<8x128xf32>
    tpu.vector_store %arg16[%c0_41, %c0_42], %53 {strides = array<i32>} : memref<8x128xf32, #tpu.memory_space<vmem>>, vector<8x128xf32>,
    return
  }
  func.func @transform_0(%arg0: i32) -> (i32, i32) {
    %c0_i32 = arith.constant 0 : i32
    %c0_i32_0 = arith.constant 0 : i32
    return %arg0, %c0_i32 : i32, i32
  }
  func.func @transform_1(%arg0: i32) -> (i32, i32) {
    %c0_i32 = arith.constant 0 : i32
    %c0_i32_0 = arith.constant 0 : i32
    %c0_i32_1 = arith.constant 0 : i32
    return %c0_i32, %c0_i32_0 : i32, i32
  }
  func.func @transform_2(%arg0: i32) -> (i32, i32) {
    %c0_i32 = arith.constant 0 : i32
    %c0_i32_0 = arith.constant 0 : i32
    %c0_i32_1 = arith.constant 0 : i32
    return %c0_i32, %c0_i32_0 : i32, i32
  }
  func.func @transform_3(%arg0: i32) -> (i32, i32) {
    %c0_i32 = arith.constant 0 : i32
    %c0_i32_0 = arith.constant 0 : i32
    %c0_i32_1 = arith.constant 0 : i32
    return %c0_i32, %c0_i32_0 : i32, i32
  }
  func.func @transform_4(%arg0: i32) -> (i32, i32) {
    %c0_i32 = arith.constant 0 : i32
    %c0_i32_0 = arith.constant 0 : i32
    %c0_i32_1 = arith.constant 0 : i32
    return %c0_i32, %c0_i32_0 : i32, i32
  }
  func.func @transform_5(%arg0: i32) -> (i32, i32) {
    %c0_i32 = arith.constant 0 : i32
    %c0_i32_0 = arith.constant 0 : i32
    %c0_i32_1 = arith.constant 0 : i32
    return %c0_i32, %c0_i32_0 : i32, i32
  }
  func.func @transform_6(%arg0: i32) -> (i32, i32) {
    %c0_i32 = arith.constant 0 : i32
    %c0_i32_0 = arith.constant 0 : i32
    %c0_i32_1 = arith.constant 0 : i32
    return %c0_i32, %c0_i32_0 : i32, i32
  }
  func.func @transform_7(%arg0: i32) -> (i32, i32) {
    %c0_i32 = arith.constant 0 : i32
    %c0_i32_0 = arith.constant 0 : i32
    %c0_i32_1 = arith.constant 0 : i32
    return %c0_i32, %c0_i32_0 : i32, i32
  }
  func.func @transform_8(%arg0: i32) -> (i32, i32) {
    %c0_i32 = arith.constant 0 : i32
    %c0_i32_0 = arith.constant 0 : i32
    %c0_i32_1 = arith.constant 0 : i32
    return %c0_i32, %c0_i32_0 : i32, i32
  }
  func.func @transform_9(%arg0: i32) -> (i32, i32) {
    %c0_i32 = arith.constant 0 : i32
    %c0_i32_0 = arith.constant 0 : i32
    %c0_i32_1 = arith.constant 0 : i32
    return %c0_i32, %c0_i32_0 : i32, i32
  }
  func.func @transform_10(%arg0: i32) -> (i32, i32) {
    %c0_i32 = arith.constant 0 : i32
    %c0_i32_0 = arith.constant 0 : i32
    %c0_i32_1 = arith.constant 0 : i32
    return %c0_i32, %c0_i32_0 : i32, i32
  }
  func.func @transform_11(%arg0: i32) -> (i32, i32) {
    %c0_i32 = arith.constant 0 : i32
    %c0_i32_0 = arith.constant 0 : i32
    %c0_i32_1 = arith.constant 0 : i32
    return %c0_i32, %c0_i32_0 : i32, i32
  }
  func.func @transform_12(%arg0: i32) -> (i32, i32) {
    %c0_i32 = arith.constant 0 : i32
    %c0_i32_0 = arith.constant 0 : i32
    %c0_i32_1 = arith.constant 0 : i32
    return %c0_i32, %c0_i32_0 : i32, i32
  }
  func.func @transform_13(%arg0: i32) -> (i32, i32) {
    %c0_i32 = arith.constant 0 : i32
    %c0_i32_0 = arith.constant 0 : i32
    %c0_i32_1 = arith.constant 0 : i32
    return %c0_i32, %c0_i32_0 : i32, i32
  }
  func.func @transform_14(%arg0: i32) -> (i32, i32) {
    %c0_i32 = arith.constant 0 : i32
    %c0_i32_0 = arith.constant 0 : i32
    %c0_i32_1 = arith.constant 0 : i32
    return %c0_i32, %c0_i32_0 : i32, i32
  }
  func.func @transform_15(%arg0: i32) -> (i32, i32) {
    %c0_i32 = arith.constant 0 : i32
    %c0_i32_0 = arith.constant 0 : i32
    return %arg0, %c0_i32 : i32, i32
  }
}

</mosaic_0001>

<bundles_post_ra>
// kernel: fcnn_forward.1
= control target key start
LH: loop header
LB: loop body
LE: loop exit
PB: predicated region body
PF: predicated region fallthrough
CT: control target
= control target key end

     0   :  { %20 = vsyncpa [#allocation3], 0  ;;  %s6189_s0 = inlined_call_operand.vmem [shape: bf16[8,128], index: 0, kind: input, shape index: {}]   ;;  %s6190_s1 = inlined_call_operand.hbm [shape: bf16[128,1024], index: 1, kind: input, shape index: {}]   ;;  %s6191_s2 = inlined_call_operand.vmem [shape: f32[1,1024], index: 2, kind: input, shape index: {}]   ;;  %s6192_s3 = inlined_call_operand.hbm [shape: bf16[1024,512], index: 3, kind: input, shape index: {}]   ;;  %s6193_s4 = inlined_call_operand.vmem [shape: f32[1,512], index: 4, kind: input, shape index: {}]   ;;  %s6194_s5 = inlined_call_operand.hbm [shape: bf16[512,256], index: 5, kind: input, shape index: {}]   ;;  %s6195_s6 = inlined_call_operand.vmem [shape: f32[1,256], index: 6, kind: input, shape index: {}]   ;;  %s6196_s7 = inlined_call_operand.hbm [shape: bf16[256,128], index: 7, kind: input, shape index: {}]   ;;  %s6197_s8 = inlined_call_operand.vmem [shape: f32[1,128], index: 8, kind: input, shape index: {}]   ;;  %s6198_s9 = inlined_call_operand.hbm [shape: bf16[128,128], index: 9, kind: input, shape index: {}]   ;;  %s6199_s10 = inlined_call_operand.vmem [shape: f32[1,128], index: 10, kind: input, shape index: {}]   ;;  %s6200_s11 = inlined_call_operand.hbm [shape: bf16[128,128], index: 11, kind: input, shape index: {}]   ;;  %s6201_s12 = inlined_call_operand.vmem [shape: f32[1,128], index: 12, kind: input, shape index: {}]   ;;  %s6202_s13 = inlined_call_operand.hbm [shape: bf16[128,128], index: 13, kind: input, shape index: {}]   ;;  %s6203_s14 = inlined_call_operand.vmem [shape: f32[1,128], index: 14, kind: input, shape index: {}]   ;;  %s6204_s15 = inlined_call_operand.hbm [shape: f32[8,128], index: 15, kind: output, shape index: {}]  }
   0x1   :  { %21 = vsyncpa [#allocation6], 0 }
   0x2   :  { %22 = vsyncpa [#allocation9], 0 }
   0x3   :  { %23 = vsyncpa [#allocation12], 0  ;;  %s46_s20 = sshll.u32 %s6192_s3, 4  ;;  %s47_s20 = int_to_ptr.hbm [resolvable:$true] %s46_s20 }
   0x4   :  { %24 = vsyncpa [#allocation4], 0  ;;  %s5921_s21 = smov [#allocation5]   ;;  %s76_s25 = sshll.u32 %s6196_s7, 4  ;;  %s77_s25 = int_to_ptr.hbm [resolvable:$true] %s76_s25 }
   0x5   :  { %s48_s22 = sshll.u32 %s5921_s21, 4  ;;  %s5922_s26 = smov 256   ;;  %s49_s22 = int_to_ptr.vmem [resolvable:$true] %s48_s22 }
   0x6   :  { %s5923_s27 = smov 16   ;;  %s5924_s28 = smov [#allocation8]  }
   0x7   :  { %54 = dma.hbm_to_vmem [thread:$0]  %s47_s20, 32768, %s49_s22, [#allocation6], %s5922_s26, %s5922_s26, %s5923_s27  }
   0x8   :  { %s78_s29 = sshll.u32 %s5924_s28, 4  ;;  %s5925_s30 = smov 64   ;;  %s79_s29 = int_to_ptr.vmem [resolvable:$true] %s78_s29 }
   0x9   :  { %s5926_s16 = smov 4   ;;  %s106_s18 = sshll.u32 %s6200_s11, 4  ;;  %s107_s18 = int_to_ptr.hbm [resolvable:$true] %s106_s18 }
   0xa   :  { %84 = dma.hbm_to_vmem [thread:$0]  %s77_s25, 2048, %s79_s29, [#allocation9], %s5925_s30, %s5925_s30, %s5926_s16  }
   0xb   :  { %s5927_s19 = smov [#allocation11]   ;;  %s31_s22 = sshll.u32 %s6190_s1, 4  ;;  %s32_s22 = int_to_ptr.hbm [resolvable:$true] %s31_s22 }
   0xc   :  { %s108_s7 = sshll.u32 %s5927_s19, 4  ;;  %s5928_s23 = smov [#allocation2]   ;;  %s109_s7 = int_to_ptr.vmem [resolvable:$true] %s108_s7 }
   0xd   :  { %114 = dma.hbm_to_vmem [thread:$0]  %s107_s18, 1024, %s109_s7, [#allocation12], %s5925_s30, %s5925_s30, %s5926_s16  }
   0xe   :  { %s33_s24 = sshll.u32 %s5928_s23, 4  ;;  %s5929_s25 = smov 512   ;;  %s34_s24 = int_to_ptr.vmem [resolvable:$true] %s33_s24 }
   0xf   :  { %s5930_s26 = smov 32   ;;  %s61_s28 = sshll.u32 %s6194_s5, 4  ;;  %s62_s28 = int_to_ptr.hbm [resolvable:$true] %s61_s28 }
  0x10   :  { %39 = dma.hbm_to_vmem [thread:$0]  %s32_s22, 8192, %s34_s24, [#allocation3], %s5929_s25, %s5929_s25, %s5930_s26  }
  0x11   :  { %s5931_s29 = smov [#allocation7]   ;;  %s91_s19 = sshll.u32 %s6198_s9, 4  ;;  %s92_s19 = int_to_ptr.hbm [resolvable:$true] %s91_s19 }
  0x12   :  { %s63_s3 = sshll.u32 %s5931_s29, 4  ;;  %s5932_s18 = smov 128   ;;  %s64_s3 = int_to_ptr.vmem [resolvable:$true] %s63_s3 }
  0x13   :  { %s5933_s7 = smov 8   ;;  %s5934_s21 = smov [#allocation10]  }
  0x14   :  { %69 = dma.hbm_to_vmem [thread:$0]  %s62_s28, 8192, %s64_s3, [#allocation6], %s5932_s18, %s5932_s18, %s5933_s7  }
  0x15   :  { %s93_s20 = sshll.u32 %s5934_s21, 4  ;;  %s121_s24 = sshll.u32 %s6202_s13, 4  ;;  %s94_s20 = int_to_ptr.vmem [resolvable:$true] %s93_s20  ;;  %s122_s24 = int_to_ptr.hbm [resolvable:$true] %s121_s24 }
  0x16   :  { %99 = dma.hbm_to_vmem [thread:$0]  %s92_s19, 1024, %s94_s20, [#allocation9], %s5925_s30, %s5925_s30, %s5926_s16  }
  0x17   :  { %s5935_s5 = smov [#allocation13]  }
  0x18   :  { %s123_s25 = sshll.u32 %s5935_s5, 4  ;;  %s124_s25 = int_to_ptr.vmem [resolvable:$true] %s123_s25 }
  0x19   :  { %129 = dma.hbm_to_vmem [thread:$0]  %s122_s24, 1024, %s124_s25, [#allocation12], %s5925_s30, %s5925_s30, %s5926_s16  }
  0x1a   :  { %5911 = dma.done.wait [#allocation3], 8192  }
  0x1b   :  { %5912 = vsyncadd [#allocation3], 4294959104 }
  0x1c   :  { %5913 = dma.done.wait [#allocation6], 40960  }
  0x1d   :  { %5914 = vsyncadd [#allocation6], 4294926336 }
  0x1e   :  { %5915 = dma.done.wait [#allocation9], 3072  }
  0x1f   :  { %5916 = vsyncadd [#allocation9], 4294964224 }
  0x20   :  { %5917 = dma.done.wait [#allocation12], 2048  }
  0x21   :  { %5918 = vsyncadd [#allocation12], 4294965248  ;;  %v3805_v0 = vld [vmem:[#allocation2 + $0x1c0] sm:$0xf]  ;;  %v5331_v2 = vld [vmem:[#allocation2 + $0x1c4] sm:$0xf] }
  0x22   :  { %v5335_v1 = vld [vmem:[#allocation2 + $0x1dc] sm:$0xf0]  ;;  %v3807_v4 = vld [vmem:[#allocation2 + $0x1e0] sm:$0xf0]  ;;  %v3813_v5 = vld [vmem:[#allocation2 + $0x1c8] sm:$0xf] }
  0x23   :  { %v3806_v3 = vor.u32 %v5335_v1, %v3805_v0  ;;  %v5336_v6 = vld [vmem:[#allocation2 + $0x1e4] sm:$0xf0]  ;;  %v3810_v7 = vor.u32 %v5331_v2, %v3807_v4  ;;  %v5332_v9 = vld [vmem:[#allocation2 + $0x1cc] sm:$0xf]  ;;  %v3773_v11 = vld [vmem:[#allocation2 + $0x180] sm:$0xf] }
  0x24   :  { %v3814_v8 = vor.u32 %v5336_v6, %v3813_v5  ;;  %v3815_v10 = vld [vmem:[#allocation2 + $0x1e8] sm:$0xf0]  ;;  %v5327_v13 = vld [vmem:[#allocation2 + $0x19c] sm:$0xf0]  ;;  %v5323_v14 = vld [vmem:[#allocation2 + $0x184] sm:$0xf] }
  0x25   :  { %563 = vmatpush.bf16.msra.mxu0 %v3806_v3  ;;  %v3818_v12 = vor.u32 %v5332_v9, %v3815_v10  ;;  %v3775_v15 = vld [vmem:[#allocation2 + $0x1a0] sm:$0xf0]  ;;  %576 = vmatpush.bf16.msra.mxu1 %v3810_v7  ;;  %v3774_v16 = vor.u32 %v5327_v13, %v3773_v11  ;;  %v3781_v18 = vld [vmem:[#allocation2 + $0x188] sm:$0xf]  ;;  %v5324_v20 = vld [vmem:[#allocation2 + $0x18c] sm:$0xf] }
  0x26   :  { %589 = vmatpush.bf16.msra.mxu2 %v3814_v8  ;;  %v3778_v17 = vor.u32 %v5323_v14, %v3775_v15  ;;  %v5328_v19 = vld [vmem:[#allocation2 + $0x1a4] sm:$0xf0]  ;;  %v3783_v22 = vld [vmem:[#allocation2 + $0x1a8] sm:$0xf0]  ;;  %v3741_v23 = vld [vmem:[#allocation2 + $0x140] sm:$0xf] }
  0x27   :  { %602 = vmatpush.bf16.msra.mxu3 %v3818_v12  ;;  %v3782_v21 = vor.u32 %v5328_v19, %v3781_v18  ;;  %v5319_v24 = vld [vmem:[#allocation2 + $0x15c] sm:$0xf0]  ;;  %v3786_v25 = vor.u32 %v5324_v20, %v3783_v22  ;;  %v5315_v26 = vld [vmem:[#allocation2 + $0x144] sm:$0xf]  ;;  %v3749_v28 = vld [vmem:[#allocation2 + $0x148] sm:$0xf] }
  0x28   :  { %v3743_v27 = vld [vmem:[#allocation2 + $0x160] sm:$0xf0]  ;;  %v3742_v29 = vor.u32 %v5319_v24, %v3741_v23  ;;  %v5320_v30 = vld [vmem:[#allocation2 + $0x164] sm:$0xf0]  ;;  %v5316_v31 = vld [vmem:[#allocation2 + $0x14c] sm:$0xf] }
  0x29   :  { %564 = vmatpush.bf16.msra.mxu0 %v3774_v16  ;;  %v3751_v32 = vld [vmem:[#allocation2 + $0x168] sm:$0xf0]  ;;  %577 = vmatpush.bf16.msra.mxu1 %v3778_v17  ;;  %v3746_v33 = vor.u32 %v5315_v26, %v3743_v27  ;;  %v3750_v34 = vor.u32 %v5320_v30, %v3749_v28  ;;  %v3709_v35 = vld [vmem:[#allocation2 + $0x100] sm:$0xf]  ;;  %v5307_v37 = vld [vmem:[#allocation2 + $0x104] sm:$0xf] }
  0x2a   :  { %590 = vmatpush.bf16.msra.mxu2 %v3782_v21  ;;  %v5311_v36 = vld [vmem:[#allocation2 + $0x11c] sm:$0xf0]  ;;  %v3754_v38 = vor.u32 %v5316_v31, %v3751_v32  ;;  %v3711_v39 = vld [vmem:[#allocation2 + $0x120] sm:$0xf0]  ;;  %v3717_v40 = vld [vmem:[#allocation2 + $0x108] sm:$0xf] }
  0x2b   :  { %603 = vmatpush.bf16.msra.mxu3 %v3786_v25  ;;  %v5312_v41 = vld [vmem:[#allocation2 + $0x124] sm:$0xf0]  ;;  %v5308_v42 = vld [vmem:[#allocation2 + $0x10c] sm:$0xf]  ;;  %v3710_v44 = vor.u32 %v5311_v36, %v3709_v35  ;;  %v3714_v45 = vor.u32 %v5307_v37, %v3711_v39  ;;  %v3677_v47 = vld [vmem:[#allocation2 + $0xc0] sm:$0xf] }
  0x2c   :  { %v3719_v43 = vld [vmem:[#allocation2 + $0x128] sm:$0xf0]  ;;  %v3718_v46 = vor.u32 %v5312_v41, %v3717_v40  ;;  %v5303_v48 = vld [vmem:[#allocation2 + $0xdc] sm:$0xf0]  ;;  %v5299_v49 = vld [vmem:[#allocation2 + $0xc4] sm:$0xf] }
  0x2d   :  { %565 = vmatpush.bf16.msra.mxu0 %v3742_v29  ;;  %578 = vmatpush.bf16.msra.mxu1 %v3746_v33  ;;  %v3722_v50 = vor.u32 %v5308_v42, %v3719_v43  ;;  %v3679_v51 = vld [vmem:[#allocation2 + $0xe0] sm:$0xf0]  ;;  %v3685_v52 = vld [vmem:[#allocation2 + $0xc8] sm:$0xf]  ;;  %v5300_v54 = vld [vmem:[#allocation2 + $0xcc] sm:$0xf]  ;;  %v3678_v56 = vor.u32 %v5303_v48, %v3677_v47 }
  0x2e   :  { %591 = vmatpush.bf16.msra.mxu2 %v3750_v34  ;;  %v5304_v53 = vld [vmem:[#allocation2 + $0xe4] sm:$0xf0]  ;;  %v3687_v55 = vld [vmem:[#allocation2 + $0xe8] sm:$0xf0]  ;;  %v3682_v57 = vor.u32 %v5299_v49, %v3679_v51  ;;  %v3645_v59 = vld [vmem:[#allocation2 + $0x80] sm:$0xf] }
  0x2f   :  { %604 = vmatpush.bf16.msra.mxu3 %v3754_v38  ;;  %v3686_v58 = vor.u32 %v5304_v53, %v3685_v52  ;;  %v5295_v60 = vld [vmem:[#allocation2 + $0x9c] sm:$0xf0]  ;;  %v5291_v61 = vld [vmem:[#allocation2 + $0x84] sm:$0xf]  ;;  %v3690_v62 = vor.u32 %v5300_v54, %v3687_v55  ;;  %v3653_v0 = vld [vmem:[#allocation2 + $0x88] sm:$0xf] }
  0x30   :  { %v3647_v63 = vld [vmem:[#allocation2 + $0xa0] sm:$0xf0]  ;;  %v5296_v1 = vld [vmem:[#allocation2 + $0xa4] sm:$0xf0]  ;;  %v5292_v2 = vld [vmem:[#allocation2 + $0x8c] sm:$0xf]  ;;  %v3646_v4 = vor.u32 %v5295_v60, %v3645_v59 }
  0x31   :  { %566 = vmatpush.bf16.msra.mxu0 %v3710_v44  ;;  %579 = vmatpush.bf16.msra.mxu1 %v3714_v45  ;;  %v3655_v3 = vld [vmem:[#allocation2 + $0xa8] sm:$0xf0]  ;;  %v3650_v5 = vor.u32 %v5291_v61, %v3647_v63  ;;  %v3654_v6 = vor.u32 %v5296_v1, %v3653_v0  ;;  %v3613_v7 = vld [vmem:[#allocation2 + $0x40] sm:$0xf]  ;;  %v5283_v9 = vld [vmem:[#allocation2 + $0x44] sm:$0xf] }
  0x32   :  { %592 = vmatpush.bf16.msra.mxu2 %v3718_v46  ;;  %v5287_v8 = vld [vmem:[#allocation2 + $0x5c] sm:$0xf0]  ;;  %v3658_v10 = vor.u32 %v5292_v2, %v3655_v3  ;;  %v3615_v11 = vld [vmem:[#allocation2 + $0x60] sm:$0xf0]  ;;  %v3621_v12 = vld [vmem:[#allocation2 + $0x48] sm:$0xf] }
  0x33   :  { %605 = vmatpush.bf16.msra.mxu3 %v3722_v50  ;;  %v5288_v13 = vld [vmem:[#allocation2 + $0x64] sm:$0xf0]  ;;  %v5284_v14 = vld [vmem:[#allocation2 + $0x4c] sm:$0xf]  ;;  %v3614_v16 = vor.u32 %v5287_v8, %v3613_v7  ;;  %v3581_v17 = vld [vmem:[#allocation2] sm:$0xf]  ;;  %v3618_v19 = vor.u32 %v5283_v9, %v3615_v11 }
  0x34   :  { %v3623_v15 = vld [vmem:[#allocation2 + $0x68] sm:$0xf0]  ;;  %v5279_v18 = vld [vmem:[#allocation2 + $0x1c] sm:$0xf0]  ;;  %v3622_v20 = vor.u32 %v5288_v13, %v3621_v12  ;;  %v5275_v21 = vld [vmem:[#allocation2 + $0x4] sm:$0xf] }
  0x35   :  { %567 = vmatpush.bf16.msra.mxu0 %v3678_v56  ;;  %580 = vmatpush.bf16.msra.mxu1 %v3682_v57  ;;  %v3583_v22 = vld [vmem:[#allocation2 + $0x20] sm:$0xf0]  ;;  %v3589_v23 = vld [vmem:[#allocation2 + $0x8] sm:$0xf]  ;;  %v3626_v24 = vor.u32 %v5284_v14, %v3623_v15  ;;  %v5276_v26 = vld [vmem:[#allocation2 + $0xc] sm:$0xf]  ;;  %v3582_v31 = vor.u32 %v5279_v18, %v3581_v17 }
  0x36   :  { %593 = vmatpush.bf16.msra.mxu2 %v3686_v58  ;;  %v5280_v25 = vld [vmem:[#allocation2 + $0x24] sm:$0xf0]  ;;  %v3591_v27 = vld [vmem:[#allocation2 + $0x28] sm:$0xf0]  ;;  %v3821_v28 = vld [vmem:[#allocation2 + $0x1d0] sm:$0xf]  ;;  %v3586_v35 = vor.u32 %v5275_v21, %v3583_v22 }
  0x37   :  { %606 = vmatpush.bf16.msra.mxu3 %v3690_v62  ;;  %v5337_v29 = vld [vmem:[#allocation2 + $0x1ec] sm:$0xf0]  ;;  %v5333_v30 = vld [vmem:[#allocation2 + $0x1d4] sm:$0xf]  ;;  %v3829_v33 = vld [vmem:[#allocation2 + $0x1d8] sm:$0xf]  ;;  %v3590_v36 = vor.u32 %v5280_v25, %v3589_v23  ;;  %v3594_v39 = vor.u32 %v5276_v26, %v3591_v27 }
  0x38   :  { %v3823_v32 = vld [vmem:[#allocation2 + $0x1f0] sm:$0xf0]  ;;  %v5338_v34 = vld [vmem:[#allocation2 + $0x1f4] sm:$0xf0]  ;;  %v5334_v37 = vld [vmem:[#allocation2 + $0x1dc] sm:$0xf]  ;;  %v3822_v40 = vor.u32 %v5337_v29, %v3821_v28 }
  0x39   :  { %568 = vmatpush.bf16.msra.mxu0 %v3646_v4  ;;  %581 = vmatpush.bf16.msra.mxu1 %v3650_v5  ;;  %v3831_v38 = vld [vmem:[#allocation2 + $0x1f8] sm:$0xf0]  ;;  %v3826_v41 = vor.u32 %v5333_v30, %v3823_v32  ;;  %v3830_v42 = vor.u32 %v5338_v34, %v3829_v33  ;;  %v3789_v43 = vld [vmem:[#allocation2 + $0x190] sm:$0xf]  ;;  %v5325_v45 = vld [vmem:[#allocation2 + $0x194] sm:$0xf] }
  0x3a   :  { %594 = vmatpush.bf16.msra.mxu2 %v3654_v6  ;;  %v5329_v44 = vld [vmem:[#allocation2 + $0x1ac] sm:$0xf0]  ;;  %v3834_v46 = vor.u32 %v5334_v37, %v3831_v38  ;;  %v3791_v47 = vld [vmem:[#allocation2 + $0x1b0] sm:$0xf0]  ;;  %v3797_v48 = vld [vmem:[#allocation2 + $0x198] sm:$0xf] }
  0x3b   :  { %607 = vmatpush.bf16.msra.mxu3 %v3658_v10  ;;  %v5330_v49 = vld [vmem:[#allocation2 + $0x1b4] sm:$0xf0]  ;;  %v6053_v50 = vld [vmem:[%s6189_s0] sm:$0xf]  ;;  %v5326_v51 = vld [vmem:[#allocation2 + $0x19c] sm:$0xf]  ;;  %v3790_v53 = vor.u32 %v5329_v44, %v3789_v43  ;;  %v3794_v54 = vor.u32 %v5325_v45, %v3791_v47 }
  0x3c   :  { %v3799_v52 = vld [vmem:[#allocation2 + $0x1b8] sm:$0xf0]  ;;  %v3798_v55 = vor.u32 %v5330_v49, %v3797_v48  ;;  %v3757_v56 = vld [vmem:[#allocation2 + $0x150] sm:$0xf]  ;;  %v5317_v58 = vld [vmem:[#allocation2 + $0x154] sm:$0xf] }
  0x3d   :  { %569 = vmatpush.bf16.msra.mxu0 %v3614_v16  ;;  %582 = vmatpush.bf16.msra.mxu1 %v3618_v19  ;;  %v5321_v57 = vld [vmem:[#allocation2 + $0x16c] sm:$0xf0]  ;;  %v3802_v59 = vor.u32 %v5326_v51, %v3799_v52  ;;  %v3759_v60 = vld [vmem:[#allocation2 + $0x170] sm:$0xf0]  ;;  %v3765_v61 = vld [vmem:[#allocation2 + $0x158] sm:$0xf] }
  0x3e   :  { %595 = vmatpush.bf16.msra.mxu2 %v3622_v20  ;;  %v5322_v62 = vld [vmem:[#allocation2 + $0x174] sm:$0xf0]  ;;  %v5318_v63 = vld [vmem:[#allocation2 + $0x15c] sm:$0xf]  ;;  %v3758_v1 = vor.u32 %v5321_v57, %v3757_v56  ;;  %v3762_v2 = vor.u32 %v5317_v58, %v3759_v60  ;;  %v3725_v4 = vld [vmem:[#allocation2 + $0x110] sm:$0xf] }
  0x3f   :  { %608 = vmatpush.bf16.msra.mxu3 %v3626_v24  ;;  %v3767_v0 = vld [vmem:[#allocation2 + $0x178] sm:$0xf0]  ;;  %v3766_v3 = vor.u32 %v5322_v62, %v3765_v61  ;;  %v5313_v5 = vld [vmem:[#allocation2 + $0x12c] sm:$0xf0]  ;;  %v5309_v6 = vld [vmem:[#allocation2 + $0x114] sm:$0xf] }
  0x40   :  { %v3770_v7 = vor.u32 %v5318_v63, %v3767_v0  ;;  %v3727_v8 = vld [vmem:[#allocation2 + $0x130] sm:$0xf0]  ;;  %v3733_v9 = vld [vmem:[#allocation2 + $0x118] sm:$0xf]  ;;  %v5310_v11 = vld [vmem:[#allocation2 + $0x11c] sm:$0xf]  ;;  %v3726_v13 = vor.u32 %v5313_v5, %v3725_v4 }
  0x41   :  { %570 = vmatpush.bf16.msra.mxu0 %v3582_v31  ;;  %583 = vmatpush.bf16.msra.mxu1 %v3586_v35  ;;  %v5314_v10 = vld [vmem:[#allocation2 + $0x134] sm:$0xf0]  ;;  %v3735_v12 = vld [vmem:[#allocation2 + $0x138] sm:$0xf0]  ;;  %v3730_v14 = vor.u32 %v5309_v6, %v3727_v8  ;;  %v3693_v16 = vld [vmem:[#allocation2 + $0xd0] sm:$0xf] }
  0x42   :  { %596 = vmatpush.bf16.msra.mxu2 %v3590_v36  ;;  %v3734_v15 = vor.u32 %v5314_v10, %v3733_v9  ;;  %v5305_v17 = vld [vmem:[#allocation2 + $0xec] sm:$0xf0]  ;;  %v5301_v18 = vld [vmem:[#allocation2 + $0xd4] sm:$0xf]  ;;  %v3738_v19 = vor.u32 %v5310_v11, %v3735_v12  ;;  %v3701_v21 = vld [vmem:[#allocation2 + $0xd8] sm:$0xf] }
  0x43   :  { %609 = vmatpush.bf16.msra.mxu3 %v3594_v39  ;;  %v3695_v20 = vld [vmem:[#allocation2 + $0xf0] sm:$0xf0]  ;;  %v5306_v22 = vld [vmem:[#allocation2 + $0xf4] sm:$0xf0]  ;;  %v5302_v23 = vld [vmem:[#allocation2 + $0xdc] sm:$0xf]  ;;  %v3694_v25 = vor.u32 %v5305_v17, %v3693_v16 }
  0x44   :  { %571 = vmatmul.bf16.vlgmr.msra.gmra.mxu0 %v6053_v50  ;;  %584 = vmatmul.bf16.vlgmr.msra.gmra.mxu1 %v6053_v50  ;;  %v3703_v24 = vld [vmem:[#allocation2 + $0xf8] sm:$0xf0]  ;;  %v3698_v26 = vor.u32 %v5301_v18, %v3695_v20  ;;  %v3702_v27 = vor.u32 %v5306_v22, %v3701_v21  ;;  %v3661_v28 = vld [vmem:[#allocation2 + $0x90] sm:$0xf]  ;;  %v5293_v30 = vld [vmem:[#allocation2 + $0x94] sm:$0xf] }
  0x45   :  { %615 = vmatpush.bf16.msrb.mxu0 %v3822_v40  ;;  %628 = vmatpush.bf16.msrb.mxu1 %v3826_v41  ;;  %v5297_v29 = vld [vmem:[#allocation2 + $0xac] sm:$0xf0]  ;;  %v3706_v31 = vor.u32 %v5302_v23, %v3703_v24  ;;  %v3663_v32 = vld [vmem:[#allocation2 + $0xb0] sm:$0xf0]  ;;  %v3669_v33 = vld [vmem:[#allocation2 + $0x98] sm:$0xf] }
  0x46   :  { %641 = vmatpush.bf16.msrb.mxu2 %v3830_v42  ;;  %610 = vmatmul.bf16.vlgmr.msra.gmra.mxu3 %v6053_v50  ;;  %v5298_v34 = vld [vmem:[#allocation2 + $0xb4] sm:$0xf0]  ;;  %v5294_v35 = vld [vmem:[#allocation2 + $0x9c] sm:$0xf]  ;;  %v3662_v37 = vor.u32 %v5297_v29, %v3661_v28  ;;  %v3666_v38 = vor.u32 %v5293_v30, %v3663_v32  ;;  %v3629_v40 = vld [vmem:[#allocation2 + $0x50] sm:$0xf] }
  0x47   :  { %654 = vmatpush.bf16.msrb.mxu3 %v3834_v46  ;;  %597 = vmatmul.bf16.vlgmr.msra.gmra.mxu2 %v6053_v50  ;;  %v3671_v36 = vld [vmem:[#allocation2 + $0xb8] sm:$0xf0]  ;;  %v3670_v39 = vor.u32 %v5298_v34, %v3669_v33  ;;  %v5289_v41 = vld [vmem:[#allocation2 + $0x6c] sm:$0xf0]  ;;  %v5285_v42 = vld [vmem:[#allocation2 + $0x54] sm:$0xf] }
  0x48   :  { %v3674_v43 = vor.u32 %v5294_v35, %v3671_v36  ;;  %v3631_v44 = vld [vmem:[#allocation2 + $0x70] sm:$0xf0]  ;;  %v3637_v45 = vld [vmem:[#allocation2 + $0x58] sm:$0xf]  ;;  %v5286_v47 = vld [vmem:[#allocation2 + $0x5c] sm:$0xf]  ;;  %v3630_v49 = vor.u32 %v5289_v41, %v3629_v40 }
  0x49   :  { %616 = vmatpush.bf16.msrb.mxu0 %v3790_v53  ;;  %629 = vmatpush.bf16.msrb.mxu1 %v3794_v54  ;;  %v5290_v46 = vld [vmem:[#allocation2 + $0x74] sm:$0xf0]  ;;  %v3639_v48 = vld [vmem:[#allocation2 + $0x78] sm:$0xf0]  ;;  %v3597_v51 = vld [vmem:[#allocation2 + $0x10] sm:$0xf]  ;;  %v3634_v52 = vor.u32 %v5285_v42, %v3631_v44 }
  0x4a   :  { %642 = vmatpush.bf16.msrb.mxu2 %v3798_v55  ;;  %v3638_v53 = vor.u32 %v5290_v46, %v3637_v45  ;;  %v5281_v54 = vld [vmem:[#allocation2 + $0x2c] sm:$0xf0]  ;;  %v5277_v55 = vld [vmem:[#allocation2 + $0x14] sm:$0xf]  ;;  %v3642_v57 = vor.u32 %v5286_v47, %v3639_v48  ;;  %v3605_v58 = vld [vmem:[#allocation2 + $0x18] sm:$0xf] }
  0x4b   :  { %655 = vmatpush.bf16.msrb.mxu3 %v3802_v59  ;;  %v3599_v56 = vld [vmem:[#allocation2 + $0x30] sm:$0xf0]  ;;  %v5282_v59 = vld [vmem:[#allocation2 + $0x34] sm:$0xf0]  ;;  %v5278_v60 = vld [vmem:[#allocation2 + $0x1c] sm:$0xf]  ;;  %v3598_v0 = vor.u32 %v5281_v54, %v3597_v51 }
  0x4c   :  { %v3607_v61 = vld [vmem:[#allocation2 + $0x38] sm:$0xf0]  ;;  %v3949_v62 = vld [vmem:[#allocation5 + $0xe0] sm:$0xf]  ;;  %v5369_v63 = vld [vmem:[#allocation5 + $0xec] sm:$0xf0]  ;;  %v3606_v4 = vor.u32 %v5282_v59, %v3605_v58 }
  0x4d   :  { %617 = vmatpush.bf16.msrb.mxu0 %v3758_v1  ;;  %630 = vmatpush.bf16.msrb.mxu1 %v3762_v2  ;;  %v4077_v1 = vld [vmem:[#allocation5 + $0x1e0] sm:$0xf]  ;;  %v5401_v2 = vld [vmem:[#allocation5 + $0x1ec] sm:$0xf0]  ;;  %v3610_v5 = vor.u32 %v5278_v60, %v3607_v61  ;;  %v3950_v6 = vor.u32 %v5369_v63, %v3949_v62  ;;  %s5936_s1 = smov [#allocation14]   ;;  %s3566_s7 = sshll.u32 %s6204_s15, 4  ;;  %s3567_s7 = int_to_ptr.hbm [resolvable:$true] %s3566_s7 }
  0x4e   :  { %643 = vmatpush.bf16.msrb.mxu2 %v3766_v3  ;;  %v3602_v3 = vor.u32 %v5277_v55, %v3599_v56  ;;  %v4205_v8 = vld [vmem:[#allocation5 + $0x2e0] sm:$0xf]  ;;  %v5433_v9 = vld [vmem:[#allocation5 + $0x2ec] sm:$0xf0]  ;;  %v4078_v10 = vor.u32 %v5401_v2, %v4077_v1  ;;  %s3564_s17 = sshll.u32 %s5936_s1, 4  ;;  %s3565_s17 = int_to_ptr.vmem [resolvable:$true] %s3564_s17 }
  0x4f   :  { %656 = vmatpush.bf16.msrb.mxu3 %v3770_v7  ;;  %v3933_v7 = vld [vmem:[#allocation5 + $0xc0] sm:$0xf]  ;;  %v5365_v11 = vld [vmem:[#allocation5 + $0xcc] sm:$0xf0]  ;;  %v4206_v16 = vor.u32 %v5433_v9, %v4205_v8 }
  0x50   :  { %v4333_v12 = vld [vmem:[#allocation5 + $0x3e0] sm:$0xf]  ;;  %v3934_v17 = vor.u32 %v5365_v11, %v3933_v7  ;;  %v5429_v21 = vld [vmem:[#allocation5 + $0x2cc] sm:$0xf0] }
  0x51   :  { %618 = vmatpush.bf16.msrb.mxu0 %v3726_v13  ;;  %631 = vmatpush.bf16.msrb.mxu1 %v3730_v14  ;;  %v5465_v13 = vld [vmem:[#allocation5 + $0x3ec] sm:$0xf0]  ;;  %v4061_v14 = vld [vmem:[#allocation5 + $0x1c0] sm:$0xf] }
  0x52   :  { %644 = vmatpush.bf16.msrb.mxu2 %v3734_v15  ;;  %v5397_v15 = vld [vmem:[#allocation5 + $0x1cc] sm:$0xf0]  ;;  %v4334_v18 = vor.u32 %v5465_v13, %v4333_v12  ;;  %v4189_v20 = vld [vmem:[#allocation5 + $0x2c0] sm:$0xf] }
  0x53   :  { %657 = vmatpush.bf16.msrb.mxu3 %v3738_v19  ;;  %v3917_v19 = vld [vmem:[#allocation5 + $0xa0] sm:$0xf]  ;;  %v4062_v22 = vor.u32 %v5397_v15, %v4061_v14  ;;  %v5361_v23 = vld [vmem:[#allocation5 + $0xac] sm:$0xf0]  ;;  %v4190_v28 = vor.u32 %v5429_v21, %v4189_v20 }
  0x54   :  { %v4317_v24 = vld [vmem:[#allocation5 + $0x3c0] sm:$0xf]  ;;  %v3918_v29 = vor.u32 %v5361_v23, %v3917_v19  ;;  %v5425_v33 = vld [vmem:[#allocation5 + $0x2ac] sm:$0xf0] }
  0x55   :  { %619 = vmatpush.bf16.msrb.mxu0 %v3694_v25  ;;  %632 = vmatpush.bf16.msrb.mxu1 %v3698_v26  ;;  %v5461_v25 = vld [vmem:[#allocation5 + $0x3cc] sm:$0xf0]  ;;  %v4045_v26 = vld [vmem:[#allocation5 + $0x1a0] sm:$0xf] }
  0x56   :  { %645 = vmatpush.bf16.msrb.mxu2 %v3702_v27  ;;  %v5393_v27 = vld [vmem:[#allocation5 + $0x1ac] sm:$0xf0]  ;;  %v4318_v30 = vor.u32 %v5461_v25, %v4317_v24  ;;  %v4173_v32 = vld [vmem:[#allocation5 + $0x2a0] sm:$0xf] }
  0x57   :  { %658 = vmatpush.bf16.msrb.mxu3 %v3706_v31  ;;  %v3901_v31 = vld [vmem:[#allocation5 + $0x80] sm:$0xf]  ;;  %v4046_v34 = vor.u32 %v5393_v27, %v4045_v26  ;;  %v5357_v35 = vld [vmem:[#allocation5 + $0x8c] sm:$0xf0]  ;;  %v4174_v40 = vor.u32 %v5425_v33, %v4173_v32 }
  0x58   :  { %v4301_v36 = vld [vmem:[#allocation5 + $0x3a0] sm:$0xf]  ;;  %v3902_v42 = vor.u32 %v5357_v35, %v3901_v31  ;;  %v5421_v45 = vld [vmem:[#allocation5 + $0x28c] sm:$0xf0] }
  0x59   :  { %620 = vmatpush.bf16.msrb.mxu0 %v3662_v37  ;;  %633 = vmatpush.bf16.msrb.mxu1 %v3666_v38  ;;  %v5457_v37 = vld [vmem:[#allocation5 + $0x3ac] sm:$0xf0]  ;;  %v4029_v38 = vld [vmem:[#allocation5 + $0x180] sm:$0xf] }
  0x5a   :  { %646 = vmatpush.bf16.msrb.mxu2 %v3670_v39  ;;  %v5389_v39 = vld [vmem:[#allocation5 + $0x18c] sm:$0xf0]  ;;  %v3885_v41 = vld [vmem:[#allocation5 + $0x60] sm:$0xf] }
  0x5b   :  { %659 = vmatpush.bf16.msrb.mxu3 %v3674_v43  ;;  %v4302_v43 = vor.u32 %v5457_v37, %v4301_v36  ;;  %v4157_v44 = vld [vmem:[#allocation5 + $0x280] sm:$0xf]  ;;  %v4030_v46 = vor.u32 %v5389_v39, %v4029_v38  ;;  %v5453_v48 = vld [vmem:[#allocation5 + $0x38c] sm:$0xf0] }
  0x5c   :  { %v4285_v47 = vld [vmem:[#allocation5 + $0x380] sm:$0xf]  ;;  %v5385_v51 = vld [vmem:[#allocation5 + $0x16c] sm:$0xf0] }
  0x5d   :  { %621 = vmatpush.bf16.msrb.mxu0 %v3630_v49  ;;  %634 = vmatpush.bf16.msrb.mxu1 %v3634_v52  ;;  %v4013_v49 = vld [vmem:[#allocation5 + $0x160] sm:$0xf]  ;;  %v4158_v52 = vor.u32 %v5421_v45, %v4157_v44  ;;  %v4286_v56 = vor.u32 %v5453_v48, %v4285_v47  ;;  %v5349_v59 = vld [vmem:[#allocation5 + $0x4c] sm:$0xf0] }
  0x5e   :  { %647 = vmatpush.bf16.msrb.mxu2 %v3638_v53  ;;  %v3869_v53 = vld [vmem:[#allocation5 + $0x40] sm:$0xf]  ;;  %v4014_v58 = vor.u32 %v5385_v51, %v4013_v49  ;;  %v5449_v61 = vld [vmem:[#allocation5 + $0x36c] sm:$0xf0] }
  0x5f   :  { %660 = vmatpush.bf16.msrb.mxu3 %v3642_v57  ;;  %v4141_v54 = vld [vmem:[#allocation5 + $0x260] sm:$0xf]  ;;  %v5417_v57 = vld [vmem:[#allocation5 + $0x26c] sm:$0xf0]  ;;  %v3870_v1 = vor.u32 %v5349_v59, %v3869_v53 }
  0x60   :  { %v4269_v60 = vld [vmem:[#allocation5 + $0x360] sm:$0xf]  ;;  %v5381_v63 = vld [vmem:[#allocation5 + $0x14c] sm:$0xf0] }
  0x61   :  { %622 = vmatpush.bf16.msrb.mxu0 %v3598_v0  ;;  %635 = vmatpush.bf16.msrb.mxu1 %v3602_v3  ;;  %v3997_v62 = vld [vmem:[#allocation5 + $0x140] sm:$0xf]  ;;  %v4142_v0 = vor.u32 %v5417_v57, %v4141_v54  ;;  %v4270_v2 = vor.u32 %v5449_v61, %v4269_v60  ;;  %v5345_v7 = vld [vmem:[#allocation5 + $0x2c] sm:$0xf0] }
  0x62   :  { %648 = vmatpush.bf16.msrb.mxu2 %v3606_v4  ;;  %v3853_v3 = vld [vmem:[#allocation5 + $0x20] sm:$0xf]  ;;  %v5445_v9 = vld [vmem:[#allocation5 + $0x34c] sm:$0xf0] }
  0x63   :  { %661 = vmatpush.bf16.msrb.mxu3 %v3610_v5  ;;  %v4125_v4 = vld [vmem:[#allocation5 + $0x240] sm:$0xf]  ;;  %v5413_v5 = vld [vmem:[#allocation5 + $0x24c] sm:$0xf0]  ;;  %v3854_v14 = vor.u32 %v5345_v7, %v3853_v3 }
  0x64   :  { %623 = vmatmul.bf16.vlgmr.msrb.gmra.mxu0 %v6053_v50  ;;  %636 = vmatmul.bf16.vlgmr.msrb.gmra.mxu1 %v6053_v50  ;;  %v4253_v8 = vld [vmem:[#allocation5 + $0x340] sm:$0xf]  ;;  %v5377_v11 = vld [vmem:[#allocation5 + $0x12c] sm:$0xf0]  ;;  %v4126_v12 = vor.u32 %v5413_v5, %v4125_v4 }
  0x65   :  { %2229 = vmatpush.bf16.msra.mxu0 %v3950_v6  ;;  %2242 = vmatpush.bf16.msra.mxu1 %v4078_v10  ;;  %v3998_v6 = vor.u32 %v5381_v63, %v3997_v62  ;;  %v3981_v10 = vld [vmem:[#allocation5 + $0x120] sm:$0xf]  ;;  %v4254_v15 = vor.u32 %v5445_v9, %v4253_v8  ;;  %v5373_v23 = vld [vmem:[#allocation5 + $0x10c] sm:$0xf0] }
  0x66   :  { %649 = vmatmul.bf16.vlgmr.msrb.gmra.mxu2 %v6053_v50  ;;  %662 = vmatmul.bf16.vlgmr.msrb.gmra.mxu3 %v6053_v50  ;;  %v5353_v50 = vld [vmem:[#allocation5 + $0x6c] sm:$0xf0]  ;;  %v3837_v13 = vld [vmem:[#allocation5] sm:$0xf]  ;;  %v3982_v19 = vor.u32 %v5377_v11, %v3981_v10 }
  0x67   :  { %2255 = vmatpush.bf16.msra.mxu2 %v4206_v16  ;;  %2268 = vmatpush.bf16.msra.mxu3 %v4334_v18  ;;  %v3886_v55 = vor.u32 %v5353_v50, %v3885_v41  ;;  %v5341_v16 = vld [vmem:[#allocation5 + $0xc] sm:$0xf0]  ;;  %v3965_v20 = vld [vmem:[#allocation5 + $0x100] sm:$0xf] }
  0x68   :  { %v5409_v18 = vld [vmem:[#allocation5 + $0x22c] sm:$0xf0]  ;;  %v4237_v21 = vld [vmem:[#allocation5 + $0x320] sm:$0xf]  ;;  %v3966_v35 = vor.u32 %v5373_v23, %v3965_v20 }
  0x69   :  { %2230 = vmatpush.bf16.msra.mxu0 %v3934_v17  ;;  %2243 = vmatpush.bf16.msra.mxu1 %v4062_v22  ;;  %v4109_v17 = vld [vmem:[#allocation5 + $0x220] sm:$0xf]  ;;  %v5441_v22 = vld [vmem:[#allocation5 + $0x32c] sm:$0xf0] }
  0x6a   :  { %v4461_v24 = vld [vmem:[#allocation5 + $0x4e0] sm:$0xf]  ;;  %v5497_v25 = vld [vmem:[#allocation5 + $0x4ec] sm:$0xf0] }
  0x6b   :  { %2256 = vmatpush.bf16.msra.mxu2 %v4190_v28  ;;  %2269 = vmatpush.bf16.msra.mxu3 %v4318_v30  ;;  %v4589_v26 = vld [vmem:[#allocation5 + $0x5e0] sm:$0xf]  ;;  %v5529_v27 = vld [vmem:[#allocation5 + $0x5ec] sm:$0xf0]  ;;  %v4110_v28 = vor.u32 %v5409_v18, %v4109_v17  ;;  %v4238_v30 = vor.u32 %v5441_v22, %v4237_v21  ;;  %v4462_v36 = vor.u32 %v5497_v25, %v4461_v24 }
  0x6c   :  { %v4445_v31 = vld [vmem:[#allocation5 + $0x4c0] sm:$0xf]  ;;  %v5405_v33 = vld [vmem:[#allocation5 + $0x20c] sm:$0xf0] }
  0x6d   :  { %2231 = vmatpush.bf16.msra.mxu0 %v3918_v29  ;;  %2244 = vmatpush.bf16.msra.mxu1 %v4046_v34  ;;  %v3838_v29 = vor.u32 %v5341_v16, %v3837_v13  ;;  %v4093_v32 = vld [vmem:[#allocation5 + $0x200] sm:$0xf]  ;;  %v5437_v37 = vld [vmem:[#allocation5 + $0x30c] sm:$0xf0] }
  0x6e   :  { %v4221_v34 = vld [vmem:[#allocation5 + $0x300] sm:$0xf]  ;;  %v5561_v39 = vld [vmem:[#allocation5 + $0x6ec] sm:$0xf0]  ;;  %v4094_v45 = vor.u32 %v5405_v33, %v4093_v32 }
  0x6f   :  { %2257 = vmatpush.bf16.msra.mxu2 %v4174_v40  ;;  %2270 = vmatpush.bf16.msra.mxu3 %v4302_v43  ;;  %v4717_v38 = vld [vmem:[#allocation5 + $0x6e0] sm:$0xf]  ;;  %v4590_v40 = vor.u32 %v5529_v27, %v4589_v26  ;;  %v5493_v41 = vld [vmem:[#allocation5 + $0x4cc] sm:$0xf0] }
  0x70   :  { %v4845_v50 = vld [vmem:[#allocation5 + $0x7e0] sm:$0xf]  ;;  %v5525_v44 = vld [vmem:[#allocation5 + $0x5cc] sm:$0xf0]  ;;  %v4718_v47 = vor.u32 %v5561_v39, %v4717_v38  ;;  %v4446_v48 = vor.u32 %v5493_v41, %v4445_v31 }
  0x71   :  { %2232 = vmatpush.bf16.msra.mxu0 %v3902_v42  ;;  %2245 = vmatpush.bf16.msra.mxu1 %v4030_v46  ;;  %v5593_v42 = vld [vmem:[#allocation5 + $0x7ec] sm:$0xf0]  ;;  %v4573_v43 = vld [vmem:[#allocation5 + $0x5c0] sm:$0xf]  ;;  %v4222_v46 = vor.u32 %v5437_v37, %v4221_v34 }
  0x72   :  { %v4846_v49 = vor.u32 %v5593_v42, %v4845_v50  ;;  %v4429_v51 = vld [vmem:[#allocation5 + $0x4a0] sm:$0xf]  ;;  %v5557_v53 = vld [vmem:[#allocation5 + $0x6cc] sm:$0xf0]  ;;  %v4574_v54 = vor.u32 %v5525_v44, %v4573_v43 }
  0x73   :  { %2258 = vmatpush.bf16.msra.mxu2 %v4158_v52  ;;  %2271 = vmatpush.bf16.msra.mxu3 %v4286_v56  ;;  %v4701_v52 = vld [vmem:[#allocation5 + $0x6c0] sm:$0xf]  ;;  %v5589_v57 = vld [vmem:[#allocation5 + $0x7cc] sm:$0xf0] }
  0x74   :  { %v4829_v56 = vld [vmem:[#allocation5 + $0x7c0] sm:$0xf]  ;;  %v5521_v59 = vld [vmem:[#allocation5 + $0x5ac] sm:$0xf0]  ;;  %v4702_v60 = vor.u32 %v5557_v53, %v4701_v52 }
  0x75   :  { %2233 = vmatpush.bf16.msra.mxu0 %v3886_v55  ;;  %2246 = vmatpush.bf16.msra.mxu1 %v4014_v58  ;;  %v5489_v55 = vld [vmem:[#allocation5 + $0x4ac] sm:$0xf0]  ;;  %v4557_v58 = vld [vmem:[#allocation5 + $0x5a0] sm:$0xf]  ;;  %v4830_v62 = vor.u32 %v5589_v57, %v4829_v56 }
  0x76   :  { %v4430_v61 = vor.u32 %v5489_v55, %v4429_v51  ;;  %v4413_v63 = vld [vmem:[#allocation5 + $0x480] sm:$0xf]  ;;  %v5485_v3 = vld [vmem:[#allocation5 + $0x48c] sm:$0xf0] }
  0x77   :  { %2259 = vmatpush.bf16.msra.mxu2 %v4142_v0  ;;  %2272 = vmatpush.bf16.msra.mxu3 %v4270_v2  ;;  %v4685_v0 = vld [vmem:[#allocation5 + $0x6a0] sm:$0xf]  ;;  %v4558_v2 = vor.u32 %v5521_v59, %v4557_v58  ;;  %v5585_v5 = vld [vmem:[#allocation5 + $0x7ac] sm:$0xf0]  ;;  %v4414_v9 = vor.u32 %v5485_v3, %v4413_v63 }
  0x78   :  { %v4813_v4 = vld [vmem:[#allocation5 + $0x7a0] sm:$0xf]  ;;  %v5517_v7 = vld [vmem:[#allocation5 + $0x58c] sm:$0xf0] }
  0x79   :  { %2234 = vmatpush.bf16.msra.mxu0 %v3870_v1  ;;  %2247 = vmatpush.bf16.msra.mxu1 %v3998_v6  ;;  %v5553_v1 = vld [vmem:[#allocation5 + $0x6ac] sm:$0xf0]  ;;  %v4541_v6 = vld [vmem:[#allocation5 + $0x580] sm:$0xf]  ;;  %v4814_v10 = vor.u32 %v5585_v5, %v4813_v4 }
  0x7a   :  { %v4686_v8 = vor.u32 %v5553_v1, %v4685_v0  ;;  %v4397_v11 = vld [vmem:[#allocation5 + $0x460] sm:$0xf]  ;;  %v5549_v13 = vld [vmem:[#allocation5 + $0x68c] sm:$0xf0] }
  0x7b   :  { %2260 = vmatpush.bf16.msra.mxu2 %v4126_v12  ;;  %2273 = vmatpush.bf16.msra.mxu3 %v4254_v15  ;;  %v4669_v12 = vld [vmem:[#allocation5 + $0x680] sm:$0xf]  ;;  %v5481_v15 = vld [vmem:[#allocation5 + $0x46c] sm:$0xf0] }
  0x7c   :  { %v4797_v16 = vld [vmem:[#allocation5 + $0x780] sm:$0xf]  ;;  %v5581_v17 = vld [vmem:[#allocation5 + $0x78c] sm:$0xf0]  ;;  %v4670_v20 = vor.u32 %v5549_v13, %v4669_v12  ;;  %v4398_v21 = vor.u32 %v5481_v15, %v4397_v11  ;;  %v5399_v11 = vld [vmem:[#allocation5 + $0x1e4] sm:$0xf] }
  0x7d   :  { %2235 = vmatpush.bf16.msra.mxu0 %v3854_v14  ;;  %2248 = vmatpush.bf16.msra.mxu1 %v3982_v19  ;;  %v4542_v14 = vor.u32 %v5517_v7, %v4541_v6  ;;  %v4525_v18 = vld [vmem:[#allocation5 + $0x560] sm:$0xf]  ;;  %v5513_v19 = vld [vmem:[#allocation5 + $0x56c] sm:$0xf0]  ;;  %v4798_v22 = vor.u32 %v5581_v17, %v4797_v16  ;;  %v4079_v12 = vld [vmem:[#allocation5 + $0x1f0] sm:$0xf0] }
  0x7e   :  { %v4526_v23 = vor.u32 %v5513_v19, %v4525_v18  ;;  %v4381_v24 = vld [vmem:[#allocation5 + $0x440] sm:$0xf]  ;;  %v5477_v25 = vld [vmem:[#allocation5 + $0x44c] sm:$0xf0]  ;;  %v4082_v19 = vor.u32 %v5399_v11, %v4079_v12  ;;  %v5419_v11 = vld [vmem:[#allocation5 + $0x284] sm:$0xf] }
  0x7f   :  { %2261 = vmatpush.bf16.msra.mxu2 %v4110_v28  ;;  %2274 = vmatpush.bf16.msra.mxu3 %v4238_v30  ;;  %v4509_v26 = vld [vmem:[#allocation5 + $0x540] sm:$0xf]  ;;  %v5509_v27 = vld [vmem:[#allocation5 + $0x54c] sm:$0xf0]  ;;  %v4382_v28 = vor.u32 %v5477_v25, %v4381_v24  ;;  %v4063_v24 = vld [vmem:[#allocation5 + $0x1d0] sm:$0xf0] }
  0x80   :  { %v4653_v30 = vld [vmem:[#allocation5 + $0x660] sm:$0xf]  ;;  %v5545_v31 = vld [vmem:[#allocation5 + $0x66c] sm:$0xf0]  ;;  %v4159_v12 = vld [vmem:[#allocation5 + $0x290] sm:$0xf0] }
  0x81   :  { %2236 = vmatpush.bf16.msra.mxu0 %v3838_v29  ;;  %2249 = vmatpush.bf16.msra.mxu1 %v3966_v35  ;;  %v4510_v29 = vor.u32 %v5509_v27, %v4509_v26  ;;  %v4781_v32 = vld [vmem:[#allocation5 + $0x760] sm:$0xf]  ;;  %v4654_v33 = vor.u32 %v5545_v31, %v4653_v30  ;;  %v5577_v34 = vld [vmem:[#allocation5 + $0x76c] sm:$0xf0]  ;;  %v5431_v30 = vld [vmem:[#allocation5 + $0x2e4] sm:$0xf] }
  0x82   :  { %v4782_v35 = vor.u32 %v5577_v34, %v4781_v32  ;;  %v5473_v37 = vld [vmem:[#allocation5 + $0x42c] sm:$0xf0]  ;;  %v4493_v39 = vld [vmem:[#allocation5 + $0x520] sm:$0xf]  ;;  %v4207_v31 = vld [vmem:[#allocation5 + $0x2f0] sm:$0xf0] }
  0x83   :  { %2262 = vmatpush.bf16.msra.mxu2 %v4094_v45  ;;  %2275 = vmatpush.bf16.msra.mxu3 %v4222_v46  ;;  %v4637_v50 = vld [vmem:[#allocation5 + $0x640] sm:$0xf]  ;;  %v5541_v42 = vld [vmem:[#allocation5 + $0x64c] sm:$0xf0]  ;;  %v5463_v32 = vld [vmem:[#allocation5 + $0x3e4] sm:$0xf] }
  0x84   :  { %v4765_v43 = vld [vmem:[#allocation5 + $0x740] sm:$0xf]  ;;  %v4638_v44 = vor.u32 %v5541_v42, %v4637_v50  ;;  %v5573_v45 = vld [vmem:[#allocation5 + $0x74c] sm:$0xf0]  ;;  %v4210_v42 = vor.u32 %v5431_v30, %v4207_v31  ;;  %v5343_v30 = vld [vmem:[#allocation5 + $0x24] sm:$0xf] }
  0x85   :  { %2281 = vmatpush.bf16.msrb.mxu0 %v4462_v36  ;;  %2294 = vmatpush.bf16.msrb.mxu1 %v4590_v40  ;;  %v4365_v36 = vld [vmem:[#allocation5 + $0x420] sm:$0xf]  ;;  %v5505_v40 = vld [vmem:[#allocation5 + $0x52c] sm:$0xf0]  ;;  %v4766_v46 = vor.u32 %v5573_v45, %v4765_v43  ;;  %v3855_v31 = vld [vmem:[#allocation5 + $0x30] sm:$0xf0] }
  0x86   :  { %v4366_v38 = vor.u32 %v5473_v37, %v4365_v36  ;;  %v4494_v41 = vor.u32 %v5505_v40, %v4493_v39  ;;  %v5501_v52 = vld [vmem:[#allocation5 + $0x50c] sm:$0xf0]  ;;  %v4749_v57 = vld [vmem:[#allocation5 + $0x720] sm:$0xf]  ;;  %v4335_v36 = vld [vmem:[#allocation5 + $0x3f0] sm:$0xf0] }
  0x87   :  { %2307 = vmatpush.bf16.msrb.mxu2 %v4718_v47  ;;  %2320 = vmatpush.bf16.msrb.mxu3 %v4846_v49  ;;  %v4349_v47 = vld [vmem:[#allocation5 + $0x400] sm:$0xf]  ;;  %v5537_v55 = vld [vmem:[#allocation5 + $0x62c] sm:$0xf0]  ;;  %v5359_v37 = vld [vmem:[#allocation5 + $0xa4] sm:$0xf] }
  0x88   :  { %v4477_v49 = vld [vmem:[#allocation5 + $0x500] sm:$0xf]  ;;  %v5569_v58 = vld [vmem:[#allocation5 + $0x72c] sm:$0xf0]  ;;  %v5391_v40 = vld [vmem:[#allocation5 + $0x1a4] sm:$0xf] }
  0x89   :  { %2282 = vmatpush.bf16.msrb.mxu0 %v4446_v48  ;;  %2295 = vmatpush.bf16.msrb.mxu1 %v4574_v54  ;;  %v5469_v48 = vld [vmem:[#allocation5 + $0x40c] sm:$0xf0]  ;;  %v4478_v53 = vor.u32 %v5501_v52, %v4477_v49  ;;  %v4621_v54 = vld [vmem:[#allocation5 + $0x620] sm:$0xf]  ;;  %v4750_v59 = vor.u32 %v5569_v58, %v4749_v57  ;;  %v4319_v52 = vld [vmem:[#allocation5 + $0x3d0] sm:$0xf0] }
  0x8a   :  { %v4350_v51 = vor.u32 %v5469_v48, %v4349_v47  ;;  %v4622_v56 = vor.u32 %v5537_v55, %v4621_v54  ;;  %v4733_v63 = vld [vmem:[#allocation5 + $0x700] sm:$0xf]  ;;  %v5565_v0 = vld [vmem:[#allocation5 + $0x70c] sm:$0xf0]  ;;  %v4191_v47 = vld [vmem:[#allocation5 + $0x2d0] sm:$0xf0] }
  0x8b   :  { %2308 = vmatpush.bf16.msrb.mxu2 %v4702_v60  ;;  %2321 = vmatpush.bf16.msrb.mxu3 %v4830_v62  ;;  %v4605_v60 = vld [vmem:[#allocation5 + $0x600] sm:$0xf]  ;;  %v4734_v1 = vor.u32 %v5565_v0, %v4733_v63  ;;  %v5459_v48 = vld [vmem:[#allocation5 + $0x3c4] sm:$0xf]  ;;  %v3903_v54 = vld [vmem:[#allocation5 + $0x90] sm:$0xf0] }
  0x8c   :  { %v5387_v55 = vld [vmem:[#allocation5 + $0x184] sm:$0xf]  ;;  %v4175_v63 = vld [vmem:[#allocation5 + $0x2b0] sm:$0xf0] }
  0x8d   :  { %2283 = vmatpush.bf16.msrb.mxu0 %v4430_v61  ;;  %2296 = vmatpush.bf16.msrb.mxu1 %v4558_v2  ;;  %v5533_v61 = vld [vmem:[#allocation5 + $0x60c] sm:$0xf0]  ;;  %v6066_v2 = vld [vmem:[%s6191_s2] sm:$0xff] }
  0x8e   :  { %v4606_v62 = vor.u32 %v5533_v61, %v4605_v60  ;;  %v227_v3 = vperm.slane %v6066_v2, 0  ;;  %v228_v4 = vperm.slane %v6066_v2, 1  ;;  %v229_v15 = vperm.slane %v6066_v2, 2  ;;  %v5455_v0 = vld [vmem:[#allocation5 + $0x3a4] sm:$0xf] }
  0x8f   :  { %2309 = vmatpush.bf16.msrb.mxu2 %v4686_v8  ;;  %2322 = vmatpush.bf16.msrb.mxu3 %v4814_v10  ;;  %v5367_v8 = vld [vmem:[#allocation5 + $0xe4] sm:$0xf]  ;;  %v230_v18 = vperm.slane %v6066_v2, 3  ;;  %v4322_v60 = vor.u32 %v5459_v48, %v4319_v52  ;;  %v3967_v52 = vld [vmem:[#allocation5 + $0x110] sm:$0xf0] }
  0x91   :  { %2284 = vmatpush.bf16.msrb.mxu0 %v4414_v9  ;;  %2297 = vmatpush.bf16.msrb.mxu1 %v4542_v14  ;;  %v3951_v9 = vld [vmem:[#allocation5 + $0xf0] sm:$0xf0] }
  0x92   :  { %v3954_v16 = vor.u32 %v5367_v8, %v3951_v9 }
  0x93   :  { %2310 = vmatpush.bf16.msrb.mxu2 %v4670_v20  ;;  %2323 = vmatpush.bf16.msrb.mxu3 %v4798_v22  ;;  %v5363_v20 = vld [vmem:[#allocation5 + $0xc4] sm:$0xf] }
  0x95   :  { %2285 = vmatpush.bf16.msrb.mxu0 %v4398_v21  ;;  %2298 = vmatpush.bf16.msrb.mxu1 %v4526_v23  ;;  %v3935_v21 = vld [vmem:[#allocation5 + $0xd0] sm:$0xf0]  ;;  %v5395_v23 = vld [vmem:[#allocation5 + $0x1c4] sm:$0xf] }
  0x97   :  { %2311 = vmatpush.bf16.msrb.mxu2 %v4654_v33  ;;  %2324 = vmatpush.bf16.msrb.mxu3 %v4782_v35  ;;  %v4066_v35 = vor.u32 %v5395_v23, %v4063_v24 }
  0x99   :  { %2286 = vmatpush.bf16.msrb.mxu0 %v4382_v28  ;;  %2299 = vmatpush.bf16.msrb.mxu1 %v4510_v29  ;;  %v3938_v29 = vor.u32 %v5363_v20, %v3935_v21  ;;  %v3999_v20 = vld [vmem:[#allocation5 + $0x150] sm:$0xf0]  ;;  %v4162_v21 = vor.u32 %v5419_v11, %v4159_v12  ;;  %v5491_v12 = vld [vmem:[#allocation5 + $0x4c4] sm:$0xf] }
  0x9b   :  { %2312 = vmatpush.bf16.msrb.mxu2 %v4638_v44  ;;  %2325 = vmatpush.bf16.msrb.mxu3 %v4766_v46  ;;  %v4338_v44 = vor.u32 %v5463_v32, %v4335_v36  ;;  %v5427_v46 = vld [vmem:[#allocation5 + $0x2c4] sm:$0xf]  ;;  %v231_v32 = vperm.slane %v6066_v2, 4 }
  0x9c   :  { %v4194_v58 = vor.u32 %v5427_v46, %v4191_v47  ;;  %v3839_v46 = vld [vmem:[#allocation5 + $0x10] sm:$0xf0] }
  0x9d   :  { %2287 = vmatpush.bf16.msrb.mxu0 %v4366_v38  ;;  %2300 = vmatpush.bf16.msrb.mxu1 %v4494_v41  ;;  %v3919_v38 = vld [vmem:[#allocation5 + $0xb0] sm:$0xf0] }
  0x9e   :  { %v4047_v41 = vld [vmem:[#allocation5 + $0x1b0] sm:$0xf0]  ;;  %v3922_v45 = vor.u32 %v5359_v37, %v3919_v38  ;;  %v3858_v38 = vor.u32 %v5343_v30, %v3855_v31  ;;  %v5591_v31 = vld [vmem:[#allocation5 + $0x7e4] sm:$0xf] }
  0x9f   :  { %2313 = vmatpush.bf16.msrb.mxu2 %v4622_v56  ;;  %2326 = vmatpush.bf16.msrb.mxu3 %v4750_v59  ;;  %v4031_v56 = vld [vmem:[#allocation5 + $0x190] sm:$0xf0] }
  0xa0   :  { %v4719_v30 = vld [vmem:[#allocation5 + $0x6f0] sm:$0xf0] }
  0xa1   :  { %2288 = vmatpush.bf16.msrb.mxu0 %v4350_v51  ;;  %2301 = vmatpush.bf16.msrb.mxu1 %v4478_v53  ;;  %v4050_v51 = vor.u32 %v5391_v40, %v4047_v41  ;;  %v5355_v53 = vld [vmem:[#allocation5 + $0x84] sm:$0xf]  ;;  %v4127_v40 = vld [vmem:[#allocation5 + $0x250] sm:$0xf0] }
  0xa2   :  { %v3906_v61 = vor.u32 %v5355_v53, %v3903_v54  ;;  %v5443_v41 = vld [vmem:[#allocation5 + $0x344] sm:$0xf] }
  0xa3   :  { %2314 = vmatpush.bf16.msrb.mxu2 %v4606_v62  ;;  %2327 = vmatpush.bf16.msrb.mxu3 %v4734_v1  ;;  %v5423_v62 = vld [vmem:[#allocation5 + $0x2a4] sm:$0xf]  ;;  %v4034_v1 = vor.u32 %v5387_v55, %v4031_v56  ;;  %v4463_v56 = vld [vmem:[#allocation5 + $0x4f0] sm:$0xf0] }
  0xa4   :  { %v4178_v8 = vor.u32 %v5423_v62, %v4175_v63  ;;  %v5495_v53 = vld [vmem:[#allocation5 + $0x4e4] sm:$0xf]  ;;  %v4111_v63 = vld [vmem:[#allocation5 + $0x230] sm:$0xf0] }
  0xa5   :  { %v5407_v62 = vld [vmem:[#allocation5 + $0x224] sm:$0xf] }
  0xa6   :  { %v4114_v11 = vor.u32 %v5407_v62, %v4111_v63  ;;  %v5551_v63 = vld [vmem:[#allocation5 + $0x6a4] sm:$0xf] }
  0xc1   :  { %v572_v5 = vpop.f32.mrf.mxu0  ;;  %v585_v7 = vpop.f32.mrf.mxu1 }
  0xc2   :  { %v573_v6 = vadd.f32 %v572_v5, %v227_v3  ;;  %v586_v10 = vadd.f32 %v585_v7, %v228_v4  ;;  %v4303_v3 = vld [vmem:[#allocation5 + $0x3b0] sm:$0xf0]  ;;  %v5351_v4 = vld [vmem:[#allocation5 + $0x64] sm:$0xf] }
  0xc3   :  { %v3887_v5 = vld [vmem:[#allocation5 + $0x70] sm:$0xf0]  ;;  %v4306_v9 = vor.u32 %v5455_v0, %v4303_v3 }
  0xc4   :  { %v667_v13 = vmax.f32 %v573_v6, 0.0  ;;  %v668_v14 = vmax.f32 %v586_v10, 0.0  ;;  %v5383_v6 = vld [vmem:[#allocation5 + $0x164] sm:$0xf]  ;;  %v4015_v7 = vld [vmem:[#allocation5 + $0x170] sm:$0xf0]  ;;  %v3890_v10 = vor.u32 %v5351_v4, %v3887_v5 }
  0xc5   :  { %v5439_v4 = vld [vmem:[#allocation5 + $0x324] sm:$0xf]  ;;  %v4239_v5 = vld [vmem:[#allocation5 + $0x330] sm:$0xf0] }
  0xc6   :  { %v6071_v17 = vpack.c.bf16 %v667_v13, %v667_v13  ;;  %v6074_v22 = vpack.c.bf16 %v668_v14, %v668_v14  ;;  %v5451_v13 = vld [vmem:[#allocation5 + $0x384] sm:$0xf]  ;;  %v4018_v14 = vor.u32 %v5383_v6, %v4015_v7  ;;  %v234_v7 = vperm.slane %v6066_v2, 7 }
  0xc8   :  { %2237 = vmatmul.bf16.vlgmr.msra.gmra.mxu0 %v6071_v17  ;;  %2250 = vmatmul.bf16.vlgmr.msra.gmra.mxu1 %v6074_v22 }
  0xc9   :  { %v611_v27 = vpop.f32.mrf.mxu3  ;;  %2333 = vmatpush.bf16.msra.mxu0 %v3954_v16  ;;  %v574_v28 = vpop.f32.mrf.mxu0  ;;  %2346 = vmatpush.bf16.msra.mxu1 %v4082_v19  ;;  %v5347_v16 = vld [vmem:[#allocation5 + $0x44] sm:$0xf] }
  0xca   :  { %v598_v25 = vpop.f32.mrf.mxu2  ;;  %v612_v33 = vadd.f32 %v611_v27, %v230_v18  ;;  %v587_v34 = vpop.f32.mrf.mxu1  ;;  %v3871_v18 = vld [vmem:[#allocation5 + $0x50] sm:$0xf0]  ;;  %v5379_v19 = vld [vmem:[#allocation5 + $0x144] sm:$0xf] }
  0xcb   :  { %v599_v26 = vadd.f32 %v598_v25, %v229_v15  ;;  %v4287_v15 = vld [vmem:[#allocation5 + $0x390] sm:$0xf0]  ;;  %v3874_v24 = vor.u32 %v5347_v16, %v3871_v18  ;;  %v5415_v25 = vld [vmem:[#allocation5 + $0x264] sm:$0xf]  ;;  %v4002_v28 = vor.u32 %v5379_v19, %v3999_v20  ;;  %v4242_v16 = vor.u32 %v5439_v4, %v4239_v5 }
  0xcc   :  { %v670_v50 = vmax.f32 %v612_v33, 0.0  ;;  %v4290_v23 = vor.u32 %v5451_v13, %v4287_v15  ;;  %v5447_v27 = vld [vmem:[#allocation5 + $0x364] sm:$0xf]  ;;  %v3983_v34 = vld [vmem:[#allocation5 + $0x130] sm:$0xf0] }
  0xcd   :  { %v669_v39 = vmax.f32 %v599_v26, 0.0  ;;  %2334 = vmatpush.bf16.msra.mxu0 %v3938_v29  ;;  %2347 = vmatpush.bf16.msra.mxu1 %v4066_v35  ;;  %v4143_v26 = vld [vmem:[#allocation5 + $0x270] sm:$0xf0]  ;;  %v5375_v33 = vld [vmem:[#allocation5 + $0x124] sm:$0xf]  ;;  %v232_v35 = vperm.slane %v6066_v2, 5 }
  0xce   :  { %v6080_v49 = vpack.c.bf16 %v670_v50, %v670_v50  ;;  %v4271_v29 = vld [vmem:[#allocation5 + $0x370] sm:$0xf0]  ;;  %v4146_v36 = vor.u32 %v5415_v25, %v4143_v26  ;;  %v5403_v19 = vld [vmem:[#allocation5 + $0x204] sm:$0xf] }
  0xcf   :  { %v6078_v43 = vpack.c.bf16 %v669_v39, %v669_v39  ;;  %v4274_v37 = vor.u32 %v5447_v27, %v4271_v29  ;;  %v5411_v39 = vld [vmem:[#allocation5 + $0x244] sm:$0xf]  ;;  %v4447_v13 = vld [vmem:[#allocation5 + $0x4d0] sm:$0xf0] }
  0xd0   :  { %2276 = vmatmul.bf16.vlgmr.msra.gmra.mxu3 %v6080_v49  ;;  %v4130_v55 = vor.u32 %v5411_v39, %v4127_v40  ;;  %v4575_v18 = vld [vmem:[#allocation5 + $0x5d0] sm:$0xf0]  ;;  %v5559_v26 = vld [vmem:[#allocation5 + $0x6e4] sm:$0xf]  ;;  %v4450_v29 = vor.u32 %v5491_v12, %v4447_v13 }
  0xd1   :  { %2263 = vmatmul.bf16.vlgmr.msra.gmra.mxu2 %v6078_v43  ;;  %2372 = vmatpush.bf16.msra.mxu3 %v4338_v44  ;;  %v613_v59 = vpop.f32.mrf.mxu3  ;;  %v4255_v44 = vld [vmem:[#allocation5 + $0x350] sm:$0xf0]  ;;  %v5519_v40 = vld [vmem:[#allocation5 + $0x5a4] sm:$0xf] }
  0xd2   :  { %2359 = vmatpush.bf16.msra.mxu2 %v4210_v42  ;;  %v600_v57 = vpop.f32.mrf.mxu2  ;;  %2335 = vmatpush.bf16.msra.mxu0 %v3922_v45  ;;  %v3986_v42 = vor.u32 %v5375_v33, %v3983_v34  ;;  %v5339_v45 = vld [vmem:[#allocation5 + $0x4] sm:$0xf]  ;;  %v4095_v20 = vld [vmem:[#allocation5 + $0x210] sm:$0xf0] }
  0xd3   :  { %2348 = vmatpush.bf16.msra.mxu1 %v4050_v51  ;;  %v5371_v51 = vld [vmem:[#allocation5 + $0x104] sm:$0xf]  ;;  %v4223_v25 = vld [vmem:[#allocation5 + $0x310] sm:$0xf0] }
  0xd4   :  { %v5527_v57 = vld [vmem:[#allocation5 + $0x5e4] sm:$0xf]  ;;  %v3970_v3 = vor.u32 %v5371_v51, %v3967_v52  ;;  %v4815_v4 = vld [vmem:[#allocation5 + $0x7b0] sm:$0xf0] }
  0xd5   :  { %2373 = vmatpush.bf16.msra.mxu3 %v4322_v60  ;;  %v4258_v60 = vor.u32 %v5443_v41, %v4255_v44  ;;  %v4559_v41 = vld [vmem:[#allocation5 + $0x5b0] sm:$0xf0]  ;;  %v5587_v51 = vld [vmem:[#allocation5 + $0x7c4] sm:$0xf] }
  0xd6   :  { %2360 = vmatpush.bf16.msra.mxu2 %v4194_v58  ;;  %2336 = vmatpush.bf16.msra.mxu0 %v3906_v61  ;;  %v4591_v58 = vld [vmem:[#allocation5 + $0x5f0] sm:$0xf0]  ;;  %v3842_v61 = vor.u32 %v5339_v45, %v3839_v46  ;;  %v4562_v52 = vor.u32 %v5519_v40, %v4559_v41  ;;  %v5479_v5 = vld [vmem:[#allocation5 + $0x464] sm:$0xf] }
  0xd7   :  { %2349 = vmatpush.bf16.msra.mxu1 %v4034_v1  ;;  %v233_v1 = vperm.slane %v6066_v2, 6  ;;  %v5547_v13 = vld [vmem:[#allocation5 + $0x684] sm:$0xf] }
  0xd8   :  { %v5571_v40 = vld [vmem:[#allocation5 + $0x744] sm:$0xf] }
  0xd9   :  { %2374 = vmatpush.bf16.msra.mxu3 %v4306_v9 }
  0xda   :  { %2361 = vmatpush.bf16.msra.mxu2 %v4178_v8  ;;  %2337 = vmatpush.bf16.msra.mxu0 %v3890_v10  ;;  %v4466_v8 = vor.u32 %v5495_v53, %v4463_v56  ;;  %v4594_v10 = vor.u32 %v5527_v57, %v4591_v58  ;;  %v4831_v53 = vld [vmem:[#allocation5 + $0x7d0] sm:$0xf0]  ;;  %v5515_v57 = vld [vmem:[#allocation5 + $0x584] sm:$0xf] }
  0xdb   :  { %2350 = vmatpush.bf16.msra.mxu1 %v4018_v14  ;;  %v5523_v14 = vld [vmem:[#allocation5 + $0x5c4] sm:$0xf]  ;;  %v4543_v58 = vld [vmem:[#allocation5 + $0x590] sm:$0xf0] }
  0xdc   :  { %v4578_v34 = vor.u32 %v5523_v14, %v4575_v18  ;;  %v4671_v14 = vld [vmem:[#allocation5 + $0x690] sm:$0xf0]  ;;  %v5579_v18 = vld [vmem:[#allocation5 + $0x784] sm:$0xf] }
  0xdd   :  { %2375 = vmatpush.bf16.msra.mxu3 %v4290_v23 }
  0xde   :  { %2362 = vmatpush.bf16.msra.mxu2 %v4162_v21  ;;  %2338 = vmatpush.bf16.msra.mxu0 %v3874_v24  ;;  %v5435_v24 = vld [vmem:[#allocation5 + $0x304] sm:$0xf] }
  0xdf   :  { %2351 = vmatpush.bf16.msra.mxu1 %v4002_v28  ;;  %v4226_v39 = vor.u32 %v5435_v24, %v4223_v25  ;;  %v4674_v24 = vor.u32 %v5547_v13, %v4671_v14  ;;  %v5563_v13 = vld [vmem:[#allocation5 + $0x704] sm:$0xf]  ;;  %v4735_v14 = vld [vmem:[#allocation5 + $0x710] sm:$0xf0] }
  0xe1   :  { %v624_v50 = vpop.f32.mrf.mxu0  ;;  %v637_v48 = vpop.f32.mrf.mxu1  ;;  %2376 = vmatpush.bf16.msra.mxu3 %v4274_v37  ;;  %v4431_v37 = vld [vmem:[#allocation5 + $0x4b0] sm:$0xf0] }
  0xe2   :  { %v625_v47 = vadd.f32 %v624_v50, %v231_v32  ;;  %v638_v54 = vadd.f32 %v637_v48, %v232_v35  ;;  %2363 = vmatpush.bf16.msra.mxu2 %v4146_v36  ;;  %2339 = vmatpush.bf16.msra.mxu0 %v3858_v38  ;;  %v4847_v32 = vld [vmem:[#allocation5 + $0x7f0] sm:$0xf0]  ;;  %v4098_v35 = vor.u32 %v5403_v19, %v4095_v20  ;;  %v5487_v36 = vld [vmem:[#allocation5 + $0x4a4] sm:$0xf] }
  0xe3   :  { %2352 = vmatpush.bf16.msra.mxu1 %v3986_v42  ;;  %v4722_v42 = vor.u32 %v5559_v26, %v4719_v30  ;;  %v4850_v45 = vor.u32 %v5591_v31, %v4847_v32  ;;  %v4434_v46 = vor.u32 %v5487_v36, %v4431_v37  ;;  %v4703_v48 = vld [vmem:[#allocation5 + $0x6d0] sm:$0xf0]  ;;  %v5475_v20 = vld [vmem:[#allocation5 + $0x444] sm:$0xf] }
  0xe4   :  { %v671_v59 = vmax.f32 %v625_v47, 0.0  ;;  %v672_v0 = vmax.f32 %v638_v54, 0.0  ;;  %v5555_v47 = vld [vmem:[#allocation5 + $0x6c4] sm:$0xf]  ;;  %v4799_v19 = vld [vmem:[#allocation5 + $0x790] sm:$0xf0] }
  0xe5   :  { %2377 = vmatpush.bf16.msra.mxu3 %v4258_v60  ;;  %v5483_v54 = vld [vmem:[#allocation5 + $0x484] sm:$0xf]  ;;  %v4706_v60 = vor.u32 %v5555_v47, %v4703_v48  ;;  %v4802_v25 = vor.u32 %v5579_v18, %v4799_v19  ;;  %v4783_v31 = vld [vmem:[#allocation5 + $0x770] sm:$0xf0] }
  0xe6   :  { %v6087_v6 = vpack.c.bf16 %v671_v59, %v671_v59  ;;  %v6090_v9 = vpack.c.bf16 %v672_v0, %v672_v0  ;;  %2364 = vmatpush.bf16.msra.mxu2 %v4130_v55  ;;  %2340 = vmatpush.bf16.msra.mxu0 %v3842_v61  ;;  %v4415_v55 = vld [vmem:[#allocation5 + $0x490] sm:$0xf0]  ;;  %v4834_v61 = vor.u32 %v5587_v51, %v4831_v53  ;;  %v5543_v26 = vld [vmem:[#allocation5 + $0x664] sm:$0xf] }
  0xe7   :  { %2353 = vmatpush.bf16.msra.mxu1 %v3970_v3  ;;  %v4418_v62 = vor.u32 %v5483_v54, %v4415_v55  ;;  %v4687_v0 = vld [vmem:[#allocation5 + $0x6b0] sm:$0xf0]  ;;  %v5583_v3 = vld [vmem:[#allocation5 + $0x7a4] sm:$0xf]  ;;  %v5370_v54 = vld [vmem:[#allocation5 + $0xf4] sm:$0xf0] }
  0xe8   :  { %2289 = vmatmul.bf16.vlgmr.msrb.gmra.mxu0 %v6087_v6  ;;  %2302 = vmatmul.bf16.vlgmr.msrb.gmra.mxu1 %v6090_v9  ;;  %v4818_v12 = vor.u32 %v5583_v3, %v4815_v4  ;;  %v5575_v30 = vld [vmem:[#allocation5 + $0x764] sm:$0xf]  ;;  %v4351_v47 = vld [vmem:[#allocation5 + $0x410] sm:$0xf0]  ;;  %v4085_v55 = vld [vmem:[#allocation5 + $0x1e8] sm:$0xf] }
  0xe9   :  { %v650_v15 = vpop.f32.mrf.mxu2  ;;  %v663_v23 = vpop.f32.mrf.mxu3  ;;  %2378 = vmatpush.bf16.msra.mxu3 %v4242_v16  ;;  %v5471_v32 = vld [vmem:[#allocation5 + $0x424] sm:$0xf]  ;;  %v4786_v37 = vor.u32 %v5575_v30, %v4783_v31  ;;  %v4479_v51 = vld [vmem:[#allocation5 + $0x510] sm:$0xf0]  ;;  %v3941_v3 = vld [vmem:[#allocation5 + $0xc8] sm:$0xf] }
  0xea   :  { %v651_v21 = vadd.f32 %v650_v15, %v233_v1  ;;  %v626_v2 = vpop.f32.mrf.mxu0  ;;  %v664_v27 = vadd.f32 %v663_v23, %v234_v7  ;;  %2385 = vmatpush.bf16.msrb.mxu0 %v4466_v8  ;;  %v639_v28 = vpop.f32.mrf.mxu1  ;;  %2365 = vmatpush.bf16.msra.mxu2 %v4114_v11  ;;  %v4546_v1 = vor.u32 %v5515_v57, %v4543_v58  ;;  %v4399_v7 = vld [vmem:[#allocation5 + $0x470] sm:$0xf0]  ;;  %v5511_v8 = vld [vmem:[#allocation5 + $0x564] sm:$0xf]  ;;  %v4197_v30 = vld [vmem:[#allocation5 + $0x2c8] sm:$0xf] }
  0xeb   :  { %2398 = vmatpush.bf16.msrb.mxu1 %v4594_v10  ;;  %v4527_v10 = vld [vmem:[#allocation5 + $0x570] sm:$0xf0]  ;;  %v4690_v11 = vor.u32 %v5551_v63, %v4687_v0  ;;  %v4402_v15 = vor.u32 %v5479_v5, %v4399_v7  ;;  %v5507_v23 = vld [vmem:[#allocation5 + $0x544] sm:$0xf]  ;;  %v5366_v5 = vld [vmem:[#allocation5 + $0xd4] sm:$0xf0] }
  0xec   :  { %v673_v33 = vmax.f32 %v651_v21, 0.0  ;;  %v674_v38 = vmax.f32 %v664_v27, 0.0  ;;  %v4530_v16 = vor.u32 %v5511_v8, %v4527_v10  ;;  %v4383_v21 = vld [vmem:[#allocation5 + $0x450] sm:$0xf0]  ;;  %v5499_v48 = vld [vmem:[#allocation5 + $0x504] sm:$0xf]  ;;  %v3942_v18 = vor.u32 %v5366_v5, %v3941_v3 }
  0xed   :  { %2379 = vmatpush.bf16.msra.mxu3 %v4226_v39  ;;  %v4511_v2 = vld [vmem:[#allocation5 + $0x550] sm:$0xf0]  ;;  %v4386_v28 = vor.u32 %v5475_v20, %v4383_v21  ;;  %v5535_v58 = vld [vmem:[#allocation5 + $0x624] sm:$0xf]  ;;  %v4069_v7 = vld [vmem:[#allocation5 + $0x1c8] sm:$0xf] }
  0xee   :  { %v6094_v50 = vpack.c.bf16 %v673_v33, %v673_v33  ;;  %v6096_v44 = vpack.c.bf16 %v674_v38, %v674_v38  ;;  %2386 = vmatpush.bf16.msrb.mxu0 %v4450_v29  ;;  %2366 = vmatpush.bf16.msra.mxu2 %v4098_v35  ;;  %v4655_v27 = vld [vmem:[#allocation5 + $0x670] sm:$0xf0]  ;;  %v4514_v29 = vor.u32 %v5507_v23, %v4511_v2  ;;  %v5539_v38 = vld [vmem:[#allocation5 + $0x644] sm:$0xf]  ;;  %v5398_v8 = vld [vmem:[#allocation5 + $0x1d4] sm:$0xf0] }
  0xef   :  { %2399 = vmatpush.bf16.msrb.mxu1 %v4578_v34  ;;  %v4367_v33 = vld [vmem:[#allocation5 + $0x430] sm:$0xf0]  ;;  %v5503_v34 = vld [vmem:[#allocation5 + $0x524] sm:$0xf]  ;;  %v4658_v36 = vor.u32 %v5543_v26, %v4655_v27  ;;  %v4070_v19 = vor.u32 %v5398_v8, %v4069_v7  ;;  %v4341_v20 = vld [vmem:[#allocation5 + $0x3e8] sm:$0xf]  ;;  %v4738_v27 = vor.u32 %v5563_v13, %v4735_v14 }
  0xf0   :  { %2315 = vmatmul.bf16.vlgmr.msrb.gmra.mxu2 %v6094_v50  ;;  %2328 = vmatmul.bf16.vlgmr.msrb.gmra.mxu3 %v6096_v44  ;;  %v4495_v35 = vld [vmem:[#allocation5 + $0x530] sm:$0xf0]  ;;  %v4370_v41 = vor.u32 %v5471_v32, %v4367_v33  ;;  %v5466_v21 = vld [vmem:[#allocation5 + $0x3f4] sm:$0xf0]  ;;  %v3925_v23 = vld [vmem:[#allocation5 + $0xa8] sm:$0xf] }
  0xf1   :  { %v652_v56 = vpop.f32.mrf.mxu2  ;;  %v665_v59 = vpop.f32.mrf.mxu3  ;;  %2424 = vmatpush.bf16.msrb.mxu3 %v4850_v45  ;;  %v4639_v39 = vld [vmem:[#allocation5 + $0x650] sm:$0xf0]  ;;  %v5394_v26 = vld [vmem:[#allocation5 + $0x1b4] sm:$0xf0]  ;;  %v4005_v3 = vld [vmem:[#allocation5 + $0x148] sm:$0xf] }
  0xf2   :  { %2411 = vmatpush.bf16.msrb.mxu2 %v4722_v42  ;;  %2387 = vmatpush.bf16.msrb.mxu0 %v4434_v46  ;;  %v4498_v42 = vor.u32 %v5503_v34, %v4495_v35  ;;  %v4767_v45 = vld [vmem:[#allocation5 + $0x750] sm:$0xf0]  ;;  %v5467_v46 = vld [vmem:[#allocation5 + $0x404] sm:$0xf]  ;;  %v4642_v53 = vor.u32 %v5539_v38, %v4639_v39  ;;  %v5402_v56 = vld [vmem:[#allocation5 + $0x1f4] sm:$0xf0] }
  0xf3   :  { %2400 = vmatpush.bf16.msrb.mxu1 %v4562_v52  ;;  %v3957_v52 = vld [vmem:[#allocation5 + $0xe8] sm:$0xf]  ;;  %v4770_v57 = vor.u32 %v5571_v40, %v4767_v45  ;;  %v4623_v59 = vld [vmem:[#allocation5 + $0x630] sm:$0xf0]  ;;  %v5430_v31 = vld [vmem:[#allocation5 + $0x2d4] sm:$0xf0] }
  0xf4   :  { %v4751_v63 = vld [vmem:[#allocation5 + $0x730] sm:$0xf0]  ;;  %v3958_v0 = vor.u32 %v5370_v54, %v3957_v52  ;;  %v4626_v4 = vor.u32 %v5535_v58, %v4623_v59  ;;  %v4325_v34 = vld [vmem:[#allocation5 + $0x3c8] sm:$0xf]  ;;  %v5462_v35 = vld [vmem:[#allocation5 + $0x3d4] sm:$0xf0]  ;;  %v4198_v40 = vor.u32 %v5430_v31, %v4197_v30 }
  0xf5   :  { %2425 = vmatpush.bf16.msrb.mxu3 %v4834_v61  ;;  %v4482_v61 = vor.u32 %v5499_v48, %v4479_v51  ;;  %v4037_v38 = vld [vmem:[#allocation5 + $0x188] sm:$0xf]  ;;  %v5390_v39 = vld [vmem:[#allocation5 + $0x194] sm:$0xf0] }
  0xf6   :  { %2412 = vmatpush.bf16.msrb.mxu2 %v4706_v60  ;;  %2388 = vmatpush.bf16.msrb.mxu0 %v4418_v62  ;;  %v4354_v60 = vor.u32 %v5467_v46, %v4351_v47  ;;  %v5567_v62 = vld [vmem:[#allocation5 + $0x724] sm:$0xf]  ;;  %v5426_v45 = vld [vmem:[#allocation5 + $0x2b4] sm:$0xf0]  ;;  %v4038_v47 = vor.u32 %v5390_v39, %v4037_v38  ;;  %v4309_v48 = vld [vmem:[#allocation5 + $0x3a8] sm:$0xf] }
  0xf7   :  { %2401 = vmatpush.bf16.msrb.mxu1 %v4546_v1  ;;  %v4086_v1 = vor.u32 %v5402_v56, %v4085_v55  ;;  %v4754_v10 = vor.u32 %v5567_v62, %v4751_v63  ;;  %v5458_v51 = vld [vmem:[#allocation5 + $0x3b4] sm:$0xf0]  ;;  %v3893_v52 = vld [vmem:[#allocation5 + $0x68] sm:$0xf] }
  0xf8   :  { %2341 = vmatmul.bf16.vlgmr.msra.gmra.mxu0 %v6071_v17  ;;  %2354 = vmatmul.bf16.vlgmr.msra.gmra.mxu1 %v6074_v22  ;;  %v4021_v54 = vld [vmem:[#allocation5 + $0x168] sm:$0xf]  ;;  %v5386_v55 = vld [vmem:[#allocation5 + $0x174] sm:$0xf0] }
  0xf9   :  { %2426 = vmatpush.bf16.msrb.mxu3 %v4818_v12  ;;  %v4607_v12 = vld [vmem:[#allocation5 + $0x610] sm:$0xf0]  ;;  %v4165_v58 = vld [vmem:[#allocation5 + $0x288] sm:$0xf]  ;;  %v5422_v59 = vld [vmem:[#allocation5 + $0x294] sm:$0xf0] }
  0xfa   :  { %2413 = vmatpush.bf16.msrb.mxu2 %v4690_v11  ;;  %2389 = vmatpush.bf16.msrb.mxu0 %v4402_v15  ;;  %v5531_v11 = vld [vmem:[#allocation5 + $0x604] sm:$0xf]  ;;  %v4213_v15 = vld [vmem:[#allocation5 + $0x2e8] sm:$0xf]  ;;  %v5454_v63 = vld [vmem:[#allocation5 + $0x394] sm:$0xf0]  ;;  %v4166_v5 = vor.u32 %v5422_v59, %v4165_v58 }
  0xfb   :  { %2402 = vmatpush.bf16.msrb.mxu1 %v4530_v16  ;;  %v5434_v16 = vld [vmem:[#allocation5 + $0x2f4] sm:$0xf0]  ;;  %v4610_v2 = vor.u32 %v5531_v11, %v4607_v12  ;;  %v4293_v62 = vld [vmem:[#allocation5 + $0x388] sm:$0xf] }
  0xfc   :  { %v4294_v7 = vor.u32 %v5454_v63, %v4293_v62  ;;  %v4149_v8 = vld [vmem:[#allocation5 + $0x268] sm:$0xf]  ;;  %v5450_v14 = vld [vmem:[#allocation5 + $0x374] sm:$0xf0] }
  0xfd   :  { %2427 = vmatpush.bf16.msrb.mxu3 %v4802_v25  ;;  %v4053_v25 = vld [vmem:[#allocation5 + $0x1a8] sm:$0xf]  ;;  %v5374_v31 = vld [vmem:[#allocation5 + $0x114] sm:$0xf0] }
  0xfe   :  { %2414 = vmatpush.bf16.msrb.mxu2 %v4674_v24  ;;  %2390 = vmatpush.bf16.msrb.mxu0 %v4386_v28  ;;  %v5362_v24 = vld [vmem:[#allocation5 + $0xb4] sm:$0xf0]  ;;  %v4214_v28 = vor.u32 %v5434_v16, %v4213_v15  ;;  %v4054_v33 = vor.u32 %v5394_v26, %v4053_v25  ;;  %v4277_v13 = vld [vmem:[#allocation5 + $0x368] sm:$0xf] }
  0xff   :  { %2403 = vmatpush.bf16.msrb.mxu1 %v4514_v29  ;;  %v4342_v29 = vor.u32 %v5466_v21, %v4341_v20  ;;  %v3926_v32 = vor.u32 %v5362_v24, %v3925_v23  ;;  %v3861_v15 = vld [vmem:[#allocation5 + $0x28] sm:$0xf]  ;;  %v5346_v16 = vld [vmem:[#allocation5 + $0x34] sm:$0xf0]  ;;  %v4278_v21 = vor.u32 %v5450_v14, %v4277_v13 }
 0x100   :  { %2367 = vmatmul.bf16.vlgmr.msra.gmra.mxu2 %v6078_v43  ;;  %2380 = vmatmul.bf16.vlgmr.msra.gmra.mxu3 %v6080_v49  ;;  %v4133_v23 = vld [vmem:[#allocation5 + $0x248] sm:$0xf]  ;;  %v3862_v25 = vor.u32 %v5346_v16, %v3861_v15  ;;  %v5410_v39 = vld [vmem:[#allocation5 + $0x234] sm:$0xf0] }
 0x101   :  { %2428 = vmatpush.bf16.msrb.mxu3 %v4786_v37  ;;  %v5358_v37 = vld [vmem:[#allocation5 + $0x94] sm:$0xf0]  ;;  %v4261_v24 = vld [vmem:[#allocation5 + $0x348] sm:$0xf] }
 0x102   :  { %2415 = vmatpush.bf16.msrb.mxu2 %v4658_v36  ;;  %2391 = vmatpush.bf16.msrb.mxu0 %v4370_v41  ;;  %v3909_v36 = vld [vmem:[#allocation5 + $0x88] sm:$0xf]  ;;  %v4326_v41 = vor.u32 %v5462_v35, %v4325_v34  ;;  %v5498_v34 = vld [vmem:[#allocation5 + $0x4f4] sm:$0xf0] }
 0x103   :  { %2404 = vmatpush.bf16.msrb.mxu1 %v4498_v42  ;;  %v4181_v42 = vld [vmem:[#allocation5 + $0x2a8] sm:$0xf]  ;;  %v3910_v46 = vor.u32 %v5358_v37, %v3909_v36  ;;  %v5530_v36 = vld [vmem:[#allocation5 + $0x5f4] sm:$0xf0] }
 0x104   :  { %v4182_v56 = vor.u32 %v5426_v45, %v4181_v42  ;;  %v3973_v30 = vld [vmem:[#allocation5 + $0x108] sm:$0xf]  ;;  %v5442_v45 = vld [vmem:[#allocation5 + $0x334] sm:$0xf0] }
 0x105   :  { %2429 = vmatpush.bf16.msrb.mxu3 %v4770_v57  ;;  %v4310_v57 = vor.u32 %v5458_v51, %v4309_v48  ;;  %v4597_v35 = vld [vmem:[#allocation5 + $0x5e8] sm:$0xf]  ;;  %v5438_v59 = vld [vmem:[#allocation5 + $0x314] sm:$0xf0] }
 0x106   :  { %2416 = vmatpush.bf16.msrb.mxu2 %v4642_v53  ;;  %2392 = vmatpush.bf16.msrb.mxu0 %v4354_v60  ;;  %v5354_v53 = vld [vmem:[#allocation5 + $0x74] sm:$0xf0]  ;;  %v4117_v38 = vld [vmem:[#allocation5 + $0x228] sm:$0xf] }
 0x107   :  { %2405 = vmatpush.bf16.msrb.mxu1 %v4482_v61  ;;  %v3894_v60 = vor.u32 %v5354_v53, %v3893_v52  ;;  %v4022_v61 = vor.u32 %v5386_v55, %v4021_v54  ;;  %v4245_v42 = vld [vmem:[#allocation5 + $0x328] sm:$0xf]  ;;  %v4118_v51 = vor.u32 %v5410_v39, %v4117_v38  ;;  %v5494_v52 = vld [vmem:[#allocation5 + $0x4d4] sm:$0xf0] }
 0x108   :  { %v4453_v48 = vld [vmem:[#allocation5 + $0x4c8] sm:$0xf]  ;;  %v5526_v54 = vld [vmem:[#allocation5 + $0x5d4] sm:$0xf0]  ;;  %v4246_v55 = vor.u32 %v5442_v45, %v4245_v42 }
 0x109   :  { %2430 = vmatpush.bf16.msrb.mxu3 %v4754_v10  ;;  %2393 = vmatmul.bf16.vlgmr.msrb.gmra.mxu0 %v6087_v6  ;;  %v5418_v10 = vld [vmem:[#allocation5 + $0x274] sm:$0xf0]  ;;  %v4581_v53 = vld [vmem:[#allocation5 + $0x5c8] sm:$0xf]  ;;  %v4454_v62 = vor.u32 %v5494_v52, %v4453_v48 }
 0x10a   :  { %2437 = vmatpush.bf16.msra.mxu0 %v3958_v0  ;;  %2417 = vmatpush.bf16.msrb.mxu2 %v4626_v4  ;;  %v3877_v0 = vld [vmem:[#allocation5 + $0x48] sm:$0xf]  ;;  %v5382_v4 = vld [vmem:[#allocation5 + $0x154] sm:$0xf0]  ;;  %v4150_v20 = vor.u32 %v5418_v10, %v4149_v8  ;;  %v4582_v63 = vor.u32 %v5526_v54, %v4581_v53 }
 0x10b   :  { %2450 = vmatpush.bf16.msra.mxu1 %v4086_v1  ;;  %v5350_v1 = vld [vmem:[#allocation5 + $0x54] sm:$0xf0]  ;;  %v4006_v12 = vor.u32 %v5382_v4, %v4005_v3  ;;  %v4229_v58 = vld [vmem:[#allocation5 + $0x308] sm:$0xf] }
 0x10c   :  { %2406 = vmatmul.bf16.vlgmr.msrb.gmra.mxu1 %v6090_v9  ;;  %v3878_v11 = vor.u32 %v5350_v1, %v3877_v0  ;;  %v4853_v0 = vld [vmem:[#allocation5 + $0x7e8] sm:$0xf]  ;;  %v5594_v1 = vld [vmem:[#allocation5 + $0x7f4] sm:$0xf0] }
 0x10d   :  { %2431 = vmatpush.bf16.msrb.mxu3 %v4738_v27  ;;  %v5446_v27 = vld [vmem:[#allocation5 + $0x354] sm:$0xf0]  ;;  %v4437_v4 = vld [vmem:[#allocation5 + $0x4a8] sm:$0xf] }
 0x10e   :  { %2438 = vmatpush.bf16.msra.mxu0 %v3942_v18  ;;  %2418 = vmatpush.bf16.msrb.mxu2 %v4610_v2  ;;  %v3989_v18 = vld [vmem:[#allocation5 + $0x128] sm:$0xf]  ;;  %v5414_v2 = vld [vmem:[#allocation5 + $0x254] sm:$0xf0]  ;;  %v4262_v37 = vor.u32 %v5446_v27, %v4261_v24 }
 0x10f   :  { %2451 = vmatpush.bf16.msra.mxu1 %v4070_v19  ;;  %v5378_v19 = vld [vmem:[#allocation5 + $0x134] sm:$0xf0]  ;;  %v4565_v10 = vld [vmem:[#allocation5 + $0x5a8] sm:$0xf] }
 0x110   :  { %2432 = vmatmul.bf16.vlgmr.msrb.gmra.mxu3 %v6096_v44  ;;  %v3990_v26 = vor.u32 %v5378_v19, %v3989_v18  ;;  %v4709_v13 = vld [vmem:[#allocation5 + $0x6c8] sm:$0xf]  ;;  %v5558_v14 = vld [vmem:[#allocation5 + $0x6d4] sm:$0xf0] }
 0x111   :  { %2476 = vmatpush.bf16.msra.mxu3 %v4342_v29  ;;  %2419 = vmatmul.bf16.vlgmr.msrb.gmra.mxu2 %v6094_v50  ;;  %v5342_v29 = vld [vmem:[#allocation5 + $0x14] sm:$0xf0]  ;;  %v4837_v16 = vld [vmem:[#allocation5 + $0x7c8] sm:$0xf] }
 0x112   :  { %2463 = vmatpush.bf16.msra.mxu2 %v4214_v28  ;;  %2439 = vmatpush.bf16.msra.mxu0 %v3926_v32  ;;  %v3845_v28 = vld [vmem:[#allocation5 + $0x8] sm:$0xf]  ;;  %v5590_v18 = vld [vmem:[#allocation5 + $0x7d4] sm:$0xf0] }
 0x113   :  { %2452 = vmatpush.bf16.msra.mxu1 %v4054_v33  ;;  %v4469_v32 = vld [vmem:[#allocation5 + $0x4e8] sm:$0xf]  ;;  %v4134_v33 = vor.u32 %v5414_v2, %v4133_v23  ;;  %v4710_v23 = vor.u32 %v5558_v14, %v4709_v13  ;;  %v5518_v24 = vld [vmem:[#allocation5 + $0x594] sm:$0xf0] }
 0x114   :  { %v4549_v2 = vld [vmem:[#allocation5 + $0x588] sm:$0xf]  ;;  %v5554_v27 = vld [vmem:[#allocation5 + $0x6b4] sm:$0xf0] }
 0x115   :  { %2477 = vmatpush.bf16.msra.mxu3 %v4326_v41  ;;  %v3974_v41 = vor.u32 %v5374_v31, %v3973_v30  ;;  %v5586_v30 = vld [vmem:[#allocation5 + $0x7b4] sm:$0xf0]  ;;  %v4550_v31 = vor.u32 %v5518_v24, %v4549_v2  ;;  %v4677_v38 = vld [vmem:[#allocation5 + $0x688] sm:$0xf] }
 0x116   :  { %2464 = vmatpush.bf16.msra.mxu2 %v4198_v40  ;;  %2440 = vmatpush.bf16.msra.mxu0 %v3910_v46  ;;  %v3846_v40 = vor.u32 %v5342_v29, %v3845_v28  ;;  %v4470_v46 = vor.u32 %v5498_v34, %v4469_v32  ;;  %v4821_v29 = vld [vmem:[#allocation5 + $0x7a8] sm:$0xf]  ;;  %v5550_v39 = vld [vmem:[#allocation5 + $0x694] sm:$0xf0] }
 0x117   :  { %2453 = vmatpush.bf16.msra.mxu1 %v4038_v47  ;;  %v4598_v47 = vor.u32 %v5530_v36, %v4597_v35  ;;  %v4405_v32 = vld [vmem:[#allocation5 + $0x468] sm:$0xf]  ;;  %v5514_v36 = vld [vmem:[#allocation5 + $0x574] sm:$0xf0]  ;;  %v4678_v48 = vor.u32 %v5550_v39, %v4677_v38 }
 0x118   :  { %v4533_v35 = vld [vmem:[#allocation5 + $0x568] sm:$0xf]  ;;  %v5582_v42 = vld [vmem:[#allocation5 + $0x794] sm:$0xf0] }
 0x119   :  { %2478 = vmatpush.bf16.msra.mxu3 %v4310_v57  ;;  %v5406_v57 = vld [vmem:[#allocation5 + $0x214] sm:$0xf0]  ;;  %v4534_v45 = vor.u32 %v5514_v36, %v4533_v35  ;;  %v4661_v54 = vld [vmem:[#allocation5 + $0x668] sm:$0xf] }
 0x11a   :  { %2465 = vmatpush.bf16.msra.mxu2 %v4182_v56  ;;  %2441 = vmatpush.bf16.msra.mxu0 %v3894_v60  ;;  %v4101_v56 = vld [vmem:[#allocation5 + $0x208] sm:$0xf]  ;;  %v5510_v52 = vld [vmem:[#allocation5 + $0x554] sm:$0xf0] }
 0x11b   :  { %2454 = vmatpush.bf16.msra.mxu1 %v4022_v61  ;;  %v4725_v60 = vld [vmem:[#allocation5 + $0x6e8] sm:$0xf]  ;;  %v5562_v61 = vld [vmem:[#allocation5 + $0x6f4] sm:$0xf0]  ;;  %v4102_v3 = vor.u32 %v5406_v57, %v4101_v56 }
 0x11c   :  { %v4726_v8 = vor.u32 %v5562_v61, %v4725_v60  ;;  %v4789_v57 = vld [vmem:[#allocation5 + $0x768] sm:$0xf]  ;;  %v5474_v61 = vld [vmem:[#allocation5 + $0x434] sm:$0xf0] }
 0x11d   :  { %2479 = vmatpush.bf16.msra.mxu3 %v4294_v7  ;;  %v4230_v7 = vor.u32 %v5438_v59, %v4229_v58  ;;  %v5578_v58 = vld [vmem:[#allocation5 + $0x774] sm:$0xf0]  ;;  %v4373_v60 = vld [vmem:[#allocation5 + $0x428] sm:$0xf] }
 0x11e   :  { %2466 = vmatpush.bf16.msra.mxu2 %v4166_v5  ;;  %2442 = vmatpush.bf16.msra.mxu0 %v3878_v11  ;;  %v5490_v5 = vld [vmem:[#allocation5 + $0x4b4] sm:$0xf0]  ;;  %v4485_v13 = vld [vmem:[#allocation5 + $0x508] sm:$0xf] }
 0x11f   :  { %2455 = vmatpush.bf16.msra.mxu1 %v4006_v12  ;;  %v5522_v11 = vld [vmem:[#allocation5 + $0x5b4] sm:$0xf0]  ;;  %v4854_v12 = vor.u32 %v5594_v1, %v4853_v0  ;;  %v4438_v15 = vor.u32 %v5490_v5, %v4437_v4  ;;  %v4790_v1 = vor.u32 %v5578_v58, %v4789_v57  ;;  %v4374_v5 = vor.u32 %v5474_v61, %v4373_v60  ;;  %v4613_v36 = vld [vmem:[#allocation5 + $0x608] sm:$0xf]  ;;  %v5428_v58 = vld [vmem:[#allocation5 + $0x2cc] sm:$0xf] }
 0x120   :  { %v4566_v19 = vor.u32 %v5522_v11, %v4565_v10  ;;  %v5506_v0 = vld [vmem:[#allocation5 + $0x534] sm:$0xf0]  ;;  %v4357_v10 = vld [vmem:[#allocation5 + $0x408] sm:$0xf]  ;;  %v5460_v61 = vld [vmem:[#allocation5 + $0x3cc] sm:$0xf] }
 0x121   :  { %2480 = vmatpush.bf16.msra.mxu3 %v4278_v21  ;;  %v5486_v21 = vld [vmem:[#allocation5 + $0x494] sm:$0xf0]  ;;  %v4741_v38 = vld [vmem:[#allocation5 + $0x708] sm:$0xf] }
 0x122   :  { %2467 = vmatpush.bf16.msra.mxu2 %v4150_v20  ;;  %2443 = vmatpush.bf16.msra.mxu0 %v3862_v25  ;;  %v4421_v20 = vld [vmem:[#allocation5 + $0x488] sm:$0xf]  ;;  %v4838_v25 = vor.u32 %v5590_v18, %v4837_v16  ;;  %v5542_v4 = vld [vmem:[#allocation5 + $0x654] sm:$0xf0]  ;;  %v5368_v16 = vld [vmem:[#allocation5 + $0xec] sm:$0xf] }
 0x123   :  { %2456 = vmatpush.bf16.msra.mxu1 %v3990_v26  ;;  %v4693_v26 = vld [vmem:[#allocation5 + $0x6a8] sm:$0xf]  ;;  %v4422_v28 = vor.u32 %v5486_v21, %v4421_v20  ;;  %v5502_v14 = vld [vmem:[#allocation5 + $0x514] sm:$0xf0]  ;;  %v3959_v18 = vld [vmem:[#allocation5 + $0xf8] sm:$0xf0] }
 0x124   :  { %v4694_v34 = vor.u32 %v5554_v27, %v4693_v26  ;;  %v4087_v21 = vld [vmem:[#allocation5 + $0x1f8] sm:$0xf0]  ;;  %v5538_v2 = vld [vmem:[#allocation5 + $0x634] sm:$0xf0]  ;;  %v4486_v27 = vor.u32 %v5502_v14, %v4485_v13  ;;  %v5456_v14 = vld [vmem:[#allocation5 + $0x3ac] sm:$0xf] }
 0x125   :  { %2481 = vmatpush.bf16.msra.mxu3 %v4262_v37  ;;  %v4822_v37 = vor.u32 %v5586_v30, %v4821_v29  ;;  %v5570_v26 = vld [vmem:[#allocation5 + $0x734] sm:$0xf0]  ;;  %v5364_v29 = vld [vmem:[#allocation5 + $0xcc] sm:$0xf] }
 0x126   :  { %2468 = vmatpush.bf16.msra.mxu2 %v4134_v33  ;;  %2444 = vmatpush.bf16.msra.mxu0 %v3846_v40  ;;  %v5482_v33 = vld [vmem:[#allocation5 + $0x474] sm:$0xf0] }
 0x127   :  { %2457 = vmatpush.bf16.msra.mxu1 %v3974_v41  ;;  %v4406_v40 = vor.u32 %v5482_v33, %v4405_v32  ;;  %v4805_v41 = vld [vmem:[#allocation5 + $0x788] sm:$0xf]  ;;  %v3943_v32 = vld [vmem:[#allocation5 + $0xd8] sm:$0xf0]  ;;  %v5396_v33 = vld [vmem:[#allocation5 + $0x1cc] sm:$0xf] }
 0x128   :  { %v4806_v53 = vor.u32 %v5582_v42, %v4805_v41  ;;  %v5566_v39 = vld [vmem:[#allocation5 + $0x714] sm:$0xf0]  ;;  %v4215_v41 = vld [vmem:[#allocation5 + $0x2f8] sm:$0xf0]  ;;  %v3946_v42 = vor.u32 %v5364_v29, %v3943_v32 }
 0x129   :  { %2482 = vmatpush.bf16.msra.mxu3 %v4246_v55  ;;  %2445 = vmatmul.bf16.vlgmr.msra.gmra.mxu0 %v6071_v17  ;;  %v5546_v55 = vld [vmem:[#allocation5 + $0x674] sm:$0xf0] }
 0x12a   :  { %2489 = vmatpush.bf16.msrb.mxu0 %v4470_v46  ;;  %2469 = vmatpush.bf16.msra.mxu2 %v4118_v51  ;;  %v4389_v46 = vld [vmem:[#allocation5 + $0x448] sm:$0xf] }
 0x12b   :  { %2502 = vmatpush.bf16.msrb.mxu1 %v4598_v47  ;;  %v5478_v47 = vld [vmem:[#allocation5 + $0x454] sm:$0xf0]  ;;  %v4517_v51 = vld [vmem:[#allocation5 + $0x548] sm:$0xf] }
 0x12c   :  { %2458 = vmatmul.bf16.vlgmr.msra.gmra.mxu1 %v6074_v22  ;;  %v4390_v56 = vor.u32 %v5478_v47, %v4389_v46  ;;  %v4518_v59 = vor.u32 %v5510_v52, %v4517_v51  ;;  %v4343_v46 = vld [vmem:[#allocation5 + $0x3f8] sm:$0xf0]  ;;  %v5360_v51 = vld [vmem:[#allocation5 + $0xac] sm:$0xf] }
 0x12d   :  { %2483 = vmatpush.bf16.msra.mxu3 %v4230_v7  ;;  %v4773_v7 = vld [vmem:[#allocation5 + $0x748] sm:$0xf]  ;;  %v3927_v52 = vld [vmem:[#allocation5 + $0xb8] sm:$0xf0] }
 0x12e   :  { %2490 = vmatpush.bf16.msrb.mxu0 %v4454_v62  ;;  %2470 = vmatpush.bf16.msra.mxu2 %v4102_v3  ;;  %v4662_v62 = vor.u32 %v5546_v55, %v4661_v54  ;;  %v4645_v3 = vld [vmem:[#allocation5 + $0x648] sm:$0xf]  ;;  %v5392_v55 = vld [vmem:[#allocation5 + $0x1ac] sm:$0xf]  ;;  %v3930_v60 = vor.u32 %v5360_v51, %v3927_v52  ;;  %v3991_v52 = vld [vmem:[#allocation5 + $0x138] sm:$0xf0] }
 0x12f   :  { %2503 = vmatpush.bf16.msrb.mxu1 %v4582_v63  ;;  %v4501_v63 = vld [vmem:[#allocation5 + $0x528] sm:$0xf]  ;;  %v5376_v51 = vld [vmem:[#allocation5 + $0x12c] sm:$0xf] }
 0x130   :  { %2484 = vmatmul.bf16.vlgmr.msra.gmra.mxu3 %v6080_v49  ;;  %v4502_v11 = vor.u32 %v5506_v0, %v4501_v63  ;;  %v5356_v0 = vld [vmem:[#allocation5 + $0x8c] sm:$0xf] }
 0x131   :  { %2528 = vmatpush.bf16.msrb.mxu3 %v4854_v12  ;;  %2471 = vmatmul.bf16.vlgmr.msra.gmra.mxu2 %v6078_v43  ;;  %v5470_v12 = vld [vmem:[#allocation5 + $0x414] sm:$0xf0] }
 0x132   :  { %2515 = vmatpush.bf16.msrb.mxu2 %v4726_v8  ;;  %2491 = vmatpush.bf16.msrb.mxu0 %v4438_v15  ;;  %v5574_v8 = vld [vmem:[#allocation5 + $0x754] sm:$0xf0]  ;;  %v4646_v15 = vor.u32 %v5542_v4, %v4645_v3  ;;  %v4358_v24 = vor.u32 %v5470_v12, %v4357_v10  ;;  %v4183_v12 = vld [vmem:[#allocation5 + $0x2b8] sm:$0xf0] }
 0x133   :  { %2504 = vmatpush.bf16.msrb.mxu1 %v4566_v19  ;;  %v5400_v19 = vld [vmem:[#allocation5 + $0x1ec] sm:$0xf]  ;;  %v4774_v20 = vor.u32 %v5574_v8, %v4773_v7  ;;  %v4039_v7 = vld [vmem:[#allocation5 + $0x198] sm:$0xf0] }
 0x134   :  { %v4090_v30 = vor.u32 %v5400_v19, %v4087_v21  ;;  %v3895_v19 = vld [vmem:[#allocation5 + $0x78] sm:$0xf0]  ;;  %v5384_v21 = vld [vmem:[#allocation5 + $0x16c] sm:$0xf] }
 0x135   :  { %2529 = vmatpush.bf16.msrb.mxu3 %v4838_v25  ;;  %v4757_v25 = vld [vmem:[#allocation5 + $0x728] sm:$0xf] }
 0x136   :  { %2516 = vmatpush.bf16.msrb.mxu2 %v4710_v23  ;;  %2492 = vmatpush.bf16.msrb.mxu0 %v4422_v28  ;;  %v4629_v23 = vld [vmem:[#allocation5 + $0x628] sm:$0xf]  ;;  %v3962_v28 = vor.u32 %v5368_v16, %v3959_v18  ;;  %v4758_v35 = vor.u32 %v5570_v26, %v4757_v25  ;;  %v5352_v18 = vld [vmem:[#allocation5 + $0x6c] sm:$0xf]  ;;  %v4167_v25 = vld [vmem:[#allocation5 + $0x298] sm:$0xf0] }
 0x137   :  { %2505 = vmatpush.bf16.msrb.mxu1 %v4550_v31  ;;  %v4630_v31 = vor.u32 %v5538_v2, %v4629_v23  ;;  %v4023_v23 = vld [vmem:[#allocation5 + $0x178] sm:$0xf0]  ;;  %v3898_v26 = vor.u32 %v5352_v18, %v3895_v19 }
 0x138   :  { %v4026_v29 = vor.u32 %v5384_v21, %v4023_v23  ;;  %v4247_v18 = vld [vmem:[#allocation5 + $0x338] sm:$0xf0]  ;;  %v5492_v21 = vld [vmem:[#allocation5 + $0x4cc] sm:$0xf] }
 0x139   :  { %2530 = vmatpush.bf16.msrb.mxu3 %v4822_v37  ;;  %v5534_v37 = vld [vmem:[#allocation5 + $0x614] sm:$0xf0] }
 0x13a   :  { %2517 = vmatpush.bf16.msrb.mxu2 %v4694_v34  ;;  %2493 = vmatpush.bf16.msrb.mxu0 %v4406_v40  ;;  %v4071_v34 = vld [vmem:[#allocation5 + $0x1d8] sm:$0xf0]  ;;  %v5432_v40 = vld [vmem:[#allocation5 + $0x2ec] sm:$0xf] }
 0x13b   :  { %2506 = vmatpush.bf16.msrb.mxu1 %v4534_v45  ;;  %v5464_v45 = vld [vmem:[#allocation5 + $0x3ec] sm:$0xf]  ;;  %v4074_v47 = vor.u32 %v5396_v33, %v4071_v34  ;;  %v4218_v54 = vor.u32 %v5432_v40, %v4215_v41 }
 0x13c   :  { %v4346_v57 = vor.u32 %v5464_v45, %v4343_v46  ;;  %v5380_v34 = vld [vmem:[#allocation5 + $0x14c] sm:$0xf] }
 0x13d   :  { %2531 = vmatpush.bf16.msrb.mxu3 %v4806_v53  ;;  %v4742_v53 = vor.u32 %v5566_v39, %v4741_v38  ;;  %v5416_v38 = vld [vmem:[#allocation5 + $0x26c] sm:$0xf]  ;;  %v4151_v39 = vld [vmem:[#allocation5 + $0x278] sm:$0xf0] }
 0x13e   :  { %2518 = vmatpush.bf16.msrb.mxu2 %v4678_v48  ;;  %2494 = vmatpush.bf16.msrb.mxu0 %v4390_v56  ;;  %v4614_v48 = vor.u32 %v5534_v37, %v4613_v36  ;;  %v4055_v56 = vld [vmem:[#allocation5 + $0x1b8] sm:$0xf0]  ;;  %v5448_v41 = vld [vmem:[#allocation5 + $0x36c] sm:$0xf] }
 0x13f   :  { %2507 = vmatpush.bf16.msrb.mxu1 %v4518_v59  ;;  %v4199_v59 = vld [vmem:[#allocation5 + $0x2d8] sm:$0xf0]  ;;  %v4058_v63 = vor.u32 %v5392_v55, %v4055_v56  ;;  %v5344_v46 = vld [vmem:[#allocation5 + $0x2c] sm:$0xf] }
 0x140   :  { %v4202_v4 = vor.u32 %v5428_v58, %v4199_v59  ;;  %v5412_v55 = vld [vmem:[#allocation5 + $0x24c] sm:$0xf]  ;;  %v4135_v56 = vld [vmem:[#allocation5 + $0x258] sm:$0xf0] }
 0x141   :  { %2532 = vmatpush.bf16.msrb.mxu3 %v4790_v1  ;;  %v3911_v1 = vld [vmem:[#allocation5 + $0x98] sm:$0xf0]  ;;  %v5444_v59 = vld [vmem:[#allocation5 + $0x34c] sm:$0xf] }
 0x142   :  { %2519 = vmatpush.bf16.msrb.mxu2 %v4662_v62  ;;  %2495 = vmatpush.bf16.msrb.mxu0 %v4374_v5  ;;  %v4327_v62 = vld [vmem:[#allocation5 + $0x3d8] sm:$0xf0]  ;;  %v5388_v5 = vld [vmem:[#allocation5 + $0x18c] sm:$0xf]  ;;  %v3914_v13 = vor.u32 %v5356_v0, %v3911_v1 }
 0x143   :  { %2508 = vmatpush.bf16.msrb.mxu1 %v4502_v11  ;;  %v4330_v8 = vor.u32 %v5460_v61, %v4327_v62  ;;  %v5424_v11 = vld [vmem:[#allocation5 + $0x2ac] sm:$0xf]  ;;  %v4042_v16 = vor.u32 %v5388_v5, %v4039_v7  ;;  %v3994_v62 = vor.u32 %v5376_v51, %v3991_v52  ;;  %v3975_v1 = vld [vmem:[#allocation5 + $0x118] sm:$0xf0] }
 0x144   :  { %v5340_v61 = vld [vmem:[#allocation5 + $0xc] sm:$0xf]  ;;  %v4471_v7 = vld [vmem:[#allocation5 + $0x4f8] sm:$0xf0] }
 0x145   :  { %2533 = vmatpush.bf16.msrb.mxu3 %v4774_v20  ;;  %v6114_v3 = vpop.f32.mrf.mxu0  ;;  %v6116_v10 = vpop.f32.mrf.mxu1  ;;  %v4186_v20 = vor.u32 %v5424_v11, %v4183_v12  ;;  %v5372_v0 = vld [vmem:[#allocation5 + $0x10c] sm:$0xf]  ;;  %v4599_v12 = vld [vmem:[#allocation5 + $0x5f8] sm:$0xf0] }
 0x146   :  { %2520 = vmatpush.bf16.msrb.mxu2 %v4646_v15  ;;  %2496 = vmatpush.bf16.msrb.mxu0 %v4358_v24  ;;  %v4311_v15 = vld [vmem:[#allocation5 + $0x3b8] sm:$0xf0]  ;;  %v5420_v24 = vld [vmem:[#allocation5 + $0x28c] sm:$0xf]  ;;  %v3978_v19 = vor.u32 %v5372_v0, %v3975_v1 }
 0x147   :  { %2509 = vmatpush.bf16.msrb.mxu1 %v4486_v27  ;;  %v4314_v2 = vor.u32 %v5456_v14, %v4311_v15  ;;  %v5452_v27 = vld [vmem:[#allocation5 + $0x38c] sm:$0xf]  ;;  %v4170_v33 = vor.u32 %v5420_v24, %v4167_v25  ;;  %v4119_v14 = vld [vmem:[#allocation5 + $0x238] sm:$0xf0] }
 0x148   :  { %v5496_v5 = vld [vmem:[#allocation5 + $0x4ec] sm:$0xf]  ;;  %v4455_v24 = vld [vmem:[#allocation5 + $0x4d8] sm:$0xf0] }
 0x149   :  { %2534 = vmatpush.bf16.msrb.mxu3 %v4758_v35  ;;  %2497 = vmatmul.bf16.vlgmr.msrb.gmra.mxu0 %v6087_v6  ;;  %v4007_v35 = vld [vmem:[#allocation5 + $0x158] sm:$0xf0]  ;;  %v5524_v25 = vld [vmem:[#allocation5 + $0x5cc] sm:$0xf] }
 0x14a   :  { %2541 = vmatpush.bf16.msra.mxu0 %v3962_v28  ;;  %2521 = vmatpush.bf16.msrb.mxu2 %v4630_v31  ;;  %v4295_v28 = vld [vmem:[#allocation5 + $0x398] sm:$0xf0]  ;;  %v4010_v45 = vor.u32 %v5380_v34, %v4007_v35  ;;  %v5560_v34 = vld [vmem:[#allocation5 + $0x6ec] sm:$0xf] }
 0x14b   :  { %2554 = vmatpush.bf16.msra.mxu1 %v4090_v30  ;;  %v5348_v30 = vld [vmem:[#allocation5 + $0x4c] sm:$0xf]  ;;  %v3879_v31 = vld [vmem:[#allocation5 + $0x58] sm:$0xf0]  ;;  %v4298_v36 = vor.u32 %v5452_v27, %v4295_v28 }
 0x14c   :  { %2510 = vmatmul.bf16.vlgmr.msrb.gmra.mxu1 %v6090_v9  ;;  %v3882_v40 = vor.u32 %v5348_v30, %v3879_v31  ;;  %v4103_v30 = vld [vmem:[#allocation5 + $0x218] sm:$0xf0]  ;;  %v5436_v31 = vld [vmem:[#allocation5 + $0x30c] sm:$0xf] }
 0x14d   :  { %2535 = vmatpush.bf16.msrb.mxu3 %v4742_v53  ;;  %v2240_v32 = vpop.f32.mrf.mxu0  ;;  %v2253_v37 = vpop.f32.mrf.mxu1  ;;  %v4727_v35 = vld [vmem:[#allocation5 + $0x6f8] sm:$0xf0]  ;;  %v5556_v52 = vld [vmem:[#allocation5 + $0x6cc] sm:$0xf] }
 0x14e   :  { %2542 = vmatpush.bf16.msra.mxu0 %v3946_v42  ;;  %2522 = vmatpush.bf16.msrb.mxu2 %v4614_v48  ;;  %v4279_v42 = vld [vmem:[#allocation5 + $0x378] sm:$0xf0]  ;;  %v4154_v48 = vor.u32 %v5416_v38, %v4151_v39  ;;  %v5592_v37 = vld [vmem:[#allocation5 + $0x7ec] sm:$0xf] }
 0x14f   :  { %2555 = vmatpush.bf16.msra.mxu1 %v4074_v47  ;;  %v3863_v47 = vld [vmem:[#allocation5 + $0x38] sm:$0xf0]  ;;  %v5552_v1 = vld [vmem:[#allocation5 + $0x6ac] sm:$0xf] }
 0x150   :  { %2536 = vmatmul.bf16.vlgmr.msrb.gmra.mxu3 %v6096_v44  ;;  %v3866_v58 = vor.u32 %v5344_v46, %v3863_v47  ;;  %v4855_v38 = vld [vmem:[#allocation5 + $0x7f8] sm:$0xf0]  ;;  %v4730_v46 = vor.u32 %v5560_v34, %v4727_v35  ;;  %v5520_v47 = vld [vmem:[#allocation5 + $0x5ac] sm:$0xf] }
 0x151   :  { %2580 = vmatpush.bf16.msra.mxu3 %v4346_v57  ;;  %2523 = vmatmul.bf16.vlgmr.msrb.gmra.mxu2 %v6094_v50  ;;  %v4858_v51 = vor.u32 %v5592_v37, %v4855_v38  ;;  %v4791_v37 = vld [vmem:[#allocation5 + $0x778] sm:$0xf0] }
 0x152   :  { %2567 = vmatpush.bf16.msra.mxu2 %v4218_v54  ;;  %2543 = vmatpush.bf16.msra.mxu0 %v3930_v60  ;;  %v4282_v54 = vor.u32 %v5448_v41, %v4279_v42  ;;  %v4263_v60 = vld [vmem:[#allocation5 + $0x358] sm:$0xf0]  ;;  %v5488_v41 = vld [vmem:[#allocation5 + $0x4ac] sm:$0xf] }
 0x153   :  { %2556 = vmatpush.bf16.msra.mxu1 %v4058_v63  ;;  %v6122_v57 = vpop.f32.mrf.mxu3  ;;  %v3847_v63 = vld [vmem:[#allocation5 + $0x18] sm:$0xf0]  ;;  %v4266_v11 = vor.u32 %v5444_v59, %v4263_v60  ;;  %v5484_v60 = vld [vmem:[#allocation5 + $0x48c] sm:$0xf] }
 0x154   :  { %v6120_v53 = vpop.f32.mrf.mxu2  ;;  %v3850_v15 = vor.u32 %v5340_v61, %v3847_v63  ;;  %v4439_v42 = vld [vmem:[#allocation5 + $0x4b8] sm:$0xf0] }
 0x155   :  { %2581 = vmatpush.bf16.msra.mxu3 %v4330_v8  ;;  %v5528_v8 = vld [vmem:[#allocation5 + $0x5ec] sm:$0xf]  ;;  %v4423_v61 = vld [vmem:[#allocation5 + $0x498] sm:$0xf0] }
 0x156   :  { %2568 = vmatpush.bf16.msra.mxu2 %v4202_v4  ;;  %2544 = vmatpush.bf16.msra.mxu0 %v3914_v13  ;;  %v4138_v4 = vor.u32 %v5412_v55, %v4135_v56  ;;  %v5408_v13 = vld [vmem:[#allocation5 + $0x22c] sm:$0xf]  ;;  %v4602_v23 = vor.u32 %v5528_v8, %v4599_v12  ;;  %v4442_v55 = vor.u32 %v5488_v41, %v4439_v42  ;;  %v4551_v63 = vld [vmem:[#allocation5 + $0x598] sm:$0xf0] }
 0x157   :  { %2557 = vmatpush.bf16.msra.mxu1 %v4042_v16  ;;  %v5440_v16 = vld [vmem:[#allocation5 + $0x32c] sm:$0xf] }
 0x158   :  { %v4250_v28 = vor.u32 %v5440_v16, %v4247_v18  ;;  %v5588_v56 = vld [vmem:[#allocation5 + $0x7cc] sm:$0xf]  ;;  %v4535_v18 = vld [vmem:[#allocation5 + $0x578] sm:$0xf0] }
 0x159   :  { %2582 = vmatpush.bf16.msra.mxu3 %v4314_v2  ;;  %v4122_v2 = vor.u32 %v5408_v13, %v4119_v14  ;;  %v5584_v8 = vld [vmem:[#allocation5 + $0x7ac] sm:$0xf]  ;;  %v4407_v14 = vld [vmem:[#allocation5 + $0x478] sm:$0xf0] }
 0x15a   :  { %2569 = vmatpush.bf16.msra.mxu2 %v4186_v20  ;;  %2545 = vmatpush.bf16.msra.mxu0 %v3898_v26  ;;  %v4474_v20 = vor.u32 %v5496_v5, %v4471_v7  ;;  %v4583_v26 = vld [vmem:[#allocation5 + $0x5d8] sm:$0xf0]  ;;  %v4426_v7 = vor.u32 %v5484_v60, %v4423_v61  ;;  %v5480_v13 = vld [vmem:[#allocation5 + $0x46c] sm:$0xf] }
 0x15b   :  { %2558 = vmatpush.bf16.msra.mxu1 %v4026_v29  ;;  %v5404_v29 = vld [vmem:[#allocation5 + $0x20c] sm:$0xf]  ;;  %v2279_v32 = vpop.f32.mrf.mxu3  ;;  %v4586_v39 = vor.u32 %v5524_v25, %v4583_v26  ;;  %v4359_v61 = vld [vmem:[#allocation5 + $0x418] sm:$0xf0] }
 0x15c   :  { %v2266_v27 = vpop.f32.mrf.mxu2  ;;  %v5512_v16 = vld [vmem:[#allocation5 + $0x56c] sm:$0xf]  ;;  %v4663_v32 = vld [vmem:[#allocation5 + $0x678] sm:$0xf0] }
 0x15d   :  { %2583 = vmatpush.bf16.msra.mxu3 %v4298_v36  ;;  %v4458_v36 = vor.u32 %v5492_v21, %v4455_v24  ;;  %v4410_v21 = vor.u32 %v5480_v13, %v4407_v14  ;;  %v4538_v24 = vor.u32 %v5512_v16, %v4535_v18  ;;  %v5476_v25 = vld [vmem:[#allocation5 + $0x44c] sm:$0xf]  ;;  %v4631_v13 = vld [vmem:[#allocation5 + $0x638] sm:$0xf0] }
 0x15e   :  { %2570 = vmatpush.bf16.msra.mxu2 %v4170_v33  ;;  %2546 = vmatpush.bf16.msra.mxu0 %v3882_v40  ;;  %v4231_v33 = vld [vmem:[#allocation5 + $0x318] sm:$0xf0]  ;;  %v4106_v40 = vor.u32 %v5404_v29, %v4103_v30  ;;  %v5508_v27 = vld [vmem:[#allocation5 + $0x54c] sm:$0xf] }
 0x15f   :  { %2559 = vmatpush.bf16.msra.mxu1 %v4010_v45  ;;  %v4234_v45 = vor.u32 %v5436_v31, %v4231_v33  ;;  %v5544_v31 = vld [vmem:[#allocation5 + $0x66c] sm:$0xf]  ;;  %v6135_v33 = vld [vmem:[%s6193_s4] sm:$0xf]  ;;  %v4759_v18 = vld [vmem:[#allocation5 + $0x738] sm:$0xf0] }
 0x160   :  { %v4666_v41 = vor.u32 %v5544_v31, %v4663_v32  ;;  %v5504_v42 = vld [vmem:[#allocation5 + $0x52c] sm:$0xf]  ;;  %v4743_v31 = vld [vmem:[#allocation5 + $0x718] sm:$0xf0] }
 0x161   :  { %2584 = vmatpush.bf16.msra.mxu3 %v4282_v54  ;;  %v4711_v54 = vld [vmem:[#allocation5 + $0x6d8] sm:$0xf0]  ;;  %v5568_v16 = vld [vmem:[#allocation5 + $0x72c] sm:$0xf] }
 0x162   :  { %2571 = vmatpush.bf16.msra.mxu2 %v4154_v48  ;;  %2547 = vmatpush.bf16.msra.mxu0 %v3866_v58  ;;  %v4567_v48 = vld [vmem:[#allocation5 + $0x5b8] sm:$0xf0] }
 0x163   :  { %2560 = vmatpush.bf16.msra.mxu1 %v3994_v62  ;;  %v4839_v58 = vld [vmem:[#allocation5 + $0x7d8] sm:$0xf0]  ;;  %v4570_v59 = vor.u32 %v5520_v47, %v4567_v48  ;;  %v5516_v62 = vld [vmem:[#allocation5 + $0x58c] sm:$0xf] }
 0x164   :  { %v4554_v12 = vor.u32 %v5516_v62, %v4551_v63  ;;  %v5540_v48 = vld [vmem:[#allocation5 + $0x64c] sm:$0xf]  ;;  %v4487_v62 = vld [vmem:[#allocation5 + $0x518] sm:$0xf0] }
 0x165   :  { %2585 = vmatpush.bf16.msra.mxu3 %v4266_v11  ;;  %v6126_v0 = vpop.f32.mrf.mxu0  ;;  %v6129_v5 = vpop.f32.mrf.mxu1  ;;  %v4823_v11 = vld [vmem:[#allocation5 + $0x7b8] sm:$0xf0] }
 0x166   :  { %2572 = vmatpush.bf16.msra.mxu2 %v4138_v4  ;;  %2548 = vmatpush.bf16.msra.mxu0 %v3850_v15  ;;  %v4695_v4 = vld [vmem:[#allocation5 + $0x6b8] sm:$0xf0] }
 0x167   :  { %2561 = vmatpush.bf16.msra.mxu1 %v3978_v19  ;;  %v4698_v15 = vor.u32 %v5552_v1, %v4695_v4  ;;  %v4826_v19 = vor.u32 %v5584_v8, %v4823_v11  ;;  %v5610_v1 = vld [vmem:[#allocation7 + $0x74] sm:$0xf0]  ;;  %v4981_v4 = vld [vmem:[#allocation7 + $0xf0] sm:$0xf] }
 0x168   :  { %v5626_v11 = vld [vmem:[#allocation7 + $0xf4] sm:$0xf0] }
 0x169   :  { %2586 = vmatpush.bf16.msra.mxu3 %v4250_v28  ;;  %2549 = vmatmul.bf16.vlgmr.msra.gmra.mxu0 %v6071_v17  ;;  %v4714_v17 = vor.u32 %v5556_v52, %v4711_v54  ;;  %v4519_v28 = vld [vmem:[#allocation5 + $0x558] sm:$0xf0] }
 0x16a   :  { %2593 = vmatpush.bf16.msrb.mxu0 %v4474_v20  ;;  %2573 = vmatpush.bf16.msra.mxu2 %v4122_v2  ;;  %v5548_v20 = vld [vmem:[#allocation5 + $0x68c] sm:$0xf]  ;;  %v4807_v2 = vld [vmem:[#allocation5 + $0x798] sm:$0xf0]  ;;  %v4522_v38 = vor.u32 %v5508_v27, %v4519_v28 }
 0x16b   :  { %2606 = vmatpush.bf16.msrb.mxu1 %v4602_v23  ;;  %v5580_v23 = vld [vmem:[#allocation5 + $0x78c] sm:$0xf]  ;;  %v4615_v28 = vld [vmem:[#allocation5 + $0x618] sm:$0xf0] }
 0x16c   :  { %2562 = vmatmul.bf16.vlgmr.msra.gmra.mxu1 %v6074_v22  ;;  %v4842_v22 = vor.u32 %v5588_v56, %v4839_v58  ;;  %v4810_v30 = vor.u32 %v5580_v23, %v4807_v2  ;;  %v4775_v56 = vld [vmem:[#allocation5 + $0x758] sm:$0xf0]  ;;  %v5468_v58 = vld [vmem:[#allocation5 + $0x40c] sm:$0xf]  ;;  %v4909_v2 = vld [vmem:[#allocation7 + $0x60] sm:$0xf] }
 0x16d   :  { %2587 = vmatpush.bf16.msra.mxu3 %v4234_v45  ;;  %v2292_v29 = vpop.f32.mrf.mxu0  ;;  %v2305_v34 = vpop.f32.mrf.mxu1  ;;  %v4503_v45 = vld [vmem:[#allocation5 + $0x538] sm:$0xf0]  ;;  %v5532_v27 = vld [vmem:[#allocation5 + $0x60c] sm:$0xf] }
 0x16e   :  { %2594 = vmatpush.bf16.msrb.mxu0 %v4458_v36  ;;  %2574 = vmatpush.bf16.msra.mxu2 %v4106_v40  ;;  %v5576_v36 = vld [vmem:[#allocation5 + $0x76c] sm:$0xf]  ;;  %v4375_v40 = vld [vmem:[#allocation5 + $0x438] sm:$0xf0]  ;;  %v4506_v60 = vor.u32 %v5504_v42, %v4503_v45  ;;  %v4965_v42 = vld [vmem:[#allocation7 + $0xd0] sm:$0xf] }
 0x16f   :  { %2607 = vmatpush.bf16.msrb.mxu1 %v4586_v39  ;;  %v5472_v39 = vld [vmem:[#allocation5 + $0x42c] sm:$0xf]  ;;  %v4794_v47 = vor.u32 %v5576_v36, %v4791_v37  ;;  %v4618_v37 = vor.u32 %v5532_v27, %v4615_v28  ;;  %v5622_v45 = vld [vmem:[#allocation7 + $0xd4] sm:$0xf0]  ;;  %v4933_v28 = vld [vmem:[#allocation7 + $0x90] sm:$0xf] }
 0x170   :  { %2588 = vmatmul.bf16.vlgmr.msra.gmra.mxu3 %v6080_v49  ;;  %v4391_v49 = vld [vmem:[#allocation5 + $0x458] sm:$0xf0]  ;;  %v4378_v54 = vor.u32 %v5472_v39, %v4375_v40  ;;  %v5606_v39 = vld [vmem:[#allocation7 + $0x54] sm:$0xf0] }
 0x171   :  { %2632 = vmatpush.bf16.msrb.mxu3 %v4858_v51  ;;  %2575 = vmatmul.bf16.vlgmr.msra.gmra.mxu2 %v6078_v43  ;;  %v4679_v43 = vld [vmem:[#allocation5 + $0x698] sm:$0xf0]  ;;  %v4394_v35 = vor.u32 %v5476_v25, %v4391_v49  ;;  %v4973_v25 = vld [vmem:[#allocation7 + $0xe0] sm:$0xf]  ;;  %v4762_v49 = vor.u32 %v5568_v16, %v4759_v18 }
 0x172   :  { %2619 = vmatpush.bf16.msrb.mxu2 %v4730_v46  ;;  %2595 = vmatpush.bf16.msrb.mxu0 %v4442_v55  ;;  %v4682_v26 = vor.u32 %v5548_v20, %v4679_v43  ;;  %v941_v46 = vperm.slane %v6135_v33, 0  ;;  %v4647_v51 = vld [vmem:[#allocation5 + $0x658] sm:$0xf0]  ;;  %v5572_v55 = vld [vmem:[#allocation5 + $0x74c] sm:$0xf] }
 0x173   :  { %2608 = vmatpush.bf16.msrb.mxu1 %v4570_v59  ;;  %v6138_v52 = vpop.f32.mrf.mxu2  ;;  %v6140_v59 = vpop.f32.mrf.mxu3  ;;  %v4650_v63 = vor.u32 %v5540_v48, %v4647_v51  ;;  %v4778_v8 = vor.u32 %v5572_v55, %v4775_v56  ;;  %v4966_v51 = vor.u32 %v5622_v45, %v4965_v42  ;;  %v5604_v55 = vld [vmem:[#allocation7 + $0x44] sm:$0xf0]  ;;  %v4957_v56 = vld [vmem:[#allocation7 + $0xc0] sm:$0xf]  ;;  %v4919_v42 = vld [vmem:[#allocation7 + $0x78] sm:$0xf0] }
 0x174   :  { %v4941_v18 = vld [vmem:[#allocation7 + $0xa0] sm:$0xf] }
 0x175   :  { %2633 = vmatpush.bf16.msrb.mxu3 %v4842_v22  ;;  %v4917_v22 = vld [vmem:[#allocation7 + $0x70] sm:$0xf]  ;;  %v2355_v14 = vpop.f32.mrf.mxu1 }
 0x176   :  { %2620 = vmatpush.bf16.msrb.mxu2 %v4714_v17  ;;  %2596 = vmatpush.bf16.msrb.mxu0 %v4426_v7  ;;  %v5500_v17 = vld [vmem:[#allocation5 + $0x50c] sm:$0xf]  ;;  %v2342_v7 = vpop.f32.mrf.mxu0  ;;  %v4918_v43 = vor.u32 %v5610_v1, %v4917_v22  ;;  %v4949_v1 = vld [vmem:[#allocation7 + $0xb0] sm:$0xf] }
 0x177   :  { %2609 = vmatpush.bf16.msrb.mxu1 %v4554_v12  ;;  %v5536_v12 = vld [vmem:[#allocation5 + $0x62c] sm:$0xf]  ;;  %v4490_v20 = vor.u32 %v5500_v17, %v4487_v62  ;;  %v4885_v62 = vld [vmem:[#allocation7 + $0x30] sm:$0xf] }
 0x178   :  { %v4634_v23 = vor.u32 %v5536_v12, %v4631_v13  ;;  %v5045_v12 = vld [vmem:[#allocation7 + $0x170] sm:$0xf] }
 0x179   :  { %2634 = vmatpush.bf16.msrb.mxu3 %v4826_v19  ;;  %v2239_v19 = vadd.f32 %v6114_v3, %v941_v46 }
 0x17a   :  { %2621 = vmatpush.bf16.msrb.mxu2 %v4698_v15  ;;  %2597 = vmatpush.bf16.msrb.mxu0 %v4410_v21  ;;  %v4362_v15 = vor.u32 %v5468_v58, %v4359_v61  ;;  %v4982_v21 = vor.u32 %v5626_v11, %v4981_v4  ;;  %v5618_v4 = vld [vmem:[#allocation7 + $0xb4] sm:$0xf0] }
 0x17b   :  { %2610 = vmatpush.bf16.msrb.mxu1 %v4538_v24  ;;  %v5608_v24 = vld [vmem:[#allocation7 + $0x64] sm:$0xf0]  ;;  %v2318_v29 = vpop.f32.mrf.mxu2  ;;  %v2252_v3 = vadd.f32 %v6116_v10, %v2239_v19  ;;  %v2331_v32 = vpop.f32.mrf.mxu3  ;;  %v4950_v13 = vor.u32 %v5618_v4, %v4949_v1  ;;  %v5634_v1 = vld [vmem:[#allocation7 + $0x134] sm:$0xf0] }
 0x17c   :  { %v4910_v34 = vor.u32 %v5608_v24, %v4909_v2  ;;  %v5616_v19 = vld [vmem:[#allocation7 + $0xa4] sm:$0xf0]  ;;  %v5037_v2 = vld [vmem:[#allocation7 + $0x160] sm:$0xf]  ;;  %v5614_v29 = vld [vmem:[#allocation7 + $0x94] sm:$0xf0] }
 0x17d   :  { %2635 = vmatpush.bf16.msrb.mxu3 %v4810_v30  ;;  %v5564_v30 = vld [vmem:[#allocation5 + $0x70c] sm:$0xf]  ;;  %v2357_v10 = vpop.f32.mrf.mxu1  ;;  %v2265_v46 = vadd.f32 %v6120_v53, %v2252_v3  ;;  %v5640_v24 = vld [vmem:[#allocation7 + $0x164] sm:$0xf0]  ;;  %v5029_v32 = vld [vmem:[#allocation7 + $0x150] sm:$0xf] }
 0x17e   :  { %2622 = vmatpush.bf16.msrb.mxu2 %v4682_v26  ;;  %2598 = vmatpush.bf16.msrb.mxu0 %v4394_v35  ;;  %v5624_v26 = vld [vmem:[#allocation7 + $0xe4] sm:$0xf0]  ;;  %v942_v35 = vperm.slane %v6135_v33, 1  ;;  %v2344_v40 = vpop.f32.mrf.mxu0  ;;  %v5038_v27 = vor.u32 %v5640_v24, %v5037_v2  ;;  %v5625_v10 = vld [vmem:[#allocation7 + $0xf4] sm:$0xf] }
 0x17f   :  { %2611 = vmatpush.bf16.msrb.mxu1 %v4522_v38  ;;  %v4974_v36 = vor.u32 %v5624_v26, %v4973_v25  ;;  %v4901_v38 = vld [vmem:[#allocation7 + $0x50] sm:$0xf]  ;;  %v4942_v25 = vor.u32 %v5616_v19, %v4941_v18  ;;  %v5598_v26 = vld [vmem:[#allocation7 + $0x14] sm:$0xf0]  ;;  %v5612_v40 = vld [vmem:[#allocation7 + $0x84] sm:$0xf0] }
 0x180   :  { %v2343_v48 = vadd.f32 %v2342_v7, %v942_v35  ;;  %v4934_v35 = vor.u32 %v5614_v29, %v4933_v28  ;;  %v5619_v2 = vld [vmem:[#allocation7 + $0xc4] sm:$0xf]  ;;  %v4959_v24 = vld [vmem:[#allocation7 + $0xc8] sm:$0xf0]  ;;  %v5601_v29 = vld [vmem:[#allocation7 + $0x34] sm:$0xf] }
 0x181   :  { %2636 = vmatpush.bf16.msrb.mxu3 %v4794_v47  ;;  %v4902_v47 = vor.u32 %v5606_v39, %v4901_v38  ;;  %v4925_v38 = vld [vmem:[#allocation7 + $0x80] sm:$0xf]  ;;  %v4962_v28 = vor.u32 %v5619_v2, %v4959_v24  ;;  %v5629_v24 = vld [vmem:[#allocation7 + $0x114] sm:$0xf] }
 0x182   :  { %2623 = vmatpush.bf16.msrb.mxu2 %v4666_v41  ;;  %2599 = vmatpush.bf16.msrb.mxu0 %v4378_v54  ;;  %v4746_v41 = vor.u32 %v5564_v30, %v4743_v31  ;;  %v4893_v54 = vld [vmem:[#allocation7 + $0x40] sm:$0xf]  ;;  %v2356_v53 = vadd.f32 %v2355_v14, %v2343_v48 }
 0x183   :  { %2612 = vmatpush.bf16.msrb.mxu1 %v4506_v60  ;;  %v2368_v58 = vpop.f32.mrf.mxu2  ;;  %v2278_v60 = vadd.f32 %v6122_v57, %v2265_v46  ;;  %v2381_v61 = vpop.f32.mrf.mxu3  ;;  %v4877_v14 = vld [vmem:[#allocation7 + $0x20] sm:$0xf]  ;;  %v4983_v46 = vld [vmem:[#allocation7 + $0xf8] sm:$0xf0] }
 0x184   :  { %v2369_v7 = vadd.f32 %v2368_v58, %v2356_v53  ;;  %v4911_v53 = vld [vmem:[#allocation7 + $0x68] sm:$0xf0] }
 0x185   :  { %2637 = vmatpush.bf16.msrb.mxu3 %v4778_v8  ;;  %v2291_v22 = vadd.f32 %v6126_v0, %v2278_v60 }
 0x186   :  { %2624 = vmatpush.bf16.msrb.mxu2 %v4650_v63  ;;  %2600 = vmatpush.bf16.msrb.mxu0 %v4362_v15  ;;  %v5602_v63 = vld [vmem:[#allocation7 + $0x34] sm:$0xf0]  ;;  %v2394_v8 = vpop.f32.mrf.mxu0  ;;  %v5600_v15 = vld [vmem:[#allocation7 + $0x24] sm:$0xf0] }
 0x187   :  { %2613 = vmatpush.bf16.msrb.mxu1 %v4490_v20  ;;  %v4886_v57 = vor.u32 %v5602_v63, %v4885_v62  ;;  %v2304_v16 = vadd.f32 %v6129_v5, %v2291_v22  ;;  %v2382_v20 = vadd.f32 %v2381_v61, %v2369_v7  ;;  %v4986_v61 = vor.u32 %v5625_v10, %v4983_v46  ;;  %v5623_v62 = vld [vmem:[#allocation7 + $0xe4] sm:$0xf]  ;;  %v4975_v63 = vld [vmem:[#allocation7 + $0xe8] sm:$0xf0]  ;;  %v5013_v22 = vld [vmem:[#allocation7 + $0x130] sm:$0xf] }
 0x188   :  { %v4943_v10 = vld [vmem:[#allocation7 + $0xa8] sm:$0xf0] }
 0x189   :  { %2638 = vmatpush.bf16.msrb.mxu3 %v4762_v49  ;;  %2601 = vmatmul.bf16.vlgmr.msrb.gmra.mxu0 %v6087_v6  ;;  %v5620_v6 = vld [vmem:[#allocation7 + $0xc4] sm:$0xf0]  ;;  %v2407_v11 = vpop.f32.mrf.mxu1  ;;  %v4869_v49 = vld [vmem:[#allocation7 + $0x10] sm:$0xf]  ;;  %v2395_v5 = vadd.f32 %v2394_v8, %v2382_v20 }
 0x18a   :  { %3043 = vmatpush.bf16.msra.mxu0 %v4918_v43  ;;  %2625 = vmatpush.bf16.msrb.mxu2 %v4634_v23  ;;  %v4958_v17 = vor.u32 %v5620_v6, %v4957_v56  ;;  %v2317_v43 = vadd.f32 %v6138_v52, %v2304_v16  ;;  %v4878_v23 = vor.u32 %v5600_v15, %v4877_v14  ;;  %v4903_v14 = vld [vmem:[#allocation7 + $0x58] sm:$0xf0] }
 0x18b   :  { %3056 = vmatpush.bf16.msra.mxu1 %v4982_v21  ;;  %v2370_v0 = vpop.f32.mrf.mxu2  ;;  %v2383_v21 = vpop.f32.mrf.mxu3  ;;  %v4870_v52 = vor.u32 %v5598_v26, %v4869_v49  ;;  %v2408_v45 = vadd.f32 %v2407_v11, %v2395_v5  ;;  %v4926_v6 = vor.u32 %v5612_v40, %v4925_v38  ;;  %v5014_v11 = vor.u32 %v5634_v1, %v5013_v22  ;;  %v4967_v16 = vld [vmem:[#allocation7 + $0xd8] sm:$0xf0]  ;;  %v5630_v49 = vld [vmem:[#allocation7 + $0x114] sm:$0xf0]  ;;  %v5599_v40 = vld [vmem:[#allocation7 + $0x24] sm:$0xf] }
 0x18c   :  { %2614 = vmatmul.bf16.vlgmr.msrb.gmra.mxu1 %v6090_v9  ;;  %v4894_v9 = vor.u32 %v5604_v55, %v4893_v54  ;;  %v2330_v31 = vadd.f32 %v6140_v59, %v2317_v43  ;;  %v5021_v54 = vld [vmem:[#allocation7 + $0x140] sm:$0xf]  ;;  %v5636_v55 = vld [vmem:[#allocation7 + $0x144] sm:$0xf0]  ;;  %v5603_v21 = vld [vmem:[#allocation7 + $0x44] sm:$0xf] }
 0x18d   :  { %2639 = vmatpush.bf16.msrb.mxu3 %v4746_v41  ;;  %v5609_v41 = vld [vmem:[#allocation7 + $0x74] sm:$0xf]  ;;  %v5022_v60 = vor.u32 %v5636_v55, %v5021_v54  ;;  %v4887_v5 = vld [vmem:[#allocation7 + $0x38] sm:$0xf0]  ;;  %v5611_v1 = vld [vmem:[#allocation7 + $0x84] sm:$0xf] }
 0x18e   :  { %3044 = vmatpush.bf16.msra.mxu0 %v4910_v34  ;;  %2626 = vmatpush.bf16.msrb.mxu2 %v4618_v37  ;;  %v2396_v30 = vpop.f32.mrf.mxu0  ;;  %v5638_v34 = vld [vmem:[#allocation7 + $0x154] sm:$0xf0]  ;;  %v5596_v37 = vld [vmem:[#allocation7 + $0x4] sm:$0xf0]  ;;  %v4922_v58 = vor.u32 %v5609_v41, %v4919_v42  ;;  %v5047_v38 = vld [vmem:[#allocation7 + $0x178] sm:$0xf0] }
 0x18f   :  { %3057 = vmatpush.bf16.msra.mxu1 %v4974_v36  ;;  %v4861_v36 = vld [vmem:[#allocation7] sm:$0xf]  ;;  %v5030_v39 = vor.u32 %v5638_v34, %v5029_v32  ;;  %v5617_v30 = vld [vmem:[#allocation7 + $0xb4] sm:$0xf]  ;;  %v5628_v32 = vld [vmem:[#allocation7 + $0x104] sm:$0xf0] }
 0x190   :  { %2640 = vmatmul.bf16.vlgmr.msrb.gmra.mxu3 %v6096_v44  ;;  %v5641_v34 = vld [vmem:[#allocation7 + $0x174] sm:$0xf]  ;;  %v4879_v41 = vld [vmem:[#allocation7 + $0x28] sm:$0xf0]  ;;  %v4871_v54 = vld [vmem:[#allocation7 + $0x18] sm:$0xf0] }
 0x191   :  { %2627 = vmatmul.bf16.vlgmr.msrb.gmra.mxu2 %v6094_v50  ;;  %v5642_v50 = vld [vmem:[#allocation7 + $0x174] sm:$0xf0]  ;;  %v2409_v3 = vpop.f32.mrf.mxu1  ;;  %v5050_v42 = vor.u32 %v5641_v34, %v5047_v38  ;;  %v4882_v46 = vor.u32 %v5599_v40, %v4879_v41  ;;  %v5656_v34 = vld [vmem:[#allocation7 + $0x1e4] sm:$0xf0] }
 0x192   :  { %3045 = vmatpush.bf16.msra.mxu0 %v4902_v47  ;;  %v5046_v44 = vor.u32 %v5642_v50, %v5045_v12  ;;  %v2645_v47 = vmax.f32 %v2330_v31, 0.0  ;;  %v5632_v12 = vld [vmem:[#allocation7 + $0x124] sm:$0xf0]  ;;  %v4978_v50 = vor.u32 %v5623_v62, %v4975_v63  ;;  %v4951_v31 = vld [vmem:[#allocation7 + $0xb8] sm:$0xf0] }
 0x193   :  { %3058 = vmatpush.bf16.msra.mxu1 %v4966_v51  ;;  %v2433_v48 = vpop.f32.mrf.mxu3  ;;  %v4862_v51 = vor.u32 %v5596_v37, %v4861_v36  ;;  %v4890_v36 = vor.u32 %v5601_v29, %v4887_v5  ;;  %v5595_v62 = vld [vmem:[#allocation7 + $0x4] sm:$0xf]  ;;  %v4863_v63 = vld [vmem:[#allocation7 + $0x8] sm:$0xf0]  ;;  %v5109_v5 = vld [vmem:[#allocation7 + $0x1f0] sm:$0xf] }
 0x194   :  { %3069 = vmatpush.bf16.msra.mxu2 %v5046_v44  ;;  %v2420_v59 = vpop.f32.mrf.mxu2  ;;  %v6155_v4 = vpack.c.bf16 %v2645_v47, %v2645_v47  ;;  %v5621_v44 = vld [vmem:[#allocation7 + $0xd4] sm:$0xf]  ;;  %v5639_v47 = vld [vmem:[#allocation7 + $0x164] sm:$0xf]  ;;  %v4991_v29 = vld [vmem:[#allocation7 + $0x108] sm:$0xf0] }
 0x195   :  { %v2421_v56 = vadd.f32 %v2420_v59, %v2408_v45  ;;  %v4970_v43 = vor.u32 %v5621_v44, %v4967_v16  ;;  %v5615_v45 = vld [vmem:[#allocation7 + $0xa4] sm:$0xf]  ;;  %v5039_v59 = vld [vmem:[#allocation7 + $0x168] sm:$0xf0]  ;;  %v5633_v44 = vld [vmem:[#allocation7 + $0x134] sm:$0xf] }
 0x196   :  { %3046 = vmatpush.bf16.msra.mxu0 %v4894_v9  ;;  %v5607_v9 = vld [vmem:[#allocation7 + $0x64] sm:$0xf]  ;;  %v5042_v55 = vor.u32 %v5639_v47, %v5039_v59  ;;  %v5015_v16 = vld [vmem:[#allocation7 + $0x138] sm:$0xf0]  ;;  %v5654_v40 = vld [vmem:[#allocation7 + $0x1d4] sm:$0xf0] }
 0x197   :  { %3059 = vmatpush.bf16.msra.mxu1 %v4958_v17  ;;  %v2434_v17 = vadd.f32 %v2433_v48, %v2421_v56  ;;  %v4914_v8 = vor.u32 %v5607_v9, %v4911_v53  ;;  %v4946_v48 = vor.u32 %v5615_v45, %v4943_v10  ;;  %v5613_v56 = vld [vmem:[#allocation7 + $0x94] sm:$0xf]  ;;  %v5031_v53 = vld [vmem:[#allocation7 + $0x158] sm:$0xf0]  ;;  %v5085_v10 = vld [vmem:[#allocation7 + $0x1c0] sm:$0xf] }
 0x198   :  { %3070 = vmatpush.bf16.msra.mxu2 %v5038_v27  ;;  %v5637_v9 = vld [vmem:[#allocation7 + $0x154] sm:$0xf] }
 0x199   :  { %v2646_v7 = vmax.f32 %v2434_v17, 0.0  ;;  %v5034_v22 = vor.u32 %v5637_v9, %v5031_v53 }
 0x19a   :  { %3047 = vmatpush.bf16.msra.mxu0 %v4886_v57  ;;  %v5005_v57 = vld [vmem:[#allocation7 + $0x120] sm:$0xf] }
 0x19b   :  { %3060 = vmatpush.bf16.msra.mxu1 %v4950_v13  ;;  %v5605_v13 = vld [vmem:[#allocation7 + $0x54] sm:$0xf]  ;;  %v6157_v15 = vpack.c.bf16 %v2646_v7, %v2646_v7  ;;  %v5006_v18 = vor.u32 %v5632_v12, %v5005_v57  ;;  %v2435_v20 = vpop.f32.mrf.mxu3  ;;  %v4927_v7 = vld [vmem:[#allocation7 + $0x88] sm:$0xf0]  ;;  %v4866_v57 = vor.u32 %v5595_v62, %v4863_v63  ;;  %v5635_v12 = vld [vmem:[#allocation7 + $0x144] sm:$0xf] }
 0x19c   :  { %3071 = vmatpush.bf16.msra.mxu2 %v5030_v39  ;;  %v2422_v19 = vpop.f32.mrf.mxu2  ;;  %v4906_v0 = vor.u32 %v5605_v13, %v4903_v14  ;;  %v4954_v39 = vor.u32 %v5617_v30, %v4951_v31  ;;  %v4930_v13 = vor.u32 %v5611_v1, %v4927_v7  ;;  %v5007_v20 = vld [vmem:[#allocation7 + $0x128] sm:$0xf0]  ;;  %v5061_v62 = vld [vmem:[#allocation7 + $0x190] sm:$0xf]  ;;  %v5646_v63 = vld [vmem:[#allocation7 + $0x194] sm:$0xf0] }
 0x19d   :  { %v5631_v19 = vld [vmem:[#allocation7 + $0x124] sm:$0xf]  ;;  %v5053_v7 = vld [vmem:[#allocation7 + $0x180] sm:$0xf] }
 0x19e   :  { %3048 = vmatpush.bf16.msra.mxu0 %v4878_v23  ;;  %v4895_v23 = vld [vmem:[#allocation7 + $0x48] sm:$0xf0] }
 0x19f   :  { %3061 = vmatpush.bf16.msra.mxu1 %v4942_v25  ;;  %v4997_v25 = vld [vmem:[#allocation7 + $0x110] sm:$0xf]  ;;  %v4898_v26 = vor.u32 %v5603_v21, %v4895_v23  ;;  %v5010_v21 = vor.u32 %v5631_v19, %v5007_v20  ;;  %v5653_v20 = vld [vmem:[#allocation7 + $0x1d4] sm:$0xf] }
 0x1a0   :  { %3072 = vmatpush.bf16.msra.mxu2 %v5022_v60  ;;  %v4998_v27 = vor.u32 %v5630_v49, %v4997_v25  ;;  %v4999_v25 = vld [vmem:[#allocation7 + $0x118] sm:$0xf0] }
 0x1a1   :  { %v5002_v49 = vor.u32 %v5629_v24, %v4999_v25  ;;  %v5087_v24 = vld [vmem:[#allocation7 + $0x1c8] sm:$0xf0] }
 0x1a2   :  { %3049 = vmatpush.bf16.msra.mxu0 %v4870_v52  ;;  %v4989_v52 = vld [vmem:[#allocation7 + $0x100] sm:$0xf] }
 0x1a3   :  { %3062 = vmatpush.bf16.msra.mxu1 %v4934_v35  ;;  %v4990_v37 = vor.u32 %v5628_v32, %v4989_v52  ;;  %v5658_v52 = vld [vmem:[#allocation7 + $0x1f4] sm:$0xf0] }
 0x1a4   :  { %3073 = vmatpush.bf16.msra.mxu2 %v5014_v11  ;;  %v5110_v32 = vor.u32 %v5658_v52, %v5109_v5  ;;  %v944_v5 = vperm.slane %v6135_v33, 3 }
 0x1a6   :  { %3050 = vmatpush.bf16.msra.mxu0 %v4862_v51  ;;  %v6161_v3 = vpop.f32.mrf.mxu0  ;;  %v5597_v51 = vld [vmem:[#allocation7 + $0x14] sm:$0xf]  ;;  %3082 = vmatpush.bf16.msra.mxu3 %v5110_v32 }
 0x1a7   :  { %3063 = vmatpush.bf16.msra.mxu1 %v4926_v6  ;;  %v4935_v6 = vld [vmem:[#allocation7 + $0x98] sm:$0xf0]  ;;  %v5645_v32 = vld [vmem:[#allocation7 + $0x194] sm:$0xf] }
 0x1a8   :  { %3074 = vmatpush.bf16.msra.mxu2 %v5006_v18  ;;  %v4938_v17 = vor.u32 %v5613_v56, %v4935_v6  ;;  %v5018_v18 = vor.u32 %v5633_v44, %v5015_v16  ;;  %v5650_v56 = vld [vmem:[#allocation7 + $0x1b4] sm:$0xf0]  ;;  %v5103_v44 = vld [vmem:[#allocation7 + $0x1e8] sm:$0xf0] }
 0x1a9   :  { %3051 = vmatmul.bf16.vlgmr.msra.gmra.mxu0 %v6155_v4  ;;  %v6163_v35 = vpop.f32.mrf.mxu1 }
 0x1aa   :  { %3095 = vmatpush.bf16.msrb.mxu0 %v4922_v58  ;;  %3064 = vmatmul.bf16.vlgmr.msra.gmra.mxu1 %v6157_v15 }
 0x1ab   :  { %3108 = vmatpush.bf16.msrb.mxu1 %v4986_v61  ;;  %v4874_v61 = vor.u32 %v5597_v51, %v4871_v54 }
 0x1ac   :  { %3075 = vmatpush.bf16.msra.mxu2 %v4998_v27 }
 0x1ae   :  { %3096 = vmatpush.bf16.msrb.mxu0 %v4914_v8  ;;  %v2448_v58 = vpop.f32.mrf.mxu0 }
 0x1af   :  { %3109 = vmatpush.bf16.msrb.mxu1 %v4978_v50  ;;  %v5023_v50 = vld [vmem:[#allocation7 + $0x148] sm:$0xf0]  ;;  %v5069_v58 = vld [vmem:[#allocation7 + $0x1a0] sm:$0xf] }
 0x1b0   :  { %3076 = vmatpush.bf16.msra.mxu2 %v4990_v37  ;;  %v5026_v14 = vor.u32 %v5635_v12, %v5023_v50  ;;  %v5111_v50 = vld [vmem:[#allocation7 + $0x1f8] sm:$0xf0] }
 0x1b1   :  { %v2461_v60 = vpop.f32.mrf.mxu1 }
 0x1b2   :  { %3097 = vmatpush.bf16.msrb.mxu0 %v4906_v0  ;;  %v943_v0 = vperm.slane %v6135_v33, 2  ;;  %v5648_v60 = vld [vmem:[#allocation7 + $0x1a4] sm:$0xf0] }
 0x1b3   :  { %3110 = vmatpush.bf16.msrb.mxu1 %v4970_v43  ;;  %v2485_v11 = vpop.f32.mrf.mxu3  ;;  %v5070_v53 = vor.u32 %v5648_v60, %v5069_v58 }
 0x1b4   :  { %3121 = vmatpush.bf16.msrb.mxu2 %v5050_v42  ;;  %v2472_v8 = vpop.f32.mrf.mxu2  ;;  %v2447_v2 = vadd.f32 %v6161_v3, %v943_v0  ;;  %v5101_v3 = vld [vmem:[#allocation7 + $0x1e0] sm:$0xf]  ;;  %v5095_v0 = vld [vmem:[#allocation7 + $0x1d8] sm:$0xf0] }
 0x1b6   :  { %3098 = vmatpush.bf16.msrb.mxu0 %v4898_v26  ;;  %v2460_v26 = vadd.f32 %v6163_v35, %v2447_v2  ;;  %v5651_v2 = vld [vmem:[#allocation7 + $0x1c4] sm:$0xf] }
 0x1b7   :  { %3111 = vmatpush.bf16.msrb.mxu1 %v4962_v28  ;;  %v5627_v28 = vld [vmem:[#allocation7 + $0x104] sm:$0xf]  ;;  %v5090_v25 = vor.u32 %v5651_v2, %v5087_v24  ;;  %v5672_v2 = vld [vmem:[#allocation8 + $0x68] sm:$0xff] }
 0x1b8   :  { %3122 = vmatpush.bf16.msrb.mxu2 %v5042_v55  ;;  %v2473_v30 = vadd.f32 %v2472_v8, %v2460_v26  ;;  %v4994_v31 = vor.u32 %v5627_v28, %v4991_v29  ;;  %v5077_v55 = vld [vmem:[#allocation7 + $0x1b0] sm:$0xf]  ;;  %v5644_v8 = vld [vmem:[#allocation7 + $0x184] sm:$0xf0]  ;;  %v5079_v26 = vld [vmem:[#allocation7 + $0x1b8] sm:$0xf0] }
 0x1b9   :  { %v5078_v6 = vor.u32 %v5650_v56, %v5077_v55  ;;  %v5054_v12 = vor.u32 %v5644_v8, %v5053_v7  ;;  %v5647_v28 = vld [vmem:[#allocation7 + $0x1a4] sm:$0xf]  ;;  %v5071_v29 = vld [vmem:[#allocation7 + $0x1a8] sm:$0xf0] }
 0x1ba   :  { %3099 = vmatpush.bf16.msrb.mxu0 %v4890_v36  ;;  %v5102_v36 = vor.u32 %v5656_v34, %v5101_v3  ;;  %v5659_v24 = vld [vmem:[#allocation8] sm:$0xff] }
 0x1bb   :  { %3112 = vmatpush.bf16.msrb.mxu1 %v4954_v39  ;;  %v2487_v23 = vpop.f32.mrf.mxu3  ;;  %v5093_v39 = vld [vmem:[#allocation7 + $0x1d0] sm:$0xf] }
 0x1bc   :  { %3123 = vmatpush.bf16.msrb.mxu2 %v5034_v22  ;;  %v2474_v43 = vpop.f32.mrf.mxu2  ;;  %3083 = vmatpush.bf16.msra.mxu3 %v5102_v36  ;;  %v5094_v41 = vor.u32 %v5654_v40, %v5093_v39  ;;  %v5062_v22 = vor.u32 %v5646_v63, %v5061_v62 }
 0x1bd   :  { %v5098_v43 = vor.u32 %v5653_v20, %v5095_v0  ;;  %v5661_v0 = vld [vmem:[#allocation8 + $0x10] sm:$0xff] }
 0x1be   :  { %3100 = vmatpush.bf16.msrb.mxu0 %v4882_v46  ;;  %v5652_v46 = vld [vmem:[#allocation7 + $0x1c4] sm:$0xf0] }
 0x1bf   :  { %3113 = vmatpush.bf16.msrb.mxu1 %v4946_v48  ;;  %v5086_v48 = vor.u32 %v5652_v46, %v5085_v10 }
 0x1c0   :  { %3124 = vmatpush.bf16.msrb.mxu2 %v5026_v14  ;;  %3084 = vmatpush.bf16.msra.mxu3 %v5094_v41  ;;  %v5655_v14 = vld [vmem:[#allocation7 + $0x1e4] sm:$0xf] }
 0x1c1   :  { %v5106_v16 = vor.u32 %v5655_v14, %v5103_v44  ;;  %v5673_v14 = vld [vmem:[#allocation8 + $0x70] sm:$0xff]  ;;  %v5664_v44 = vld [vmem:[#allocation8 + $0x28] sm:$0xff] }
 0x1c2   :  { %3101 = vmatpush.bf16.msrb.mxu0 %v4874_v61 }
 0x1c3   :  { %3114 = vmatpush.bf16.msrb.mxu1 %v4938_v17 }
 0x1c4   :  { %3125 = vmatpush.bf16.msrb.mxu2 %v5018_v18  ;;  %3085 = vmatpush.bf16.msra.mxu3 %v5086_v48 }
 0x1c6   :  { %3102 = vmatpush.bf16.msrb.mxu0 %v4866_v57  ;;  %v2498_v27 = vpop.f32.mrf.mxu0 }
 0x1c7   :  { %3115 = vmatpush.bf16.msrb.mxu1 %v4930_v13 }
 0x1c8   :  { %3126 = vmatpush.bf16.msrb.mxu2 %v5010_v21  ;;  %3086 = vmatpush.bf16.msra.mxu3 %v5078_v6  ;;  %v2717_v6 = vld [vmem:[%s6195_s6] sm:$0x3] }
 0x1c9   :  { %3103 = vmatmul.bf16.vlgmr.msrb.gmra.mxu0 %v6155_v4  ;;  %v2511_v4 = vpop.f32.mrf.mxu1  ;;  %v2719_v58 = vperm.slane %v2717_v6, 0  ;;  %v2720_v63 = vperm.slane %v2717_v6, 1 }
 0x1ca   :  { %3116 = vmatmul.bf16.vlgmr.msrb.gmra.mxu1 %v6157_v15  ;;  %v2486_v15 = vadd.f32 %v2485_v11, %v2473_v30  ;;  %v5657_v11 = vld [vmem:[#allocation7 + $0x1f4] sm:$0xf] }
 0x1cb   :  { %v5114_v13 = vor.u32 %v5657_v11, %v5111_v50  ;;  %v5674_v50 = vld [vmem:[#allocation8 + $0x78] sm:$0xff] }
 0x1cc   :  { %3127 = vmatpush.bf16.msrb.mxu2 %v5002_v49  ;;  %v2499_v37 = vadd.f32 %v2498_v27, %v2486_v15  ;;  %3087 = vmatpush.bf16.msra.mxu3 %v5070_v53  ;;  %v5649_v49 = vld [vmem:[#allocation7 + $0x1b4] sm:$0xf]  ;;  %v5063_v15 = vld [vmem:[#allocation7 + $0x198] sm:$0xf0] }
 0x1cd   :  { %v5082_v27 = vor.u32 %v5649_v49, %v5079_v26  ;;  %v5066_v3 = vor.u32 %v5645_v32, %v5063_v15  ;;  %3296 = vmatpush.bf16.msra.mxu1 %v5674_v50  ;;  %v5670_v49 = vld [vmem:[#allocation8 + $0x58] sm:$0xff]  ;;  %v5669_v26 = vld [vmem:[#allocation8 + $0x50] sm:$0xff] }
 0x1ce   :  { %v2500_v38 = vpop.f32.mrf.mxu0  ;;  %v2512_v42 = vadd.f32 %v2511_v4, %v2499_v37  ;;  %v5074_v4 = vor.u32 %v5647_v28, %v5071_v29  ;;  %v5643_v37 = vld [vmem:[#allocation7 + $0x184] sm:$0xf]  ;;  %v5682_v29 = vld [vmem:[#allocation10 + $0x38] sm:$0xff] }
 0x1cf   :  { %v5055_v38 = vld [vmem:[#allocation7 + $0x188] sm:$0xf0]  ;;  %v5667_v28 = vld [vmem:[#allocation8 + $0x40] sm:$0xff] }
 0x1d0   :  { %3128 = vmatpush.bf16.msrb.mxu2 %v4994_v31  ;;  %3088 = vmatpush.bf16.msra.mxu3 %v5062_v22  ;;  %v5058_v40 = vor.u32 %v5643_v37, %v5055_v38 }
 0x1d1   :  { %v2513_v35 = vpop.f32.mrf.mxu1  ;;  %3297 = vmatpush.bf16.msra.mxu1 %v5673_v14 }
 0x1d3   :  { %v2537_v59 = vpop.f32.mrf.mxu3 }
 0x1d4   :  { %v2524_v45 = vpop.f32.mrf.mxu2  ;;  %3089 = vmatpush.bf16.msra.mxu3 %v5054_v12  ;;  %v5666_v12 = vld [vmem:[#allocation8 + $0x38] sm:$0xff] }
 0x1d5   :  { %v2525_v47 = vadd.f32 %v2524_v45, %v2512_v42  ;;  %3283 = vmatpush.bf16.msra.mxu0 %v5666_v12  ;;  %3298 = vmatpush.bf16.msra.mxu1 %v5672_v2  ;;  %v5718_v2 = vld [vmem:[%s6203_s14] ss:$0 sm:$0xff] }
 0x1d7   :  { %v2538_v51 = vadd.f32 %v2537_v59, %v2525_v47 }
 0x1d8   :  { %3134 = vmatpush.bf16.msrb.mxu3 %v5114_v13  ;;  %v5665_v13 = vld [vmem:[#allocation8 + $0x30] sm:$0xff] }
 0x1d9   :  { %v2647_v54 = vmax.f32 %v2538_v51, 0.0  ;;  %3284 = vmatpush.bf16.msra.mxu0 %v5665_v13 }
 0x1db   :  { %v2651_v61 = vpack.c.bf16 %v2647_v54, %v2647_v54  ;;  %v2539_v17 = vpop.f32.mrf.mxu3 }
 0x1dc   :  { %v2526_v9 = vpop.f32.mrf.mxu2  ;;  %3135 = vmatpush.bf16.msrb.mxu3 %v5106_v16 }
 0x1dd   :  { %3077 = vmatmul.bf16.vlgmr.msra.gmra.mxu2 %v2651_v61  ;;  %3285 = vmatpush.bf16.msra.mxu0 %v5664_v44 }
 0x1de   :  { %3379 = vmatpush.bf16.msra.mxu2 %v5682_v29 }
 0x1e0   :  { %3136 = vmatpush.bf16.msrb.mxu3 %v5098_v43 }
 0x1e4   :  { %3137 = vmatpush.bf16.msrb.mxu3 %v5090_v25  ;;  %v5671_v25 = vld [vmem:[#allocation8 + $0x60] sm:$0xff] }
 0x1e5   :  { %3299 = vmatpush.bf16.msra.mxu1 %v5671_v25 }
 0x1e6   :  { %v2550_v1 = vpop.f32.mrf.mxu0 }
 0x1e7   :  { %v2551_v52 = vadd.f32 %v2550_v1, %v944_v5  ;;  %v5681_v5 = vld [vmem:[#allocation10 + $0x30] sm:$0xff] }
 0x1e8   :  { %3138 = vmatpush.bf16.msrb.mxu3 %v5082_v27  ;;  %v5668_v27 = vld [vmem:[#allocation8 + $0x48] sm:$0xff]  ;;  %3380 = vmatpush.bf16.msra.mxu2 %v5681_v5 }
 0x1e9   :  { %v2563_v57 = vpop.f32.mrf.mxu1  ;;  %3300 = vmatpush.bf16.msra.mxu1 %v5670_v49 }
 0x1ea   :  { %v2564_v34 = vadd.f32 %v2563_v57, %v2551_v52 }
 0x1ec   :  { %3139 = vmatpush.bf16.msrb.mxu3 %v5074_v4 }
 0x1ed   :  { %3129 = vmatmul.bf16.vlgmr.msrb.gmra.mxu2 %v2651_v61  ;;  %3301 = vmatpush.bf16.msra.mxu1 %v5669_v26 }
 0x1ee   :  { %v2552_v18 = vpop.f32.mrf.mxu0 }
 0x1ef   :  { %v5663_v18 = vld [vmem:[#allocation8 + $0x20] sm:$0xff] }
 0x1f0   :  { %3140 = vmatpush.bf16.msrb.mxu3 %v5066_v3  ;;  %3286 = vmatpush.bf16.msra.mxu0 %v5663_v18  ;;  %v5691_v18 = vld [vmem:[#allocation13] sm:$0xff] }
 0x1f1   :  { %v2565_v19 = vpop.f32.mrf.mxu1  ;;  %3302 = vmatpush.bf16.msra.mxu1 %v5668_v27 }
 0x1f2   :  { %v5662_v19 = vld [vmem:[#allocation8 + $0x18] sm:$0xff] }
 0x1f3   :  { %v2589_v23 = vpop.f32.mrf.mxu3 }
 0x1f4   :  { %v2576_v21 = vpop.f32.mrf.mxu2  ;;  %3141 = vmatpush.bf16.msrb.mxu3 %v5058_v40  ;;  %3287 = vmatpush.bf16.msra.mxu0 %v5662_v19  ;;  %v5679_v40 = vld [vmem:[#allocation10 + $0x20] sm:$0xff] }
 0x1f5   :  { %v2577_v35 = vadd.f32 %v2576_v21, %v2564_v34  ;;  %3303 = vmatpush.bf16.msra.mxu1 %v5667_v28  ;;  %v5717_v19 = vld [vmem:[%s6201_s12] ss:$0 sm:$0xff] }
 0x1f7   :  { %v2590_v41 = vadd.f32 %v2589_v23, %v2577_v35  ;;  %v5660_v23 = vld [vmem:[#allocation8 + $0x8] sm:$0xff] }
 0x1f8   :  { %3288 = vmatpush.bf16.msra.mxu0 %v5661_v0 }
 0x1fb   :  { %v2591_v31 = vpop.f32.mrf.mxu3 }
 0x1fc   :  { %v2578_v30 = vpop.f32.mrf.mxu2  ;;  %3289 = vmatpush.bf16.msra.mxu0 %v5660_v23 }
 0x200   :  { %3290 = vmatpush.bf16.msra.mxu0 %v5659_v24 }
 0x206   :  { %v2602_v36 = vpop.f32.mrf.mxu0 }
 0x207   :  { %v2603_v33 = vadd.f32 %v2602_v36, %v2590_v41  ;;  %v5678_v41 = vld [vmem:[#allocation10 + $0x18] sm:$0xff] }
 0x209   :  { %v2615_v39 = vpop.f32.mrf.mxu1 }
 0x20a   :  { %v2616_v10 = vadd.f32 %v2615_v39, %v2603_v33  ;;  %v5680_v39 = vld [vmem:[#allocation10 + $0x28] sm:$0xff]  ;;  %v5677_v33 = vld [vmem:[#allocation10 + $0x10] sm:$0xff] }
 0x20b   :  { %3381 = vmatpush.bf16.msra.mxu2 %v5680_v39 }
 0x20e   :  { %v2604_v42 = vpop.f32.mrf.mxu0 }
 0x20f   :  { %3382 = vmatpush.bf16.msra.mxu2 %v5679_v40  ;;  %v5676_v42 = vld [vmem:[#allocation10 + $0x8] sm:$0xff] }
 0x211   :  { %v2617_v45 = vpop.f32.mrf.mxu1 }
 0x212   :  { %v5675_v45 = vld [vmem:[#allocation10] sm:$0xff] }
 0x213   :  { %v2641_v59 = vpop.f32.mrf.mxu3  ;;  %3383 = vmatpush.bf16.msra.mxu2 %v5678_v41 }
 0x214   :  { %v2628_v46 = vpop.f32.mrf.mxu2 }
 0x215   :  { %v2629_v47 = vadd.f32 %v2628_v46, %v2616_v10  ;;  %v5690_v10 = vld [vmem:[#allocation11 + $0x38] sm:$0xff]  ;;  %v5689_v46 = vld [vmem:[#allocation11 + $0x30] sm:$0xff] }
 0x217   :  { %v2642_v48 = vadd.f32 %v2641_v59, %v2629_v47  ;;  %3384 = vmatpush.bf16.msra.mxu2 %v5677_v33  ;;  %v5688_v47 = vld [vmem:[#allocation11 + $0x28] sm:$0xff] }
 0x219   :  { %v2648_v51 = vmax.f32 %v2642_v48, 0.0  ;;  %v5687_v48 = vld [vmem:[#allocation11 + $0x20] sm:$0xff] }
 0x21b   :  { %v2652_v54 = vpack.c.bf16 %v2648_v51, %v2648_v51  ;;  %v2643_v56 = vpop.f32.mrf.mxu3  ;;  %3385 = vmatpush.bf16.msra.mxu2 %v5676_v42  ;;  %v5686_v51 = vld [vmem:[#allocation11 + $0x18] sm:$0xff] }
 0x21c   :  { %v2630_v55 = vpop.f32.mrf.mxu2  ;;  %v5715_v56 = vld [vmem:[%s6197_s8] ss:$0 sm:$0xff] }
 0x21d   :  { %3090 = vmatmul.bf16.vlgmr.msra.gmra.mxu3 %v2652_v54  ;;  %v5685_v55 = vld [vmem:[#allocation11 + $0x10] sm:$0xff] }
 0x21e   :  { %3462 = vmatpush.bf16.msra.mxu3 %v5690_v10 }
 0x21f   :  { %3386 = vmatpush.bf16.msra.mxu2 %v5675_v45 }
 0x222   :  { %3463 = vmatpush.bf16.msra.mxu3 %v5689_v46 }
 0x226   :  { %v3052_v60 = vpop.f32.mrf.mxu0  ;;  %3464 = vmatpush.bf16.msra.mxu3 %v5688_v47 }
 0x227   :  { %v3053_v61 = vadd.f32 %v3052_v60, %v2719_v58  ;;  %v3065_v9 = vpop.f32.mrf.mxu1 }
 0x229   :  { %v3066_v53 = vadd.f32 %v3065_v9, %v3053_v61 }
 0x22a   :  { %3465 = vmatpush.bf16.msra.mxu3 %v5687_v48 }
 0x22d   :  { %3142 = vmatmul.bf16.vlgmr.msrb.gmra.mxu3 %v2652_v54 }
 0x22e   :  { %v3054_v17 = vpop.f32.mrf.mxu0  ;;  %3466 = vmatpush.bf16.msra.mxu3 %v5686_v51 }
 0x22f   :  { %v3067_v62 = vpop.f32.mrf.mxu1  ;;  %v5684_v17 = vld [vmem:[#allocation11 + $0x8] sm:$0xff] }
 0x230   :  { %v5683_v62 = vld [vmem:[#allocation11] sm:$0xff] }
 0x232   :  { %3467 = vmatpush.bf16.msra.mxu3 %v5685_v55 }
 0x236   :  { %3468 = vmatpush.bf16.msra.mxu3 %v5684_v17 }
 0x23a   :  { %3469 = vmatpush.bf16.msra.mxu3 %v5683_v62 }
 0x246   :  { %v3104_v22 = vpop.f32.mrf.mxu0 }
 0x247   :  { %v3105_v1 = vadd.f32 %v3104_v22, %v2720_v63  ;;  %v3117_v7 = vpop.f32.mrf.mxu1  ;;  %v5698_v63 = vld [vmem:[#allocation13 + $0x38] sm:$0xff]  ;;  %v5697_v22 = vld [vmem:[#allocation13 + $0x30] sm:$0xff] }
 0x248   :  { %3545 = vmatpush.bf16.msrb.mxu0 %v5698_v63 }
 0x249   :  { %v3118_v8 = vadd.f32 %v3117_v7, %v3105_v1  ;;  %v5696_v1 = vld [vmem:[#allocation13 + $0x28] sm:$0xff]  ;;  %v5695_v7 = vld [vmem:[#allocation13 + $0x20] sm:$0xff] }
 0x24c   :  { %3546 = vmatpush.bf16.msrb.mxu0 %v5697_v22 }
 0x24e   :  { %v3106_v11 = vpop.f32.mrf.mxu0 }
 0x24f   :  { %v3119_v57 = vpop.f32.mrf.mxu1  ;;  %v5693_v11 = vld [vmem:[#allocation13 + $0x10] sm:$0xff] }
 0x250   :  { %3547 = vmatpush.bf16.msrb.mxu0 %v5696_v1  ;;  %v5716_v57 = vld [vmem:[%s6199_s10] ss:$0 sm:$0xff] }
 0x254   :  { %3548 = vmatpush.bf16.msrb.mxu0 %v5695_v7 }
 0x260   :  { %v3078_v16 = vpop.f32.mrf.mxu2 }
 0x261   :  { %v3079_v30 = vadd.f32 %v3078_v16, %v3066_v53  ;;  %v5692_v16 = vld [vmem:[#allocation13 + $0x8] sm:$0xff] }
 0x268   :  { %v3080_v20 = vpop.f32.mrf.mxu2 }
 0x270   :  { %v3130_v43 = vpop.f32.mrf.mxu2 }
 0x271   :  { %v3131_v3 = vadd.f32 %v3130_v43, %v3118_v8  ;;  %v5694_v8 = vld [vmem:[#allocation13 + $0x18] sm:$0xff] }
 0x272   :  { %3549 = vmatpush.bf16.msrb.mxu0 %v5694_v8 }
 0x276   :  { %3550 = vmatpush.bf16.msrb.mxu0 %v5693_v11 }
 0x278   :  { %v3132_v21 = vpop.f32.mrf.mxu2 }
 0x27a   :  { %3551 = vmatpush.bf16.msrb.mxu0 %v5692_v16 }
 0x27e   :  { %3552 = vmatpush.bf16.msrb.mxu0 %v5691_v18 }
 0x2a0   :  { %v3091_v4 = vpop.f32.mrf.mxu3 }
 0x2a1   :  { %v3092_v31 = vadd.f32 %v3091_v4, %v3079_v30 }
 0x2a3   :  { %v3147_v52 = vmax.f32 %v3092_v31, 0.0 }
 0x2a5   :  { %v3149_v32 = vpack.c.bf16 %v3147_v52, %v3147_v52 }
 0x2a7   :  { %3291 = vmatmul.bf16.vlgmr.msra.gmra.mxu0 %v3149_v32 }
 0x2a8   :  { %v3093_v15 = vpop.f32.mrf.mxu3 }
 0x2b0   :  { %v3143_v34 = vpop.f32.mrf.mxu3 }
 0x2b1   :  { %v3144_v36 = vadd.f32 %v3143_v34, %v3131_v3 }
 0x2b3   :  { %v3148_v37 = vmax.f32 %v3144_v36, 0.0 }
 0x2b5   :  { %v3150_v38 = vpack.c.bf16 %v3148_v37, %v3148_v37 }
 0x2b7   :  { %3304 = vmatmul.bf16.vlgmr.msra.gmra.mxu1 %v3150_v38 }
 0x2b8   :  { %v3145_v35 = vpop.f32.mrf.mxu3 }
 0x324   :  { %v3292_v59 = vpop.f32.mrf.mxu0 }
 0x325   :  { %v3293_v6 = vadd.f32 %v5715_v56, %v3292_v59 }
 0x32c   :  { %v3294_v54 = vpop.f32.mrf.mxu0 }
 0x334   :  { %v3305_v58 = vpop.f32.mrf.mxu1 }
 0x335   :  { %v3306_v60 = vadd.f32 %v3305_v58, %v3293_v6 }
 0x337   :  { %v3309_v61 = vmax.f32 %v3306_v60, 0.0 }
 0x339   :  { %v3310_v9 = vpack.c.bf16 %v3309_v61, %v3309_v61 }
 0x33b   :  { %3387 = vmatmul.bf16.vlgmr.msra.gmra.mxu2 %v3310_v9 }
 0x33c   :  { %v3307_v53 = vpop.f32.mrf.mxu1 }
 0x3be   :  { %v3388_v12 = vpop.f32.mrf.mxu2 }
 0x3bf   :  { %v3389_v50 = vadd.f32 %v5716_v57, %v3388_v12 }
 0x3c1   :  { %v3392_v13 = vmax.f32 %v3389_v50, 0.0 }
 0x3c3   :  { %v3393_v14 = vpack.c.bf16 %v3392_v13, %v3392_v13 }
 0x3c5   :  { %3470 = vmatmul.bf16.vlgmr.msra.gmra.mxu3 %v3393_v14 }
 0x3c6   :  { %v3390_v44 = vpop.f32.mrf.mxu2 }
 0x448   :  { %v3471_v20 = vpop.f32.mrf.mxu3 }
 0x449   :  { %v3472_v0 = vadd.f32 %v5717_v19, %v3471_v20 }
 0x44b   :  { %v3475_v43 = vmax.f32 %v3472_v0, 0.0 }
 0x44d   :  { %v3476_v21 = vpack.c.bf16 %v3475_v43, %v3475_v43 }
 0x44f   :  { %3553 = vmatmul.bf16.vlgmr.msrb.gmra.mxu0 %v3476_v21 }
 0x450   :  { %v3473_v23 = vpop.f32.mrf.mxu3 }
 0x4cc   :  { %v3554_v24 = vpop.f32.mrf.mxu0 }
 0x4cd   :  { %v3555_v25 = vadd.f32 %v5718_v2, %v3554_v24 }
 0x4cf   :  { %3558 = vst [vmem:[#allocation14] sm:$0xff] %v3555_v25 }
 0x4d0   :  { %3569 = dma.vmem_to_hbm [thread:$0]  %s3565_s17, 128, %s3567_s7, [#allocation4]  }
 0x4d4   :  { %v3556_v49 = vpop.f32.mrf.mxu0 }
 0x4d5   :  { %5919 = dma.done.wait [#allocation4], 128  }
 0x4d6   :  { %5920 = vsyncadd [#allocation4], 4294967168 }
 0x4d7   :  { %3574 = vsyncpa [#allocation3], 1 }
 0x4d8   :  { %3575 = vsyncpa [#allocation6], 1 }
 0x4d9   :  { %3576 = vsyncpa [#allocation9], 1 }
 0x4da   :  { %3577 = vsyncpa [#allocation12], 1 }
 0x4db   :  { %3578 = vsyncpa [#allocation4], 1 }

</bundles_post_ra>
